<compile_context>
chip_gen: v5e
topology: v5e:2x2
jax: 0.10.0
libtpu: 0.0.40
codegen_flags: <defaults>
</compile_context>

<pallas_src>
import jax
import jax.numpy as jnp
import numpy as np
from jax.experimental import pallas as pl
from jax.experimental.pallas import tpu as pltpu


# ----------------------------------------------------------------------------
# Fused Pallas kernel (B images per grid step)
# ----------------------------------------------------------------------------
def _make_block_kernel(*, stride, Ho, Wo, B, Cin, P, proj):
    s = stride
    HW = Ho * Wo

    def kernel(*refs):
        (xph_ref, w1_ref, b1_ref, w2_ref, b2_ref,
         f1w_ref, f1b_ref, f2w_ref, f2b_ref) = refs[:9]
        if proj:
            wsc_ref, bsc_ref = refs[9], refs[10]
        o_ref, o1p_ref = refs[-2], refs[-1]

        def x_tap(ky, kx):
            # Shifted (and stride-decimated via the phase layout) input tile
            # feeding kernel tap (ky, kx); all slices are static & contiguous.
            p_idx = (ky % s) * s + (kx % s)
            dy, dx = ky // s, kx // s
            return xph_ref[:, p_idx, dy:dy + Ho, dx:dx + Wo, :]   # (B,Ho,Wo,Cin)

        # ---- conv1 (3x3, stride) + folded bn1 + relu: ONE K=9*Cin contraction
        lhs1 = jnp.concatenate(
            [x_tap(ky, kx) for ky in range(3) for kx in range(3)],
            axis=-1).reshape(B * HW, 9 * Cin)                      # bf16
        o1 = jnp.maximum(
            jnp.dot(lhs1, w1_ref[...], preferred_element_type=jnp.float32)
            + b1_ref[...], 0.0)                                    # (B*HW,P) f32

        # ---- stage o1 (bf16) in a halo scratch; zero ONLY the border strips.
        # The interior is fully overwritten every step, so no stale data leaks
        # regardless of how the grid is split across cores.
        zrow = jnp.zeros((B, 1, Wo + 2, P), jnp.bfloat16)
        zcol = jnp.zeros((B, Ho, 1, P), jnp.bfloat16)
        o1p_ref[:, 0:1, :, :] = zrow
        o1p_ref[:, Ho + 1:Ho + 2, :, :] = zrow
        o1p_ref[:, 1:Ho + 1, 0:1, :] = zcol
        o1p_ref[:, 1:Ho + 1, Wo + 1:Wo + 2, :] = zcol
        o1p_ref[:, 1:Ho + 1, 1:Wo + 1, :] = (
            o1.reshape(B, Ho, Wo, P).astype(jnp.bfloat16))

        # ---- conv2 (3x3, stride 1) + folded bn2: ONE K=9*P contraction
        lhs2 = jnp.concatenate(
            [o1p_ref[:, ky:ky + Ho, kx:kx + Wo, :]
             for ky in range(3) for kx in range(3)],
            axis=-1).reshape(B * HW, 9 * P)                        # bf16
        o2 = (jnp.dot(lhs2, w2_ref[...], preferred_element_type=jnp.float32)
              + b2_ref[...]).reshape(B, HW, P)                     # f32

        # ---- SE gate on VPU/XLU only (no tiny M=1 MXU dots on the crit path)
        pooled = jnp.mean(o2, axis=1)                              # (B, P)
        h = jnp.maximum(
            jnp.sum(pooled[:, None, :] * f1w_ref[...][None, :, :], axis=-1)
            + f1b_ref[...], 0.0)                                   # (B, Cr)
        gate = jax.nn.sigmoid(
            jnp.sum(h[:, :, None] * f2w_ref[...][None, :, :], axis=1)
            + f2b_ref[...])                                        # (B, P)

        # ---- shortcut (fused 1x1 conv + folded BN, or identity), residual, relu
        xs = x_tap(1, 1).reshape(B * HW, Cin)
        if proj:
            sc = (jnp.dot(xs, wsc_ref[...], preferred_element_type=jnp.float32)
                  + bsc_ref[...])
        else:
            sc = xs.astype(jnp.float32)   # identity (bf16-rounded x, see TODO)
        out = jnp.maximum(o2 * gate[:, None, :] + sc.reshape(B, HW, P), 0.0)

        # ---- lane-dense store: pack to (B, Ho, Wo*P); last dim % 128 == 0
        out4 = out.reshape(B, Ho, Wo, P).astype(o_ref.dtype)
        o_ref[...] = jnp.concatenate(
            [out4[:, :, w, :] for w in range(Wo)], axis=-1)

    return kernel


# ----------------------------------------------------------------------------
# Host glue: stride-phase view of the padded input, BN folding, pallas_call
# ----------------------------------------------------------------------------
def _make_phases(x_nhwc, stride):
    """(N,H,W,C) -> (N, s*s, Hp, Wp, C) bf16 where phases[n, a*s+b, i, j] =
    pad(x,1)[n, s*i+a, s*j+b].  No data duplication (one rearranged copy);
    the degenerate stride-1 rearrangement is skipped."""
    N, H, W, C = x_nhwc.shape
    s = stride
    Ho = (H + 2 - 3) // s + 1
    Wo = (W + 2 - 3) // s + 1
    Hp = -(-(H + 2) // s)
    Wp = -(-(W + 2) // s)
    xp = jnp.pad(x_nhwc.astype(jnp.bfloat16),
                 ((0, 0), (1, s * Hp - H - 1), (1, s * Wp - W - 1), (0, 0)))
    if s == 1:
        return xp[:, None], Ho, Wo, Hp, Wp
    ph = xp.reshape(N, Hp, s, Wp, s, C).transpose(0, 2, 4, 1, 3, 5)
    return ph.reshape(N, s * s, Hp, Wp, C), Ho, Wo, Hp, Wp


def fold_bn(bn, eps=1e-5):
    gamma, beta, mean, var = bn
    scale = gamma / jnp.sqrt(var + eps)
    bias = beta - mean * scale
    return scale, bias


def _round_up(x, m):
    return -(-x // m) * m


def _padded_bytes(shape, itemsize):
    """Rough (8,128)-tiled VMEM footprint of an array/value."""
    if len(shape) < 2:
        return _round_up(int(np.prod(shape)) * itemsize, 4096)
    lead = int(np.prod(shape[:-2])) if len(shape) > 2 else 1
    return lead * _round_up(shape[-2], 8) * _round_up(shape[-1], 128) * itemsize


def basic_block_forward(x_nhwc, params, in_planes, planes, stride,
                        images_per_step=1, out_dtype=jnp.bfloat16):
    N, H, W, Cin = x_nhwc.shape
    assert Cin == in_planes
    P = planes
    Cr = planes // 16
    B = images_per_step
    assert N % B == 0, "batch must be divisible by images_per_step"
    proj = (stride != 1) or (in_planes != planes)
    if not proj:
        assert Cin == P

    xph, Ho, Wo, Hp, Wp = _make_phases(x_nhwc, stride)
    HW = Ho * Wo
    ss = stride * stride

    # Fold BN scale into conv weights; MXU operands in bf16, bias adds in f32.
    s1, b1 = fold_bn(params["bn1"])
    w1 = (jnp.transpose(params["conv1_w"], (2, 3, 1, 0)) * s1
          ).reshape(9 * Cin, P).astype(jnp.bfloat16)
    b1 = b1.reshape(1, P).astype(jnp.float32)

    s2, b2 = fold_bn(params["bn2"])
    w2 = (jnp.transpose(params["conv2_w"], (2, 3, 1, 0)) * s2
          ).reshape(9 * P, P).astype(jnp.bfloat16)
    b2 = b2.reshape(1, P).astype(jnp.float32)

    f1w = params["fc1_w"].reshape(Cr, P).astype(jnp.float32)      # W1[j, c]
    f1b = params["fc1_b"].reshape(1, Cr).astype(jnp.float32)
    f2w = params["fc2_w"].reshape(P, Cr).T.astype(jnp.float32)    # -> [j, k]
    f2b = params["fc2_b"].reshape(1, P).astype(jnp.float32)

    inputs = [xph, w1, b1, w2, b2, f1w, f1b, f2w, f2b]
    in_specs = [
        pl.BlockSpec((B, ss, Hp, Wp, Cin), lambda b: (b, 0, 0, 0, 0)),
        pl.BlockSpec((9 * Cin, P), lambda b: (0, 0)),
        pl.BlockSpec((1, P), lambda b: (0, 0)),
        pl.BlockSpec((9 * P, P), lambda b: (0, 0)),
        pl.BlockSpec((1, P), lambda b: (0, 0)),
        pl.BlockSpec((Cr, P), lambda b: (0, 0)),
        pl.BlockSpec((1, Cr), lambda b: (0, 0)),
        pl.BlockSpec((Cr, P), lambda b: (0, 0)),
        pl.BlockSpec((1, P), lambda b: (0, 0)),
    ]
    if proj:
        ssc, bsc = fold_bn(params["sc_bn"])
        wsc = (params["sc_w"].reshape(P, Cin).T * ssc).astype(jnp.bfloat16)
        inputs += [wsc, bsc.reshape(1, P).astype(jnp.float32)]
        in_specs += [pl.BlockSpec((Cin, P), lambda b: (0, 0)),
                     pl.BlockSpec((1, P), lambda b: (0, 0))]

    # Right-sized scoped-VMEM budget (double-buffered blocks + staged values),
    # clamped to <= 32 MiB so it leaves headroom on v7x's 64 MiB VMEM.
    out_isize = np.dtype(out_dtype).itemsize
    est = (2 * _padded_bytes((B, ss, Hp, Wp, Cin), 2)
           + 2 * _padded_bytes((B, Ho, Wo * P), out_isize)
           + 2 * sum(_padded_bytes(a.shape, a.dtype.itemsize)
                     for a in inputs[1:])
           + _padded_bytes((B * HW, 9 * Cin), 2)       # lhs1
           + _padded_bytes((B * HW, 9 * P), 2)         # lhs2
           + _padded_bytes((B, Ho + 2, Wo + 2, P), 2)  # o1 halo scratch
           + 5 * _padded_bytes((B * HW, P), 4))        # f32 temporaries
    vmem_limit = int(min(32 * 1024 * 1024, max(8 * 1024 * 1024, 2 * est)))

    kernel = _make_block_kernel(stride=stride, Ho=Ho, Wo=Wo, B=B,
                                Cin=Cin, P=P, proj=proj)

    out = pl.pallas_call(
        kernel,
        out_shape=jax.ShapeDtypeStruct((N, Ho, Wo * P), out_dtype),
        grid_spec=pltpu.PrefetchScalarGridSpec(
            num_scalar_prefetch=0,
            grid=(N // B,),                    # keep >= #TensorCores programs
            in_specs=in_specs,
            out_specs=pl.BlockSpec((B, Ho, Wo * P), lambda b: (b, 0, 0)),
            scratch_shapes=[pltpu.VMEM((B, Ho + 2, Wo + 2, P), jnp.bfloat16)],
        ),
        compiler_params=pltpu.CompilerParams(
            dimension_semantics=("parallel",),
            vmem_limit_bytes=vmem_limit,
        ),
    )(*inputs)
    return out.reshape(N, Ho, Wo, P)


# ----------------------------------------------------------------------------
# Deterministic parameter init + pure-JAX reference
# ----------------------------------------------------------------------------
def init_params(key, in_planes, planes):
    Cr = planes // 16
    ks = jax.random.split(key, 10)

    def w(k, shape, scale=0.1):
        return (scale * jax.random.normal(k, shape)).astype(jnp.float32)

    def bn_params(k):
        k1, k2, k3, k4 = jax.random.split(k, 4)
        gamma = 1.0 + 0.1 * jax.random.normal(k1, (planes,))
        beta = 0.1 * jax.random.normal(k2, (planes,))
        mean = 0.1 * jax.random.normal(k3, (planes,))
        var = 1.0 + 0.1 * jnp.abs(jax.random.normal(k4, (planes,)))
        return tuple(a.astype(jnp.float32) for a in (gamma, beta, mean, var))

    return {
        "conv1_w": w(ks[0], (planes, in_planes, 3, 3)),
        "bn1": bn_params(ks[1]),
        "conv2_w": w(ks[2], (planes, planes, 3, 3)),
        "bn2": bn_params(ks[3]),
        "fc1_w": w(ks[4], (Cr, planes, 1, 1)),
        "fc1_b": w(ks[5], (Cr,)),
        "fc2_w": w(ks[6], (planes, Cr, 1, 1)),
        "fc2_b": w(ks[7], (planes,)),
        "sc_w": w(ks[8], (planes, in_planes, 1, 1)),
        "sc_bn": bn_params(ks[9]),
    }


def ref_block(x, params, in_planes, planes, stride, eps=1e-5):
    Cr = planes // 16

    def bn(y, p):
        g, b, m, v = p
        return (y - m) / jnp.sqrt(v + eps) * g + b

    def conv(y, w_oihw, s, pad):
        w = jnp.transpose(w_oihw, (2, 3, 1, 0))  # HWIO
        return jax.lax.conv_general_dilated(
            y, w, (s, s), ((pad, pad), (pad, pad)),
            dimension_numbers=("NHWC", "HWIO", "NHWC"),
            precision=jax.lax.Precision.HIGHEST)

    out = jax.nn.relu(bn(conv(x, params["conv1_w"], stride, 1), params["bn1"]))
    out = bn(conv(out, params["conv2_w"], 1, 1), params["bn2"])
    pooled = jnp.mean(out, axis=(1, 2))                                 # (N,C)
    h = jax.nn.relu(pooled @ params["fc1_w"].reshape(Cr, planes).T
                    + params["fc1_b"])
    s = jax.nn.sigmoid(h @ params["fc2_w"].reshape(planes, Cr).T
                       + params["fc2_b"])
    out = out * s[:, None, None, :]
    if stride != 1 or in_planes != planes:
        sc = bn(conv(x, params["sc_w"], stride, 0), params["sc_bn"])
    else:
        sc = x
    return jax.nn.relu(out + sc)


# ----------------------------------------------------------------------------
if __name__ == "__main__":
    key = jax.random.PRNGKey(0)
    N, H, W = 2, 16, 16

    def check(out, ref, name):
        out32 = jnp.asarray(out, jnp.float32)
        err = float(jnp.max(jnp.abs(out32 - ref)))
        # bf16 MXU operands + bf16 output quantization -> scale-aware tolerance
        tol = 5e-2 + 2.0 ** -7 * float(jnp.max(jnp.abs(ref)))
        assert np.isfinite(err) and err < tol, f"{name}: err {err} (tol {tol})"

    # Case 1: projection shortcut (stride 2, channel expansion 16 -> 32).
    in_planes, planes, stride = 16, 32, 2
    k_x, k_p = jax.random.split(key)
    x = jax.random.normal(k_x, (N, H, W, in_planes), dtype=jnp.float32)  # NHWC
    params = init_params(k_p, in_planes, planes)
    out = jax.block_until_ready(
        basic_block_forward(x, params, in_planes, planes, stride))
    assert out.shape == (N, H // stride, W // stride, planes)
    check(out, ref_block(x, params, in_planes, planes, stride), "proj-block")

    # Case 2: identity shortcut (stride 1, 32 -> 32).
    in_planes2, planes2, stride2 = 32, 32, 1
    k_x2, k_p2 = jax.random.split(k_p)
    x2 = jax.random.normal(k_x2, (N, H, W, in_planes2), dtype=jnp.float32)
    params2 = init_params(k_p2, in_planes2, planes2)
    out2 = jax.block_until_ready(
        basic_block_forward(x2, params2, in_planes2, planes2, stride2))
    assert out2.shape == (N, H, W, planes2)
    check(out2, ref_block(x2, params2, in_planes2, planes2, stride2),
          "identity-block")

    # Case 3: two images per grid step (stacked along the matmul M dim).
    N3 = 4
    k_x3, _ = jax.random.split(k_x2)
    x3 = jax.random.normal(k_x3, (N3, H, W, in_planes), dtype=jnp.float32)
    out3 = jax.block_until_ready(
        basic_block_forward(x3, params, in_planes, planes, stride,
                            images_per_step=2))
    assert out3.shape == (N3, H // stride, W // stride, planes)
    check(out3, ref_block(x3, params, in_planes, planes, stride),
          "batched-block")

    print("KERNEL_OK")
</pallas_src>

<mosaic_0001>
module attributes {stable_mosaic.version = 11 : i64} {
  func.func @kernel(%arg0: i32, %arg1: memref<1x4x9x9x16xbf16, #tpu.memory_space<vmem>>, %arg2: memref<144x32xbf16, #tpu.memory_space<vmem>>, %arg3: memref<1x32xf32, #tpu.memory_space<vmem>>, %arg4: memref<288x32xbf16, #tpu.memory_space<vmem>>, %arg5: memref<1x32xf32, #tpu.memory_space<vmem>>, %arg6: memref<2x32xf32, #tpu.memory_space<vmem>>, %arg7: memref<1x2xf32, #tpu.memory_space<vmem>>, %arg8: memref<2x32xf32, #tpu.memory_space<vmem>>, %arg9: memref<1x32xf32, #tpu.memory_space<vmem>>, %arg10: memref<16x32xbf16, #tpu.memory_space<vmem>>, %arg11: memref<1x32xf32, #tpu.memory_space<vmem>>, %arg12: memref<1x8x256xbf16, #tpu.memory_space<vmem>>, %arg13: memref<1x10x10x32xbf16, #tpu.memory_space<vmem>>) attributes {dimension_semantics = [#tpu.dimension_semantics<parallel>], iteration_bounds = array<i64: 2>, scalar_prefetch = 0 : i64, scratch_operands = 1 : i64, tpu.core_type = #tpu.core_type<tc>, window_params = [{transform_indices = @transform_0, window_bounds = array<i64: 1, 4, 9, 9, 16>}, {pipeline_mode = #tpu.pipeline_mode<synchronous>, transform_indices = @transform_1, window_bounds = array<i64: 144, 32>}, {pipeline_mode = #tpu.pipeline_mode<synchronous>, transform_indices = @transform_2, window_bounds = array<i64: 1, 32>}, {pipeline_mode = #tpu.pipeline_mode<synchronous>, transform_indices = @transform_3, window_bounds = array<i64: 288, 32>}, {pipeline_mode = #tpu.pipeline_mode<synchronous>, transform_indices = @transform_4, window_bounds = array<i64: 1, 32>}, {pipeline_mode = #tpu.pipeline_mode<synchronous>, transform_indices = @transform_5, window_bounds = array<i64: 2, 32>}, {pipeline_mode = #tpu.pipeline_mode<synchronous>, transform_indices = @transform_6, window_bounds = array<i64: 1, 2>}, {pipeline_mode = #tpu.pipeline_mode<synchronous>, transform_indices = @transform_7, window_bounds = array<i64: 2, 32>}, {pipeline_mode = #tpu.pipeline_mode<synchronous>, transform_indices = @transform_8, window_bounds = array<i64: 1, 32>}, {pipeline_mode = #tpu.pipeline_mode<synchronous>, transform_indices = @transform_9, window_bounds = array<i64: 16, 32>}, {pipeline_mode = #tpu.pipeline_mode<synchronous>, transform_indices = @transform_10, window_bounds = array<i64: 1, 32>}, {transform_indices = @transform_11, window_bounds = array<i64: 1, 8, 256>}]} {
    %c0 = arith.constant 0 : index
    %c0_0 = arith.constant 0 : index
    %c0_1 = arith.constant 0 : index
    %c0_2 = arith.constant 0 : index
    %c0_3 = arith.constant 0 : index
    %0 = vector.load %arg1[%c0, %c0_0, %c0_1, %c0_2, %c0_3] : memref<1x4x9x9x16xbf16, #tpu.memory_space<vmem>>, vector<1x1x8x8x16xbf16>
    %1 = vector.shape_cast %0 : vector<1x1x8x8x16xbf16> to vector<1x8x8x16xbf16>
    %c0_4 = arith.constant 0 : index
    %c1 = arith.constant 1 : index
    %c0_5 = arith.constant 0 : index
    %c0_6 = arith.constant 0 : index
    %c0_7 = arith.constant 0 : index
    %2 = vector.load %arg1[%c0_4, %c1, %c0_5, %c0_6, %c0_7] : memref<1x4x9x9x16xbf16, #tpu.memory_space<vmem>>, vector<1x1x8x8x16xbf16>
    %3 = vector.shape_cast %2 : vector<1x1x8x8x16xbf16> to vector<1x8x8x16xbf16>
    %c0_8 = arith.constant 0 : index
    %c0_9 = arith.constant 0 : index
    %c0_10 = arith.constant 0 : index
    %c1_11 = arith.constant 1 : index
    %c0_12 = arith.constant 0 : index
    %4 = vector.load %arg1[%c0_8, %c0_9, %c0_10, %c1_11, %c0_12] : memref<1x4x9x9x16xbf16, #tpu.memory_space<vmem>>, vector<1x1x8x8x16xbf16>
    %5 = vector.shape_cast %4 : vector<1x1x8x8x16xbf16> to vector<1x8x8x16xbf16>
    %c0_13 = arith.constant 0 : index
    %c2 = arith.constant 2 : index
    %c0_14 = arith.constant 0 : index
    %c0_15 = arith.constant 0 : index
    %c0_16 = arith.constant 0 : index
    %6 = vector.load %arg1[%c0_13, %c2, %c0_14, %c0_15, %c0_16] : memref<1x4x9x9x16xbf16, #tpu.memory_space<vmem>>, vector<1x1x8x8x16xbf16>
    %7 = vector.shape_cast %6 : vector<1x1x8x8x16xbf16> to vector<1x8x8x16xbf16>
    %c0_17 = arith.constant 0 : index
    %c3 = arith.constant 3 : index
    %c0_18 = arith.constant 0 : index
    %c0_19 = arith.constant 0 : index
    %c0_20 = arith.constant 0 : index
    %8 = vector.load %arg1[%c0_17, %c3, %c0_18, %c0_19, %c0_20] : memref<1x4x9x9x16xbf16, #tpu.memory_space<vmem>>, vector<1x1x8x8x16xbf16>
    %9 = vector.shape_cast %8 : vector<1x1x8x8x16xbf16> to vector<1x8x8x16xbf16>
    %c0_21 = arith.constant 0 : index
    %c2_22 = arith.constant 2 : index
    %c0_23 = arith.constant 0 : index
    %c1_24 = arith.constant 1 : index
    %c0_25 = arith.constant 0 : index
    %10 = vector.load %arg1[%c0_21, %c2_22, %c0_23, %c1_24, %c0_25] : memref<1x4x9x9x16xbf16, #tpu.memory_space<vmem>>, vector<1x1x8x8x16xbf16>
    %11 = vector.shape_cast %10 : vector<1x1x8x8x16xbf16> to vector<1x8x8x16xbf16>
    %c0_26 = arith.constant 0 : index
    %c0_27 = arith.constant 0 : index
    %c1_28 = arith.constant 1 : index
    %c0_29 = arith.constant 0 : index
    %c0_30 = arith.constant 0 : index
    %12 = vector.load %arg1[%c0_26, %c0_27, %c1_28, %c0_29, %c0_30] : memref<1x4x9x9x16xbf16, #tpu.memory_space<vmem>>, vector<1x1x8x8x16xbf16>
    %13 = vector.shape_cast %12 : vector<1x1x8x8x16xbf16> to vector<1x8x8x16xbf16>
    %c0_31 = arith.constant 0 : index
    %c1_32 = arith.constant 1 : index
    %c1_33 = arith.constant 1 : index
    %c0_34 = arith.constant 0 : index
    %c0_35 = arith.constant 0 : index
    %14 = vector.load %arg1[%c0_31, %c1_32, %c1_33, %c0_34, %c0_35] : memref<1x4x9x9x16xbf16, #tpu.memory_space<vmem>>, vector<1x1x8x8x16xbf16>
    %15 = vector.shape_cast %14 : vector<1x1x8x8x16xbf16> to vector<1x8x8x16xbf16>
    %c0_36 = arith.constant 0 : index
    %c0_37 = arith.constant 0 : index
    %c1_38 = arith.constant 1 : index
    %c1_39 = arith.constant 1 : index
    %c0_40 = arith.constant 0 : index
    %16 = vector.load %arg1[%c0_36, %c0_37, %c1_38, %c1_39, %c0_40] : memref<1x4x9x9x16xbf16, #tpu.memory_space<vmem>>, vector<1x1x8x8x16xbf16>
    %17 = vector.shape_cast %16 : vector<1x1x8x8x16xbf16> to vector<1x8x8x16xbf16>
    %18 = tpu.concatenate %1, %3, %5, %7, %9, %11, %13, %15, %17 in 3 : vector<1x8x8x16xbf16>, vector<1x8x8x16xbf16>, vector<1x8x8x16xbf16>, vector<1x8x8x16xbf16>, vector<1x8x8x16xbf16>, vector<1x8x8x16xbf16>, vector<1x8x8x16xbf16>, vector<1x8x8x16xbf16>, vector<1x8x8x16xbf16> -> vector<1x8x8x144xbf16>
    %19 = vector.shape_cast %18 : vector<1x8x8x144xbf16> to vector<64x144xbf16>
    %c0_41 = arith.constant 0 : index
    %c0_42 = arith.constant 0 : index
    %20 = vector.load %arg2[%c0_41, %c0_42] : memref<144x32xbf16, #tpu.memory_space<vmem>>, vector<144x32xbf16>
    %cst = arith.constant dense<0.000000e+00> : vector<64x32xf32>
    %21 = tpu.matmul %19, %20, %cst {dimension_numbers = #tpu.dot_dimension_numbers<[1], [0], [0], [1], [0, 0, 1, 1], [], []>} : vector<64x144xbf16>, vector<144x32xbf16>, vector<64x32xf32> -> vector<64x32xf32>
    %c0_43 = arith.constant 0 : index
    %c0_44 = arith.constant 0 : index
    %22 = vector.load %arg3[%c0_43, %c0_44] : memref<1x32xf32, #tpu.memory_space<vmem>>, vector<1x32xf32>
    %23 = vector.broadcast %22 : vector<1x32xf32> to vector<64x32xf32>
    %24 = arith.addf %21, %23 : vector<64x32xf32>
    %cst_45 = arith.constant 0.000000e+00 : f32
    %25 = vector.broadcast %cst_45 : f32 to vector<64x32xf32>
    %26 = arith.maximumf %24, %25 : vector<64x32xf32>
    %cst_46 = arith.constant 0.000000e+00 : bf16
    %27 = vector.broadcast %cst_46 : bf16 to vector<1x1x10x32xbf16>
    %cst_47 = arith.constant 0.000000e+00 : bf16
    %28 = vector.broadcast %cst_47 : bf16 to vector<1x8x1x32xbf16>
    %c0_48 = arith.constant 0 : index
    %c0_49 = arith.constant 0 : index
    %c0_50 = arith.constant 0 : index
    %c0_51 = arith.constant 0 : index
    %29 = vector.load %arg13[%c0_48, %c0_49, %c0_50, %c0_51] : memref<1x10x10x32xbf16, #tpu.memory_space<vmem>>, vector<1x1x10x32xbf16>
    tpu.vector_store %arg13[%c0_48, %c0_49, %c0_50, %c0_51], %27 {strides = array<i32>} : memref<1x10x10x32xbf16, #tpu.memory_space<vmem>>, vector<1x1x10x32xbf16>,
    %c0_52 = arith.constant 0 : index
    %c9 = arith.constant 9 : index
    %c0_53 = arith.constant 0 : index
    %c0_54 = arith.constant 0 : index
    %30 = vector.load %arg13[%c0_52, %c9, %c0_53, %c0_54] : memref<1x10x10x32xbf16, #tpu.memory_space<vmem>>, vector<1x1x10x32xbf16>
    tpu.vector_store %arg13[%c0_52, %c9, %c0_53, %c0_54], %27 {strides = array<i32>} : memref<1x10x10x32xbf16, #tpu.memory_space<vmem>>, vector<1x1x10x32xbf16>,
    %c0_55 = arith.constant 0 : index
    %c1_56 = arith.constant 1 : index
    %c0_57 = arith.constant 0 : index
    %c0_58 = arith.constant 0 : index
    %31 = vector.load %arg13[%c0_55, %c1_56, %c0_57, %c0_58] : memref<1x10x10x32xbf16, #tpu.memory_space<vmem>>, vector<1x8x1x32xbf16>
    tpu.vector_store %arg13[%c0_55, %c1_56, %c0_57, %c0_58], %28 {strides = array<i32>} : memref<1x10x10x32xbf16, #tpu.memory_space<vmem>>, vector<1x8x1x32xbf16>,
    %c0_59 = arith.constant 0 : index
    %c1_60 = arith.constant 1 : index
    %c9_61 = arith.constant 9 : index
    %c0_62 = arith.constant 0 : index
    %32 = vector.load %arg13[%c0_59, %c1_60, %c9_61, %c0_62] : memref<1x10x10x32xbf16, #tpu.memory_space<vmem>>, vector<1x8x1x32xbf16>
    tpu.vector_store %arg13[%c0_59, %c1_60, %c9_61, %c0_62], %28 {strides = array<i32>} : memref<1x10x10x32xbf16, #tpu.memory_space<vmem>>, vector<1x8x1x32xbf16>,
    %33 = vector.shape_cast %26 : vector<64x32xf32> to vector<1x8x8x32xf32>
    %34 = arith.truncf %33 : vector<1x8x8x32xf32> to vector<1x8x8x32xbf16>
    %c0_63 = arith.constant 0 : index
    %c1_64 = arith.constant 1 : index
    %c1_65 = arith.constant 1 : index
    %c0_66 = arith.constant 0 : index
    %35 = vector.load %arg13[%c0_63, %c1_64, %c1_65, %c0_66] : memref<1x10x10x32xbf16, #tpu.memory_space<vmem>>, vector<1x8x8x32xbf16>
    tpu.vector_store %arg13[%c0_63, %c1_64, %c1_65, %c0_66], %34 {strides = array<i32>} : memref<1x10x10x32xbf16, #tpu.memory_space<vmem>>, vector<1x8x8x32xbf16>,
    %c0_67 = arith.constant 0 : index
    %c0_68 = arith.constant 0 : index
    %c0_69 = arith.constant 0 : index
    %c0_70 = arith.constant 0 : index
    %36 = vector.load %arg13[%c0_67, %c0_68, %c0_69, %c0_70] : memref<1x10x10x32xbf16, #tpu.memory_space<vmem>>, vector<1x8x8x32xbf16>
    %c0_71 = arith.constant 0 : index
    %c0_72 = arith.constant 0 : index
    %c1_73 = arith.constant 1 : index
    %c0_74 = arith.constant 0 : index
    %37 = vector.load %arg13[%c0_71, %c0_72, %c1_73, %c0_74] : memref<1x10x10x32xbf16, #tpu.memory_space<vmem>>, vector<1x8x8x32xbf16>
    %c0_75 = arith.constant 0 : index
    %c0_76 = arith.constant 0 : index
    %c2_77 = arith.constant 2 : index
    %c0_78 = arith.constant 0 : index
    %38 = vector.load %arg13[%c0_75, %c0_76, %c2_77, %c0_78] : memref<1x10x10x32xbf16, #tpu.memory_space<vmem>>, vector<1x8x8x32xbf16>
    %c0_79 = arith.constant 0 : index
    %c1_80 = arith.constant 1 : index
    %c0_81 = arith.constant 0 : index
    %c0_82 = arith.constant 0 : index
    %39 = vector.load %arg13[%c0_79, %c1_80, %c0_81, %c0_82] : memref<1x10x10x32xbf16, #tpu.memory_space<vmem>>, vector<1x8x8x32xbf16>
    %c0_83 = arith.constant 0 : index
    %c1_84 = arith.constant 1 : index
    %c1_85 = arith.constant 1 : index
    %c0_86 = arith.constant 0 : index
    %40 = vector.load %arg13[%c0_83, %c1_84, %c1_85, %c0_86] : memref<1x10x10x32xbf16, #tpu.memory_space<vmem>>, vector<1x8x8x32xbf16>
    %c0_87 = arith.constant 0 : index
    %c1_88 = arith.constant 1 : index
    %c2_89 = arith.constant 2 : index
    %c0_90 = arith.constant 0 : index
    %41 = vector.load %arg13[%c0_87, %c1_88, %c2_89, %c0_90] : memref<1x10x10x32xbf16, #tpu.memory_space<vmem>>, vector<1x8x8x32xbf16>
    %c0_91 = arith.constant 0 : index
    %c2_92 = arith.constant 2 : index
    %c0_93 = arith.constant 0 : index
    %c0_94 = arith.constant 0 : index
    %42 = vector.load %arg13[%c0_91, %c2_92, %c0_93, %c0_94] : memref<1x10x10x32xbf16, #tpu.memory_space<vmem>>, vector<1x8x8x32xbf16>
    %c0_95 = arith.constant 0 : index
    %c2_96 = arith.constant 2 : index
    %c1_97 = arith.constant 1 : index
    %c0_98 = arith.constant 0 : index
    %43 = vector.load %arg13[%c0_95, %c2_96, %c1_97, %c0_98] : memref<1x10x10x32xbf16, #tpu.memory_space<vmem>>, vector<1x8x8x32xbf16>
    %c0_99 = arith.constant 0 : index
    %c2_100 = arith.constant 2 : index
    %c2_101 = arith.constant 2 : index
    %c0_102 = arith.constant 0 : index
    %44 = vector.load %arg13[%c0_99, %c2_100, %c2_101, %c0_102] : memref<1x10x10x32xbf16, #tpu.memory_space<vmem>>, vector<1x8x8x32xbf16>
    %45 = tpu.concatenate %36, %37, %38, %39, %40, %41, %42, %43, %44 in 3 : vector<1x8x8x32xbf16>, vector<1x8x8x32xbf16>, vector<1x8x8x32xbf16>, vector<1x8x8x32xbf16>, vector<1x8x8x32xbf16>, vector<1x8x8x32xbf16>, vector<1x8x8x32xbf16>, vector<1x8x8x32xbf16>, vector<1x8x8x32xbf16> -> vector<1x8x8x288xbf16>
    %46 = vector.shape_cast %45 : vector<1x8x8x288xbf16> to vector<64x288xbf16>
    %c0_103 = arith.constant 0 : index
    %c0_104 = arith.constant 0 : index
    %47 = vector.load %arg4[%c0_103, %c0_104] : memref<288x32xbf16, #tpu.memory_space<vmem>>, vector<288x32xbf16>
    %cst_105 = arith.constant dense<0.000000e+00> : vector<64x32xf32>
    %48 = tpu.matmul %46, %47, %cst_105 {dimension_numbers = #tpu.dot_dimension_numbers<[1], [0], [0], [1], [0, 0, 1, 1], [], []>} : vector<64x288xbf16>, vector<288x32xbf16>, vector<64x32xf32> -> vector<64x32xf32>
    %c0_106 = arith.constant 0 : index
    %c0_107 = arith.constant 0 : index
    %49 = vector.load %arg5[%c0_106, %c0_107] : memref<1x32xf32, #tpu.memory_space<vmem>>, vector<1x32xf32>
    %50 = vector.broadcast %49 : vector<1x32xf32> to vector<64x32xf32>
    %51 = arith.addf %48, %50 : vector<64x32xf32>
    %52 = vector.shape_cast %51 : vector<64x32xf32> to vector<1x64x32xf32>
    %cst_108 = arith.constant dense<0.000000e+00> : vector<1x32xf32>
    %53 = vector.multi_reduction <add>, %52, %cst_108 [1] : vector<1x64x32xf32> to vector<1x32xf32>
    %cst_109 = arith.constant 6.400000e+01 : f32
    %54 = vector.broadcast %cst_109 : f32 to vector<1x32xf32>
    %55 = arith.divf %53, %54 : vector<1x32xf32>
    %56 = vector.shape_cast %55 : vector<1x32xf32> to vector<1x1x32xf32>
    %c0_110 = arith.constant 0 : index
    %c0_111 = arith.constant 0 : index
    %57 = vector.load %arg6[%c0_110, %c0_111] : memref<2x32xf32, #tpu.memory_space<vmem>>, vector<2x32xf32>
    %58 = vector.shape_cast %57 : vector<2x32xf32> to vector<1x2x32xf32>
    %59 = vector.broadcast %56 : vector<1x1x32xf32> to vector<1x2x32xf32>
    %60 = arith.mulf %59, %58 : vector<1x2x32xf32>
    %cst_112 = arith.constant dense<0.000000e+00> : vector<1x2xf32>
    %61 = vector.multi_reduction <add>, %60, %cst_112 [2] : vector<1x2x32xf32> to vector<1x2xf32>
    %c0_113 = arith.constant 0 : index
    %c0_114 = arith.constant 0 : index
    %62 = vector.load %arg7[%c0_113, %c0_114] : memref<1x2xf32, #tpu.memory_space<vmem>>, vector<1x2xf32>
    %63 = arith.addf %61, %62 : vector<1x2xf32>
    %cst_115 = arith.constant 0.000000e+00 : f32
    %64 = vector.broadcast %cst_115 : f32 to vector<1x2xf32>
    %65 = arith.maximumf %63, %64 : vector<1x2xf32>
    %66 = vector.shape_cast %65 : vector<1x2xf32> to vector<1x2x1xf32>
    %c0_116 = arith.constant 0 : index
    %c0_117 = arith.constant 0 : index
    %67 = vector.load %arg8[%c0_116, %c0_117] : memref<2x32xf32, #tpu.memory_space<vmem>>, vector<2x32xf32>
    %68 = vector.shape_cast %67 : vector<2x32xf32> to vector<1x2x32xf32>
    %69 = vector.broadcast %66 : vector<1x2x1xf32> to vector<1x2x32xf32>
    %70 = arith.mulf %69, %68 : vector<1x2x32xf32>
    %cst_118 = arith.constant dense<0.000000e+00> : vector<1x32xf32>
    %71 = vector.multi_reduction <add>, %70, %cst_118 [1] : vector<1x2x32xf32> to vector<1x32xf32>
    %c0_119 = arith.constant 0 : index
    %c0_120 = arith.constant 0 : index
    %72 = vector.load %arg9[%c0_119, %c0_120] : memref<1x32xf32, #tpu.memory_space<vmem>>, vector<1x32xf32>
    %73 = arith.addf %71, %72 : vector<1x32xf32>
    %74 = arith.negf %73 : vector<1x32xf32>
    %75 = math.exp %74 : vector<1x32xf32>
    %cst_121 = arith.constant 1.000000e+00 : f32
    %76 = vector.broadcast %cst_121 : f32 to vector<1x32xf32>
    %77 = arith.addf %76, %75 : vector<1x32xf32>
    %78 = arith.divf %76, %77 : vector<1x32xf32>
    %c0_122 = arith.constant 0 : index
    %c3_123 = arith.constant 3 : index
    %c0_124 = arith.constant 0 : index
    %c0_125 = arith.constant 0 : index
    %c0_126 = arith.constant 0 : index
    %79 = vector.load %arg1[%c0_122, %c3_123, %c0_124, %c0_125, %c0_126] : memref<1x4x9x9x16xbf16, #tpu.memory_space<vmem>>, vector<1x1x8x8x16xbf16>
    %80 = vector.shape_cast %79 : vector<1x1x8x8x16xbf16> to vector<1x8x8x16xbf16>
    %81 = vector.shape_cast %80 : vector<1x8x8x16xbf16> to vector<64x16xbf16>
    %c0_127 = arith.constant 0 : index
    %c0_128 = arith.constant 0 : index
    %82 = vector.load %arg10[%c0_127, %c0_128] : memref<16x32xbf16, #tpu.memory_space<vmem>>, vector<16x32xbf16>
    %cst_129 = arith.constant dense<0.000000e+00> : vector<64x32xf32>
    %83 = tpu.matmul %81, %82, %cst_129 {dimension_numbers = #tpu.dot_dimension_numbers<[1], [0], [0], [1], [0, 0, 1, 1], [], []>} : vector<64x16xbf16>, vector<16x32xbf16>, vector<64x32xf32> -> vector<64x32xf32>
    %c0_130 = arith.constant 0 : index
    %c0_131 = arith.constant 0 : index
    %84 = vector.load %arg11[%c0_130, %c0_131] : memref<1x32xf32, #tpu.memory_space<vmem>>, vector<1x32xf32>
    %85 = vector.broadcast %84 : vector<1x32xf32> to vector<64x32xf32>
    %86 = arith.addf %83, %85 : vector<64x32xf32>
    %87 = vector.shape_cast %78 : vector<1x32xf32> to vector<1x1x32xf32>
    %88 = vector.broadcast %87 : vector<1x1x32xf32> to vector<1x64x32xf32>
    %89 = arith.mulf %52, %88 : vector<1x64x32xf32>
    %90 = vector.shape_cast %86 : vector<64x32xf32> to vector<1x64x32xf32>
    %91 = arith.addf %89, %90 : vector<1x64x32xf32>
    %cst_132 = arith.constant 0.000000e+00 : f32
    %92 = vector.broadcast %cst_132 : f32 to vector<1x64x32xf32>
    %93 = arith.maximumf %91, %92 : vector<1x64x32xf32>
    %94 = vector.shape_cast %93 : vector<1x64x32xf32> to vector<1x8x8x32xf32>
    %95 = arith.truncf %94 : vector<1x8x8x32xf32> to vector<1x8x8x32xbf16>
    %96 = vector.extract_strided_slice %95 {offsets = [0, 0, 0, 0], sizes = [1, 8, 1, 32], strides = [1, 1, 1, 1]} : vector<1x8x8x32xbf16> to vector<1x8x1x32xbf16>
    %97 = vector.shape_cast %96 : vector<1x8x1x32xbf16> to vector<1x8x32xbf16>
    %98 = vector.extract_strided_slice %95 {offsets = [0, 0, 1, 0], sizes = [1, 8, 1, 32], strides = [1, 1, 1, 1]} : vector<1x8x8x32xbf16> to vector<1x8x1x32xbf16>
    %99 = vector.shape_cast %98 : vector<1x8x1x32xbf16> to vector<1x8x32xbf16>
    %100 = vector.extract_strided_slice %95 {offsets = [0, 0, 2, 0], sizes = [1, 8, 1, 32], strides = [1, 1, 1, 1]} : vector<1x8x8x32xbf16> to vector<1x8x1x32xbf16>
    %101 = vector.shape_cast %100 : vector<1x8x1x32xbf16> to vector<1x8x32xbf16>
    %102 = vector.extract_strided_slice %95 {offsets = [0, 0, 3, 0], sizes = [1, 8, 1, 32], strides = [1, 1, 1, 1]} : vector<1x8x8x32xbf16> to vector<1x8x1x32xbf16>
    %103 = vector.shape_cast %102 : vector<1x8x1x32xbf16> to vector<1x8x32xbf16>
    %104 = vector.extract_strided_slice %95 {offsets = [0, 0, 4, 0], sizes = [1, 8, 1, 32], strides = [1, 1, 1, 1]} : vector<1x8x8x32xbf16> to vector<1x8x1x32xbf16>
    %105 = vector.shape_cast %104 : vector<1x8x1x32xbf16> to vector<1x8x32xbf16>
    %106 = vector.extract_strided_slice %95 {offsets = [0, 0, 5, 0], sizes = [1, 8, 1, 32], strides = [1, 1, 1, 1]} : vector<1x8x8x32xbf16> to vector<1x8x1x32xbf16>
    %107 = vector.shape_cast %106 : vector<1x8x1x32xbf16> to vector<1x8x32xbf16>
    %108 = vector.extract_strided_slice %95 {offsets = [0, 0, 6, 0], sizes = [1, 8, 1, 32], strides = [1, 1, 1, 1]} : vector<1x8x8x32xbf16> to vector<1x8x1x32xbf16>
    %109 = vector.shape_cast %108 : vector<1x8x1x32xbf16> to vector<1x8x32xbf16>
    %110 = vector.extract_strided_slice %95 {offsets = [0, 0, 7, 0], sizes = [1, 8, 1, 32], strides = [1, 1, 1, 1]} : vector<1x8x8x32xbf16> to vector<1x8x1x32xbf16>
    %111 = vector.shape_cast %110 : vector<1x8x1x32xbf16> to vector<1x8x32xbf16>
    %112 = tpu.concatenate %97, %99, %101, %103, %105, %107, %109, %111 in 2 : vector<1x8x32xbf16>, vector<1x8x32xbf16>, vector<1x8x32xbf16>, vector<1x8x32xbf16>, vector<1x8x32xbf16>, vector<1x8x32xbf16>, vector<1x8x32xbf16>, vector<1x8x32xbf16> -> vector<1x8x256xbf16>
    %c0_133 = arith.constant 0 : index
    %c0_134 = arith.constant 0 : index
    %c0_135 = arith.constant 0 : index
    %113 = vector.load %arg12[%c0_133, %c0_134, %c0_135] : memref<1x8x256xbf16, #tpu.memory_space<vmem>>, vector<1x8x256xbf16>
    tpu.vector_store %arg12[%c0_133, %c0_134, %c0_135], %112 {strides = array<i32>} : memref<1x8x256xbf16, #tpu.memory_space<vmem>>, vector<1x8x256xbf16>,
    return
  }
  func.func @transform_0(%arg0: i32) -> (i32, i32, i32, i32, i32) {
    %c0_i32 = arith.constant 0 : i32
    %c0_i32_0 = arith.constant 0 : i32
    %c0_i32_1 = arith.constant 0 : i32
    %c0_i32_2 = arith.constant 0 : i32
    %c0_i32_3 = arith.constant 0 : i32
    return %arg0, %c0_i32, %c0_i32_0, %c0_i32_1, %c0_i32_2 : i32, i32, i32, i32, i32
  }
  func.func @transform_1(%arg0: i32) -> (i32, i32) {
    %c0_i32 = arith.constant 0 : i32
    %c0_i32_0 = arith.constant 0 : i32
    %c0_i32_1 = arith.constant 0 : i32
    return %c0_i32, %c0_i32_0 : i32, i32
  }
  func.func @transform_2(%arg0: i32) -> (i32, i32) {
    %c0_i32 = arith.constant 0 : i32
    %c0_i32_0 = arith.constant 0 : i32
    %c0_i32_1 = arith.constant 0 : i32
    return %c0_i32, %c0_i32_0 : i32, i32
  }
  func.func @transform_3(%arg0: i32) -> (i32, i32) {
    %c0_i32 = arith.constant 0 : i32
    %c0_i32_0 = arith.constant 0 : i32
    %c0_i32_1 = arith.constant 0 : i32
    return %c0_i32, %c0_i32_0 : i32, i32
  }
  func.func @transform_4(%arg0: i32) -> (i32, i32) {
    %c0_i32 = arith.constant 0 : i32
    %c0_i32_0 = arith.constant 0 : i32
    %c0_i32_1 = arith.constant 0 : i32
    return %c0_i32, %c0_i32_0 : i32, i32
  }
  func.func @transform_5(%arg0: i32) -> (i32, i32) {
    %c0_i32 = arith.constant 0 : i32
    %c0_i32_0 = arith.constant 0 : i32
    %c0_i32_1 = arith.constant 0 : i32
    return %c0_i32, %c0_i32_0 : i32, i32
  }
  func.func @transform_6(%arg0: i32) -> (i32, i32) {
    %c0_i32 = arith.constant 0 : i32
    %c0_i32_0 = arith.constant 0 : i32
    %c0_i32_1 = arith.constant 0 : i32
    return %c0_i32, %c0_i32_0 : i32, i32
  }
  func.func @transform_7(%arg0: i32) -> (i32, i32) {
    %c0_i32 = arith.constant 0 : i32
    %c0_i32_0 = arith.constant 0 : i32
    %c0_i32_1 = arith.constant 0 : i32
    return %c0_i32, %c0_i32_0 : i32, i32
  }
  func.func @transform_8(%arg0: i32) -> (i32, i32) {
    %c0_i32 = arith.constant 0 : i32
    %c0_i32_0 = arith.constant 0 : i32
    %c0_i32_1 = arith.constant 0 : i32
    return %c0_i32, %c0_i32_0 : i32, i32
  }
  func.func @transform_9(%arg0: i32) -> (i32, i32) {
    %c0_i32 = arith.constant 0 : i32
    %c0_i32_0 = arith.constant 0 : i32
    %c0_i32_1 = arith.constant 0 : i32
    return %c0_i32, %c0_i32_0 : i32, i32
  }
  func.func @transform_10(%arg0: i32) -> (i32, i32) {
    %c0_i32 = arith.constant 0 : i32
    %c0_i32_0 = arith.constant 0 : i32
    %c0_i32_1 = arith.constant 0 : i32
    return %c0_i32, %c0_i32_0 : i32, i32
  }
  func.func @transform_11(%arg0: i32) -> (i32, i32, i32) {
    %c0_i32 = arith.constant 0 : i32
    %c0_i32_0 = arith.constant 0 : i32
    %c0_i32_1 = arith.constant 0 : i32
    return %arg0, %c0_i32, %c0_i32_0 : i32, i32, i32
  }
}

</mosaic_0001>

<bundles_post_ra>
// kernel: tpu_custom_call.1
= control target key start
LH: loop header
LB: loop body
LE: loop exit
PB: predicated region body
PF: predicated region fallthrough
CT: control target
= control target key end

     0   :  { %s4513_s0 = inlined_call_operand.vmem [shape: bf16[2,4,9,9,16], index: 0, kind: input, shape index: {}]   ;;  %s4514_s1 = inlined_call_operand.vmem [shape: bf16[144,32], index: 1, kind: input, shape index: {}]   ;;  %s4515_s2 = inlined_call_operand.vmem [shape: f32[1,32], index: 2, kind: input, shape index: {}]   ;;  %s4516_s3 = inlined_call_operand.vmem [shape: bf16[288,32], index: 3, kind: input, shape index: {}]   ;;  %s4517_s4 = inlined_call_operand.vmem [shape: f32[1,32], index: 4, kind: input, shape index: {}]   ;;  %s4518_s5 = inlined_call_operand.vmem [shape: f32[2,32], index: 5, kind: input, shape index: {}]   ;;  %s4519_s6 = inlined_call_operand.vmem [shape: f32[1,2], index: 6, kind: input, shape index: {}]   ;;  %s4520_s7 = inlined_call_operand.vmem [shape: f32[2,32], index: 7, kind: input, shape index: {}]   ;;  %s4521_s8 = inlined_call_operand.vmem [shape: f32[1,32], index: 8, kind: input, shape index: {}]   ;;  %s4522_s9 = inlined_call_operand.vmem [shape: bf16[16,32], index: 9, kind: input, shape index: {}]   ;;  %s4523_s10 = inlined_call_operand.vmem [shape: f32[1,32], index: 10, kind: input, shape index: {}]   ;;  %s4524_s11 = inlined_call_operand.hbm [shape: bf16[2,8,256], index: 11, kind: output, shape index: {}]  }
   0x1   :  { %4531 = sst [smem:[#allocation6_spill]] %s4513_s0 }
   0x2   :  { %4532 = sst [smem:[#allocation7_spill]] %s4514_s1 }
   0x3   :  { %16 = vsyncpa [#allocation4], 0 }
   0x4   :  { %18 = vsyncpa [#allocation4 + $0x1], 0  ;;  %s3420_s17 = smov 0   ;;  %s3422_s18 = smov 0  }
   0x5   :  { %s3424_s19 = smov 0   ;;  %s3426_s20 = smov 0  }
   0x6 LB: > { %s3441_s21 = sadd.s32 4294967295, %s3349_s20   ;;  %s2919_s22 = sadd.s32 4294967294, %s3349_s20   ;;  %s3349_s20 = sphi %s3426_s20, %s4549_s20   ;;  %s3345_s19 = sphi %s3424_s19, %s4548_s19   ;;  %s3341_s18 = sphi %s3422_s18, %s4547_s18   ;;  %s3337_s17 = sphi %s3420_s17, %s4546_s17  }
   0x7   : > { %s3445_s23 = sadd.s32 1, %s3349_s20   ;;  %s267_s24 = sadd.s32 1, %s3345_s19 }
   0x8   : > { %s264_s25 = ssub.s32 %s3349_s20, %s3445_s23  ;;  %p277_p0 = scmp.ne.s32.totalorder %s3345_s19, %s3341_s18 }
   0x9   : > { %p265_p1 = scmp.eq.s32.totalorder %s264_s25, 0  ;;  %p278_p2 = scmp.eq.s32.totalorder %s3441_s21, 1 }
   0xa   : > { %p283_p3 = scmp.ne.s32.totalorder %s3341_s18, %s3337_s17  ;;  %p284_p4 = scmp.eq.s32.totalorder %s2919_s22, 1 }
   0xb   : > { %s3456_s26 = scalar_select %p265_p1, %s3345_s19, %s267_s24  }
   0xc   : > { %p3458_p5 = por %p278_p2, %p277_p0  ;;  %p3462_p6 = por %p284_p4, %p283_p3 }
   0xd   : > { %p2922_p7 = scmp.ge.s32.totalorder %s3349_s20, 1  ;;  %p340_p8 = scmp.lt.s32.totalorder %s3349_s20, 3 }
   0xf   : > { %p341_p9 = pnand %p2922_p7, %p340_p8 }
  0x10   : > { %p380_p10 = scmp.lt.s32.totalorder (!%p341_p9), %s3441_s21, 1  ;;  %s4535_s0 = sld [smem:[#allocation6_spill]] (!%p341_p9) }
  0x11   : > { %344 = sbr.rel (%p341_p9) target bundleno = 1251 (0x4e3), region = 64  ;;  %s3351_s15 = smov (!%p341_p9), 64  }
  0x12   : > { %s4527_s16 = smov (!%p341_p9), 16   ;;  %s3353_s22 = smov (!%p341_p9), 48  }
  0x13   : > { %s4525_s24 = smov (!%p341_p9), 32   ;;  %s3355_s25 = smov (!%p341_p9), 80  }
  0x14   : > { %s4536_s1 = sld [smem:[#allocation7_spill]] (!%p341_p9) }
  0x16   : > { %s381_s29 = scalar_select %p380_p10, %s3441_s21, 1  ;;  %vm951_vm0 = vcmask 130048   ;;  %vm976_vm1 = vcmask 261120   ;;  %vm993_vm2 = vcmask 392192   ;;  %vm1010_vm3 = vcmask 523264  }
  0x17   : > { %vm1027_vm4 = vcmask 654336   ;;  %vm1044_vm5 = vcmask 785408   ;;  %vm1061_vm6 = vcmask 916480   ;;  %vm1268_vm7 = vcmask 257024  }
  0x18   : > { %s3225_s30 = smul.u32 288, %s381_s29  ;;  %s3356_s29 = smov 96   ;;  %vm1270_vm8 = vcmask 253952   ;;  %vm1277_vm9 = vsmask.f32 256  ;;  %vm2486_vm15 = vcmask 254976  }
  0x19   : > { %vm1303_vm10 = vsmask.f32 7938  ;;  %vm3762_vm11 = vmand %vm1270_vm8, %vm1277_vm9  ;;  %vm2690_vm9 = vcmask 1043459  }
  0x1a   : > { %s3473_s14 = scalar_lea.vmem %s4535_s0, %s3225_s30  ;;  %s4529_s30 = smov 112   ;;  %vm3772_vm12 = vmand %vm1270_vm8, %vm1303_vm10 }
  0x1b   : > { %v2942_v0 = vld [vmem:[%s3473_s14 + $0xe0] sm:$0xf]  ;;  %v2925_v1 = vld [vmem:[%s3473_s14 + $0x48] sm:$0xf]  ;;  %v2926_v4 = vld [vmem:[%s3473_s14 + $0x50] sm:$0xf] }
  0x1c   : > { %v664_v2 = vunpack.c.l.b16 %v2942_v0  ;;  %v471_v3 = vunpack.c.l.b16 %v2925_v1  ;;  %v2983_v5 = vld [vmem:[%s3473_s14] sm:$0xf]  ;;  %v3175_v6 = vld [vmem:[%s3473_s14] sm:$0x10]  ;;  %v2987_v8 = vld [vmem:[%s3473_s14 + $0x8] sm:$0xf]  ;;  %v472_v12 = vunpack.c.l.b16 %v2926_v4 }
  0x1d   : > { %v2984_v7 = vor.u32 %v3175_v6, %v2983_v5  ;;  %v3176_v9 = vld [vmem:[%s3473_s14 + $0x8] sm:$0x10]  ;;  %v2933_v14 = vld [vmem:[%s3473_s14 + $0x90] sm:$0xf]  ;;  %v2949_v15 = vld [vmem:[%s3473_s14 + $0x94] sm:$0x1] }
  0x1e   : > { %v672_v10 = vpack.c.b16 %v664_v2, %v664_v2  ;;  %v479_v11 = vpack.c.b16 %v471_v3, %v471_v3  ;;  %v2988_v17 = vor.u32 %v3176_v9, %v2987_v8  ;;  %v2934_v19 = vld [vmem:[%s3473_s14 + $0x98] sm:$0xf]  ;;  %v2950_v20 = vld [vmem:[%s3473_s14 + $0x9c] sm:$0x1]  ;;  %v623_v21 = vunpack.c.l.b16 %v2933_v14  ;;  %v2957_v40 = vld [vmem:[%s3473_s14 + $0x8] sm:$0xf] }
  0x1f   : > { %v546_v13 = vshll.u32 %v2984_v7, 16  ;;  %v544_v16 = vshrl.u32 %v2984_v7, 16  ;;  %v703_v22 = vunpack.c.l.b16 %v2949_v15  ;;  %v480_v23 = vpack.c.b16 %v472_v12, %v472_v12  ;;  %v2941_v29 = vld [vmem:[%s3473_s14 + $0xd8] sm:$0xf]  ;;  %v2958_v47 = vld [vmem:[%s3473_s14 + $0x10] sm:$0xf]  ;;  %vm3804_vm13 = vmand %vm1268_vm7, %vm1303_vm10 }
  0x20   : > { %681 = vrot.lane.b32.xlu1 %v672_v10, %s3351_s15  ;;  %487 = vrot.lane.b32.xlu0 %v479_v11, %s4527_s16  ;;  %v631_v24 = vpack.c.b16 %v623_v21, %v623_v21  ;;  %v553_v26 = vshll.u32 %v2988_v17, 16  ;;  %v624_v27 = vunpack.c.l.b16 %v2934_v19  ;;  %v704_v28 = vunpack.c.l.b16 %v2950_v20  ;;  %v2965_v50 = vld [vmem:[%s3473_s14 + $0x50] sm:$0xf]  ;;  %v2966_v51 = vld [vmem:[%s3473_s14 + $0x58] sm:$0xf]  ;;  %s3307_s0 = scalar_lea.hbm %s4524_s11, 16 }
  0x21   : > { %v548_v18 = vrot.slane %v546_v13, 1  ;;  %v711_v30 = vpack.c.b16 %v703_v22, %v623_v21  ;;  %v663_v31 = vunpack.c.l.b16 %v2941_v29  ;;  %v551_v32 = vshrl.u32 %v2988_v17, 16  ;;  %v2991_v52 = vld [vmem:[%s3473_s14 + $0x10] sm:$0xf]  ;;  %v3177_v53 = vld [vmem:[%s3473_s14 + $0x10] sm:$0x10] }
  0x22   : > { %639 = vrot.lane.b32.xlu2 %v631_v24, %s3353_s22  ;;  %v555_v33 = vrot.slane %v553_v26, 1  ;;  %v712_v34 = vpack.c.b16 %v704_v28, %v624_v27  ;;  %v632_v35 = vpack.c.b16 %v624_v27, %v624_v27  ;;  %v3496_v45 = vunpack.c.l.b16 %v2957_v40  ;;  %v2927_v59 = vld [vmem:[%s3473_s14 + $0x58] sm:$0xf]  ;;  %v3178_v61 = vld [vmem:[%s3473_s14 + $0x18] sm:$0x10] }
  0x23   : > { %v549_v25 = vor.u32 %v548_v18, %v544_v16  ;;  %v722_v36 = vshll.u32 %v711_v30, 16  ;;  %v671_v37 = vpack.c.b16 %v663_v31, %v663_v31  ;;  %v720_v41 = vshrl.u32 %v711_v30, 16  ;;  %v2995_v60 = vld [vmem:[%s3473_s14 + $0x18] sm:$0xf]  ;;  %v2928_v1 = vld [vmem:[%s3473_s14 + $0x60] sm:$0xf] }
  0x24   : > { %v556_v38 = vor.u32 %v555_v33, %v551_v32  ;;  %v729_v39 = vshll.u32 %v712_v34, 16  ;;  %v727_v43 = vshrl.u32 %v712_v34, 16  ;;  %v807_v49 = vpack.c.b16 %v3496_v45, %v3496_v45  ;;  %v2951_v7 = vld [vmem:[%s3473_s14 + $0xa4] sm:$0x1]  ;;  %v2935_v10 = vld [vmem:[%s3473_s14 + $0xa0] sm:$0xf] }
  0x25   : > { %v724_v42 = vrot.slane %v722_v36, 1  ;;  %v3506_v54 = vunpack.c.l.b16 %v2958_v47  ;;  %v839_v55 = vunpack.c.l.b16 %v2965_v50  ;;  %v840_v56 = vunpack.c.l.b16 %v2966_v51  ;;  %v2936_v14 = vld [vmem:[%s3473_s14 + $0xa8] sm:$0xf]  ;;  %v2952_v18 = vld [vmem:[%s3473_s14 + $0xac] sm:$0x1] }
  0x26   : > { %v731_v44 = vrot.slane %v729_v39, 1  ;;  %v2992_v57 = vor.u32 %v3177_v53, %v2991_v52  ;;  %v473_v2 = vunpack.c.l.b16 %v2927_v59  ;;  %v2996_v3 = vor.u32 %v3178_v61, %v2995_v60  ;;  %v2944_v27 = vld [vmem:[%s3473_s14 + $0xf0] sm:$0xf]  ;;  %v3179_v50 = vld [vmem:[%s3473_s14 + $0x20] sm:$0x10] }
  0x27   : > { %v725_v46 = vor.u32 %v724_v42, %v720_v41  ;;  %v808_v58 = vpack.c.b16 %v3506_v54, %v3506_v54  ;;  %v847_v62 = vpack.c.b16 %v839_v55, %v839_v55  ;;  %v848_v63 = vpack.c.b16 %v840_v56, %v840_v56  ;;  %v2929_v51 = vld [vmem:[%s3473_s14 + $0x68] sm:$0xf]  ;;  %v3180_v53 = vld [vmem:[%s3473_s14 + $0x28] sm:$0x10]  ;;  %v2930_v61 = vld [vmem:[%s3473_s14 + $0x70] sm:$0xf] }
  0x28   : > { %489 = vrot.lane.b32.xlu0 %v480_v23, %s4527_s16  ;;  %599 = vrot.lane.b32.xlu1 %v549_v25, %s4525_s24  ;;  %v732_v48 = vor.u32 %v731_v44, %v727_v43  ;;  %v560_v0 = vshll.u32 %v2992_v57, 16  ;;  %v474_v4 = vunpack.c.l.b16 %v2928_v1  ;;  %v558_v5 = vshrl.u32 %v2992_v57, 16  ;;  %v2943_v23 = vld [vmem:[%s3473_s14 + $0xe8] sm:$0xf]  ;;  %v2967_v44 = vld [vmem:[%s3473_s14 + $0x60] sm:$0xf] }
  0x29   : > { %v481_v8 = vpack.c.b16 %v473_v2, %v473_v2  ;;  %v567_v9 = vshll.u32 %v2996_v3, 16  ;;  %v705_v13 = vunpack.c.l.b16 %v2951_v7  ;;  %v565_v15 = vshrl.u32 %v2996_v3, 16  ;;  %v3003_v52 = vld [vmem:[%s3473_s14 + $0x28] sm:$0xf]  ;;  %v2937_v7 = vld [vmem:[%s3473_s14 + $0xb0] sm:$0xf] }
  0x2a   : > { %641 = vrot.lane.b32.xlu2 %v632_v35, %s3353_s22  ;;  %v562_v6 = vrot.slane %v560_v0, 1  ;;  %v482_v11 = vpack.c.b16 %v474_v4, %v474_v4  ;;  %v625_v17 = vunpack.c.l.b16 %v2935_v10  ;;  %v626_v19 = vunpack.c.l.b16 %v2936_v14 }
  0x2b   : > { %v569_v16 = vrot.slane %v567_v9, 1  ;;  %v706_v22 = vunpack.c.l.b16 %v2952_v18  ;;  %v665_v28 = vunpack.c.l.b16 %v2943_v23  ;;  %v666_v30 = vunpack.c.l.b16 %v2944_v27  ;;  %v2954_v9 = vld [vmem:[%s3473_s14 + $0xbc] sm:$0x1]  ;;  %v2946_v23 = vld [vmem:[%s3473_s14 + $0x100] sm:$0xf] }
  0x2c   : > { %v563_v12 = vor.u32 %v562_v6, %v558_v5  ;;  %v713_v20 = vpack.c.b16 %v705_v13, %v625_v17  ;;  %v633_v24 = vpack.c.b16 %v625_v17, %v625_v17  ;;  %v634_v25 = vpack.c.b16 %v626_v19, %v626_v19  ;;  %v2945_v17 = vld [vmem:[%s3473_s14 + $0xf8] sm:$0xf] }
  0x2d   : > { %v570_v21 = vor.u32 %v569_v16, %v565_v15  ;;  %v714_v29 = vpack.c.b16 %v706_v22, %v626_v19  ;;  %v673_v33 = vpack.c.b16 %v665_v28, %v665_v28  ;;  %v674_v35 = vpack.c.b16 %v666_v30, %v666_v30 }
  0x2e   : > { %v736_v26 = vshll.u32 %v713_v20, 16  ;;  %v734_v31 = vshrl.u32 %v713_v20, 16  ;;  %v841_v55 = vunpack.c.l.b16 %v2967_v44  ;;  %v3004_v59 = vor.u32 %v3180_v53, %v3003_v52  ;;  %v2973_v52 = vld [vmem:[%s3473_s14 + $0xc] sm:$0x1] }
  0x2f   : > { %v743_v34 = vshll.u32 %v714_v29, 16  ;;  %v741_v39 = vshrl.u32 %v714_v29, 16  ;;  %v476_v2 = vunpack.c.l.b16 %v2930_v61  ;;  %v627_v14 = vunpack.c.l.b16 %v2937_v7  ;;  %v3190_v29 = vld [vmem:[%s4536_s1 + $0x38] sm:$0xff] }
  0x30   : > { %679 = vrot.lane.b32.xlu0 %v671_v37, %s3351_s15  ;;  %601 = vrot.lane.b32.xlu1 %v556_v38, %s4525_s24  ;;  %v738_v32 = vrot.slane %v736_v26, 1  ;;  %v2959_v37 = vld [vmem:[%s3473_s14 + $0x18] sm:$0xf]  ;;  %v2960_v38 = vld [vmem:[%s3473_s14 + $0x20] sm:$0xf]  ;;  %v849_v60 = vpack.c.b16 %v841_v55, %v841_v55  ;;  %v581_v1 = vshll.u32 %v3004_v59, 16  ;;  %v708_v16 = vunpack.c.l.b16 %v2954_v9 }
  0x31   : > { %v745_v40 = vrot.slane %v743_v34, 1  ;;  %v3536_v41 = vunpack.c.l.b16 %v2959_v37  ;;  %v3538_v42 = vunpack.c.l.b16 %v2960_v38  ;;  %v579_v5 = vshrl.u32 %v3004_v59, 16  ;;  %1202 = vmatpush.bf16.msra.mxu0 %v3190_v29  ;;  %3216 = vmatpush.bf16.msra.mxu2 %v3190_v29  ;;  %v2931_v59 = vld [vmem:[%s3473_s14 + $0x78] sm:$0xf] }
  0x32   : > { %775 = vrot.lane.b32.xlu2 %v725_v46, %s3355_s25  ;;  %v739_v36 = vor.u32 %v738_v32, %v734_v31  ;;  %v583_v6 = vrot.slane %v581_v1, 1  ;;  %v484_v10 = vpack.c.b16 %v476_v2, %v476_v2  ;;  %v667_v19 = vunpack.c.l.b16 %v2945_v17  ;;  %v3186_v2 = vld [vmem:[%s4536_s1 + $0x18] sm:$0xff] }
  0x33   : > { %v746_v43 = vor.u32 %v745_v40, %v741_v39  ;;  %v809_v46 = vpack.c.b16 %v3536_v41, %v3536_v41  ;;  %v810_v47 = vpack.c.b16 %v3538_v42, %v3538_v42  ;;  %v635_v22 = vpack.c.b16 %v627_v14, %v627_v14  ;;  %v2962_v39 = vld [vmem:[%s3473_s14 + $0x30] sm:$0xf] }
  0x34   : > { %v584_v13 = vor.u32 %v583_v6, %v579_v5  ;;  %v668_v28 = vunpack.c.l.b16 %v2946_v23  ;;  %v2969_v40 = vld [vmem:[%s3473_s14 + $0x70] sm:$0xf]  ;;  %v477_v6 = vunpack.c.l.b16 %v2931_v59  ;;  %vm2693_vm10 = vcmask 1044484  }
  0x36   : > { %v676_v34 = vpack.c.b16 %v668_v28, %v668_v28 }
  0x38   : > { %777 = vrot.lane.b32.xlu0 %v732_v48, %s3355_s25  ;;  %815 = vrot.lane.b32.xlu1 %v807_v49, %s3356_s29  ;;  %v2968_v48 = vld [vmem:[%s3473_s14 + $0x68] sm:$0xf]  ;;  %v2999_v49 = vld [vmem:[%s3473_s14 + $0x20] sm:$0xf] }
  0x39   : > { %v3000_v56 = vor.u32 %v3179_v50, %v2999_v49  ;;  %v842_v57 = vunpack.c.l.b16 %v2968_v48  ;;  %v843_v48 = vunpack.c.l.b16 %v2969_v40  ;;  %v2970_v50 = vld [vmem:[%s3473_s14 + $0x78] sm:$0xf] }
  0x3a   : > { %817 = vrot.lane.b32.xlu2 %v808_v58, %s3356_s29  ;;  %v475_v58 = vunpack.c.l.b16 %v2929_v51  ;;  %v3187_v51 = vld [vmem:[%s4536_s1 + $0x20] sm:$0xff]  ;;  %v844_v61 = vunpack.c.l.b16 %v2970_v50 }
  0x3b   : > { %v572_v3 = vshrl.u32 %v3000_v56, 16  ;;  %v851_v55 = vpack.c.b16 %v843_v48, %v843_v48  ;;  %v2947_v48 = vld [vmem:[%s3473_s14 + $0x108] sm:$0xf] }
  0x3c   : > { %v483_v0 = vpack.c.b16 %v475_v58, %v475_v58  ;;  %v2974_v58 = vld [vmem:[%s3473_s14 + $0x14] sm:$0x1] }
  0x3d   : > { %v880_v5 = vunpack.c.l.b16 %v2974_v58 }
  0x40   : > { %855 = vrot.lane.b32.xlu0 %v847_v62, %s4529_s30  ;;  %857 = vrot.lane.b32.xlu1 %v848_v63, %s4529_s30  ;;  %v574_v62 = vshll.u32 %v3000_v56, 16  ;;  %v850_v63 = vpack.c.b16 %v842_v57, %v842_v57  ;;  %v3011_v56 = vld [vmem:[%s3473_s14 + $0x38] sm:$0xf]  ;;  %v3182_v57 = vld [vmem:[%s3473_s14 + $0x38] sm:$0x10] }
  0x42   : > { %491 = vrot.lane.b32.xlu2 %v481_v8, %s4527_s16  ;;  %v576_v4 = vrot.slane %v574_v62, 1  ;;  %v2953_v8 = vld [vmem:[%s3473_s14 + $0xb4] sm:$0x1]  ;;  %v3007_v62 = vld [vmem:[%s3473_s14 + $0x30] sm:$0xf] }
  0x43   : > { %v707_v15 = vunpack.c.l.b16 %v2953_v8  ;;  %v852_v8 = vpack.c.b16 %v844_v61, %v844_v61 }
  0x45   : > { %v715_v20 = vpack.c.b16 %v707_v15, %v627_v14  ;;  %v485_v14 = vpack.c.b16 %v477_v6, %v477_v6 }
  0x47   : > { %v750_v26 = vshll.u32 %v715_v20, 16  ;;  %v748_v30 = vshrl.u32 %v715_v20, 16 }
  0x48   : > { %493 = vrot.lane.b32.xlu0 %v482_v11, %s4527_s16  ;;  %603 = vrot.lane.b32.xlu1 %v563_v12, %s4525_s24  ;;  %v577_v11 = vor.u32 %v576_v4, %v572_v3  ;;  %v2938_v12 = vld [vmem:[%s3473_s14 + $0xb8] sm:$0xf]  ;;  %v879_v4 = vunpack.c.l.b16 %v2973_v52 }
  0x49   : > { %v628_v18 = vunpack.c.l.b16 %v2938_v12  ;;  %v752_v31 = vrot.slane %v750_v26, 1 }
  0x4a   : > { %605 = vrot.lane.b32.xlu2 %v570_v21, %s4525_s24  ;;  %v887_v12 = vpack.c.b16 %v879_v4, %v3496_v45  ;;  %v3184_v45 = vld [vmem:[%s4536_s1 + $0x8] sm:$0xff]  ;;  %v2963_v4 = vld [vmem:[%s3473_s14 + $0x38] sm:$0xf] }
  0x4b   : > { %v716_v21 = vpack.c.b16 %v708_v16, %v628_v18  ;;  %v753_v37 = vor.u32 %v752_v31, %v748_v30  ;;  %v2939_v16 = vld [vmem:[%s3473_s14 + $0xc0] sm:$0xf] }
  0x4c   : > { %v896_v29 = vshrl.u32 %v887_v12, 16 }
  0x4d   : > { %v757_v27 = vshll.u32 %v716_v21, 16  ;;  %v755_v32 = vshrl.u32 %v716_v21, 16  ;;  %v629_v21 = vunpack.c.l.b16 %v2939_v16 }
  0x50   : > { %643 = vrot.lane.b32.xlu0 %v633_v24, %s3353_s22  ;;  %645 = vrot.lane.b32.xlu1 %v634_v25, %s3353_s22  ;;  %v636_v24 = vpack.c.b16 %v628_v18, %v628_v18  ;;  %v675_v25 = vpack.c.b16 %v667_v19, %v667_v19 }
  0x52   : > { %683 = vrot.lane.b32.xlu2 %v673_v33, %s3351_s15  ;;  %v759_v33 = vrot.slane %v757_v27, 1 }
  0x54   : > { %v760_v38 = vor.u32 %v759_v33, %v755_v32 }
  0x58   : > { %685 = vrot.lane.b32.xlu0 %v674_v35, %s3351_s15  ;;  %779 = vrot.lane.b32.xlu1 %v739_v36, %s3355_s25  ;;  %v2961_v35 = vld [vmem:[%s3473_s14 + $0x28] sm:$0xf]  ;;  %v3189_v36 = vld [vmem:[%s4536_s1 + $0x30] sm:$0xff] }
  0x59   : > { %1203 = vmatpush.bf16.msra.mxu0 %v3189_v36  ;;  %3217 = vmatpush.bf16.msra.mxu2 %v3189_v36 }
  0x5a   : > { %781 = vrot.lane.b32.xlu2 %v746_v43, %s3355_s25  ;;  %v3580_v43 = vunpack.c.l.b16 %v2961_v35  ;;  %v3183_v35 = vld [vmem:[%s4536_s1] sm:$0xff] }
  0x5c   : > { %v811_v49 = vpack.c.b16 %v3580_v43, %v3580_v43 }
  0x60   : > { %819 = vrot.lane.b32.xlu0 %v809_v46, %s3356_s29  ;;  %821 = vrot.lane.b32.xlu1 %v810_v47, %s3356_s29  ;;  %v3188_v46 = vld [vmem:[%s4536_s1 + $0x28] sm:$0xff]  ;;  %v3589_v47 = vunpack.c.l.b16 %v2962_v39 }
  0x61   : > { %1204 = vmatpush.bf16.msra.mxu0 %v3188_v46  ;;  %3218 = vmatpush.bf16.msra.mxu2 %v3188_v46  ;;  %v2955_v46 = vld [vmem:[%s3473_s14 + $0xc4] sm:$0x1] }
  0x62   : > { %859 = vrot.lane.b32.xlu2 %v849_v60, %s4529_s30  ;;  %v812_v53 = vpack.c.b16 %v3589_v47, %v3589_v47  ;;  %v2932_v60 = vld [vmem:[%s3473_s14 + $0x80] sm:$0xf]  ;;  %v709_v50 = vunpack.c.l.b16 %v2955_v46 }
  0x63   : > { %v478_v7 = vunpack.c.l.b16 %v2932_v60 }
  0x65   : > { %1205 = vmatpush.bf16.msra.mxu0 %v3187_v51  ;;  %3219 = vmatpush.bf16.msra.mxu2 %v3187_v51  ;;  %v486_v15 = vpack.c.b16 %v478_v7, %v478_v7 }
  0x68   : > { %861 = vrot.lane.b32.xlu0 %v850_v63, %s4529_s30  ;;  %495 = vrot.lane.b32.xlu1 %v483_v0, %s4527_s16  ;;  %v3181_v63 = vld [vmem:[%s3473_s14 + $0x30] sm:$0x10]  ;;  %v3012_v0 = vor.u32 %v3182_v57, %v3011_v56  ;;  %v669_v56 = vunpack.c.l.b16 %v2947_v48 }
  0x69   : > { %v3008_v3 = vor.u32 %v3181_v63, %v3007_v62  ;;  %1206 = vmatpush.bf16.msra.mxu0 %v3186_v2  ;;  %3220 = vmatpush.bf16.msra.mxu2 %v3186_v2 }
  0x6a   : > { %497 = vrot.lane.b32.xlu2 %v484_v10, %s4527_s16  ;;  %v595_v10 = vshll.u32 %v3012_v0, 16  ;;  %v593_v19 = vshrl.u32 %v3012_v0, 16  ;;  %s4537_s16 = smov 16   ;;  %v677_v0 = vpack.c.b16 %v669_v56, %v669_v56 }
  0x6b   : > { %v588_v9 = vshll.u32 %v3008_v3, 16  ;;  %v586_v17 = vshrl.u32 %v3008_v3, 16 }
  0x6c   : > { %v597_v20 = vrot.slane %v595_v10, 1  ;;  %v3656_v10 = vunpack.c.l.b16 %v2963_v4 }
  0x6d   : > { %v590_v18 = vrot.slane %v588_v9, 1 }
  0x6e   : > { %v598_v33 = vor.u32 %v597_v20, %v593_v19  ;;  %v2972_v19 = vld [vmem:[%s3473_s14 + $0x88] sm:$0xf] }
  0x6f   : > { %v591_v26 = vor.u32 %v590_v18, %v586_v17  ;;  %v813_v17 = vpack.c.b16 %v3656_v10, %v3656_v10  ;;  %v2971_v18 = vld [vmem:[%s3473_s14 + $0x80] sm:$0xf] }
  0x70   : > { %607 = vrot.lane.b32.xlu0 %v577_v11, %s4525_s24  ;;  %609 = vrot.lane.b32.xlu1 %v584_v13, %s4525_s24  ;;  %v3185_v11 = vld [vmem:[%s4536_s1 + $0x10] sm:$0xff]  ;;  %v888_v13 = vpack.c.b16 %v880_v5, %v3506_v54  ;;  %v898_v54 = vshll.u32 %v887_v12, 16 }
  0x71   : > { %1207 = vmatpush.bf16.msra.mxu0 %v3185_v11  ;;  %3221 = vmatpush.bf16.msra.mxu2 %v3185_v11 }
  0x72   : > { %647 = vrot.lane.b32.xlu2 %v635_v22, %s3353_s22  ;;  %v905_v23 = vshll.u32 %v888_v13, 16  ;;  %v900_v30 = vrot.slane %v898_v54, 1  ;;  %v903_v31 = vshrl.u32 %v888_v13, 16  ;;  %v2976_v54 = vld [vmem:[%s3473_s14 + $0x24] sm:$0x1] }
  0x74   : > { %v907_v32 = vrot.slane %v905_v23, 1  ;;  %v901_v39 = vor.u32 %v900_v30, %v896_v29  ;;  %v846_v29 = vunpack.c.l.b16 %v2972_v19  ;;  %v388_v19 = vld [vmem:[%s3473_s14 + $0x10] sm:$0xf] }
  0x75   : > { %1208 = vmatpush.bf16.msra.mxu0 %v3184_v45  ;;  %3222 = vmatpush.bf16.msra.mxu2 %v3184_v45  ;;  %v386_v45 = vld [vmem:[%s3473_s14] sm:$0xf] }
  0x76   : > { %v908_v40 = vor.u32 %v907_v32, %v903_v31  ;;  %v1087_v51 = vunpack.c.l.b16 %v901_v39  ;;  %v854_v39 = vpack.c.b16 %v846_v29, %v846_v29 }
  0x78   : > { %649 = vrot.lane.b32.xlu0 %v636_v24, %s3353_s22  ;;  %687 = vrot.lane.b32.xlu1 %v675_v25, %s3351_s15  ;;  %v2940_v24 = vld [vmem:[%s3473_s14 + $0xc8] sm:$0xf]  ;;  %v2956_v25 = vld [vmem:[%s3473_s14 + $0xcc] sm:$0x1]  ;;  %v1089_v52 = vunpack.c.l.b16 %v908_v40 }
  0x79   : > { %v630_v36 = vunpack.c.l.b16 %v2940_v24  ;;  %1209 = vmatpush.bf16.msra.mxu0 %v3183_v35  ;;  %3223 = vmatpush.bf16.msra.mxu2 %v3183_v35 }
  0x7a   : > { %689 = vrot.lane.b32.xlu2 %v676_v34, %s3351_s15  ;;  %v637_v34 = vpack.c.b16 %v629_v21, %v629_v21  ;;  %v1125_v59 = vpack.c.b16 %v1089_v52, %v1087_v51 }
  0x7b   : > { %v638_v60 = vpack.c.b16 %v630_v36, %v630_v36 }
  0x7c   : > { %v3582_v44 = vpop.permute.xlu2 %639 }
  0x80   : > { %783 = vrot.lane.b32.xlu0 %v753_v37, %s3355_s25  ;;  %785 = vrot.lane.b32.xlu1 %v760_v38, %s3355_s25  ;;  %v710_v37 = vunpack.c.l.b16 %v2956_v25  ;;  %v3191_v38 = vld [vmem:[%s4536_s1 + $0x40] sm:$0xff] }
  0x81   : > { %1238 = vmatpush.bf16.msra.mxu1 %v3191_v38  ;;  %3224 = vmatpush.bf16.msra.mxu3 %v3191_v38 }
  0x82   : > { %823 = vrot.lane.b32.xlu2 %v811_v49, %s3356_s29  ;;  %v2948_v49 = vld [vmem:[%s3473_s14 + $0x110] sm:$0xf]  ;;  %v718_v58 = vpack.c.b16 %v710_v37, %v630_v36 }
  0x83   : > { %v670_v57 = vunpack.c.l.b16 %v2948_v49 }
  0x84   : > { %v3608_v1 = vpop.permute.xlu2 %641  ;;  %3049 = vmatmul.msk.bf16.vlgmr.msra.gmra.mxu1 %vm951_vm0, %v1125_v59  ;;  %v771_v3 = vshll.u32 %v718_v58, 16 }
  0x85   : > { %v678_v2 = vpack.c.b16 %v670_v57, %v670_v57 }
  0x86   : > { %v773_v9 = vrot.slane %v771_v3, 1 }
  0x88   : > { %825 = vrot.lane.b32.xlu0 %v812_v53, %s3356_s29  ;;  %863 = vrot.lane.b32.xlu1 %v851_v55, %s4529_s30  ;;  %v717_v55 = vpack.c.b16 %v709_v50, %v629_v21  ;;  %v2975_v21 = vld [vmem:[%s3473_s14 + $0x1c] sm:$0x1] }
  0x89   : > { %v881_v30 = vunpack.c.l.b16 %v2975_v21 }
  0x8a   : > { %865 = vrot.lane.b32.xlu2 %v852_v8, %s4529_s30  ;;  %s4538_s30 = smov 32   ;;  %v764_v61 = vshll.u32 %v717_v55, 16  ;;  %v762_v5 = vshrl.u32 %v717_v55, 16  ;;  %v769_v8 = vshrl.u32 %v718_v58, 16 }
  0x8b   : > { %v889_v40 = vpack.c.b16 %v881_v30, %v3536_v41 }
  0x8c   : > { %v3622_v22 = vpop.permute.xlu2 %775  ;;  %v766_v6 = vrot.slane %v764_v61, 1  ;;  %v774_v16 = vor.u32 %v773_v9, %v769_v8 }
  0x8e   : > { %v767_v11 = vor.u32 %v766_v6, %v762_v5 }
  0x90   : > { %499 = vrot.lane.b32.xlu0 %v485_v14, %s4537_s16  ;;  %501 = vrot.lane.b32.xlu1 %v486_v15, %s4537_s16  ;;  %v2964_v14 = vld [vmem:[%s3473_s14 + $0x40] sm:$0xf]  ;;  %v387_v15 = vld [vmem:[%s3473_s14 + $0x8] sm:$0xf] }
  0x91   : > { %v3665_v20 = vunpack.c.l.b16 %v2964_v14  ;;  %v2977_v14 = vld [vmem:[%s3473_s14 + $0x2c] sm:$0x1] }
  0x92   : > { %v3631_v27 = vpop.permute.xlu1 %681  ;;  %v3633_v28 = vpop.permute.xlu0 %487  ;;  %611 = vrot.lane.b32.xlu2 %v591_v26, %s4538_s30  ;;  %v845_v26 = vunpack.c.l.b16 %v2971_v18 }
  0x93   : > { %v954_v31 = vsel %vm951_vm0, %v386_v45, %v3633_v28  ;;  %v814_v32 = vpack.c.b16 %v3665_v20, %v3665_v20 }
  0x94   : > { %v3645_v53 = vpop.permute.xlu2 %817  ;;  %v853_v38 = vpack.c.b16 %v845_v26, %v845_v26 }
  0x98   : > { %613 = vrot.lane.b32.xlu0 %v598_v33, %s4538_s30  ;;  %651 = vrot.lane.b32.xlu1 %v637_v34, %s3353_s22  ;;  %v882_v33 = vunpack.c.l.b16 %v2976_v54  ;;  %v389_v54 = vld [vmem:[%s3473_s14 + $0x18] sm:$0xf] }
  0x9a   : > { %v490_v62 = vpop.permute.xlu0 %489  ;;  %v600_v63 = vpop.permute.xlu1 %599  ;;  %653 = vrot.lane.b32.xlu2 %v638_v60, %s3353_s22  ;;  %v890_v46 = vpack.c.b16 %v882_v33, %v3538_v42  ;;  %s4539_s22 = smov 112   ;;  %v910_v60 = vshrl.u32 %v889_v40, 16 }
  0x9b   : > { %v957_v23 = vsel %vm951_vm0, %v387_v15, %v490_v62  ;;  %v978_v34 = vsel %vm976_vm1, %v954_v31, %v600_v63 }
  0x9c   : > { %v3652_v7 = vpop.permute.xlu2 %491  ;;  %v995_v28 = vsel %vm993_vm2, %v978_v34, %v3582_v44  ;;  %v919_v55 = vshll.u32 %v890_v46, 16  ;;  %v917_v62 = vshrl.u32 %v890_v46, 16 }
  0xa0   : > { %691 = vrot.lane.b32.xlu0 %v677_v0, %s3351_s15  ;;  %693 = vrot.lane.b32.xlu1 %v678_v2, %s3351_s15 }
  0xa2   : > { %v680_v12 = vpop.permute.xlu0 %679  ;;  %v602_v13 = vpop.permute.xlu1 %601  ;;  %787 = vrot.lane.b32.xlu2 %v767_v11, %s3355_s25 }
  0xa3   : > { %v980_v25 = vsel %vm976_vm1, %v957_v23, %v602_v13  ;;  %v1012_v48 = vsel %vm1010_vm3, %v995_v28, %v680_v12  ;;  %v2978_v13 = vld [vmem:[%s3473_s14 + $0x34] sm:$0x1]  ;;  %v960_v23 = vsel %vm951_vm0, %v388_v19, %v3652_v7 }
  0xa4   : > { %v3671_v24 = vpop.permute.xlu2 %605  ;;  %v997_v37 = vsel %vm993_vm2, %v980_v25, %v3608_v1  ;;  %v1029_v41 = vsel %vm1027_vm4, %v1012_v48, %v3622_v22  ;;  %v921_v22 = vrot.slane %v919_v55, 1  ;;  %v884_v15 = vunpack.c.l.b16 %v2978_v13 }
  0xa5   : > { %v1014_v49 = vsel %vm1010_vm3, %v997_v37, %v3631_v27  ;;  %v912_v27 = vshll.u32 %v889_v40, 16 }
  0xa6   : > { %v922_v2 = vor.u32 %v921_v22, %v917_v62  ;;  %v892_v21 = vpack.c.b16 %v884_v15, %v3589_v47 }
  0xa7   : > { %v914_v61 = vrot.slane %v912_v27, 1 }
  0xa8   : > { %789 = vrot.lane.b32.xlu0 %v774_v16, %s3355_s25  ;;  %827 = vrot.lane.b32.xlu1 %v813_v17, %s3356_s29  ;;  %v1093_v3 = vunpack.c.l.b16 %v922_v2  ;;  %v883_v16 = vunpack.c.l.b16 %v2977_v14  ;;  %v931_v37 = vshrl.u32 %v892_v21, 16  ;;  %v391_v2 = vld [vmem:[%s3473_s14 + $0x28] sm:$0xf] }
  0xa9   : > { %v915_v0 = vor.u32 %v914_v61, %v910_v60 }
  0xaa   : > { %v778_v35 = vpop.permute.xlu0 %777  ;;  %v816_v36 = vpop.permute.xlu1 %815  ;;  %829 = vrot.lane.b32.xlu2 %v814_v32, %s3356_s29  ;;  %v891_v45 = vpack.c.b16 %v883_v16, %v3580_v43  ;;  %v933_v32 = vshll.u32 %v892_v21, 16 }
  0xab   : > { %v1031_v50 = vsel %vm1027_vm4, %v1014_v49, %v778_v35  ;;  %v1046_v42 = vsel %vm1044_vm5, %v1029_v41, %v816_v36 }
  0xac   : > { %v684_v44 = vpop.permute.xlu2 %683  ;;  %v1048_v1 = vsel %vm1044_vm5, %v1031_v50, %v3645_v53  ;;  %v1091_v53 = vunpack.c.l.b16 %v915_v0  ;;  %v926_v31 = vshll.u32 %v891_v45, 16  ;;  %v924_v35 = vshrl.u32 %v891_v45, 16 }
  0xad   : > { %v935_v7 = vrot.slane %v933_v32, 1 }
  0xae   : > { %v1127_v8 = vpack.c.b16 %v1093_v3, %v1091_v53  ;;  %v928_v36 = vrot.slane %v926_v31, 1 }
  0xaf   : > { %v936_v48 = vor.u32 %v935_v7, %v931_v37 }
  0xb0   : > { %867 = vrot.lane.b32.xlu0 %v853_v38, %s4539_s22  ;;  %869 = vrot.lane.b32.xlu1 %v854_v39, %s4539_s22  ;;  %v929_v40 = vor.u32 %v928_v36, %v924_v35 }
  0xb1   : > { %3050 = vmatmul.msk.bf16.vlgmr.msra.gmra.mxu3 %vm951_vm0, %v1127_v8  ;;  %v1097_v50 = vunpack.c.l.b16 %v936_v48  ;;  %v2980_v8 = vld [vmem:[%s3473_s14 + $0x44] sm:$0x1] }
  0xb2   : > { %v856_v51 = vpop.permute.xlu0 %855  ;;  %v858_v52 = vpop.permute.xlu1 %857  ;;  %v1095_v49 = vunpack.c.l.b16 %v929_v40 }
  0xb3   : > { %v1063_v56 = vsel %vm1061_vm6, %v1046_v42, %v856_v51  ;;  %v1065_v57 = vsel %vm1061_vm6, %v1048_v1, %v858_v52 }
  0xb4   : > { %v1086_v58 = vunpack.c.l.b16 %v1063_v56  ;;  %v1088_v59 = vunpack.c.l.b16 %v1065_v57  ;;  %v782_v6 = vpop.permute.xlu2 %781  ;;  %v1129_v52 = vpack.c.b16 %v1097_v50, %v1095_v49 }
  0xb6   : > { %v1124_v63 = vpack.c.b16 %v1088_v59, %v1086_v58 }
  0xb8   : > { %1210 = vmatmul.bf16.vlgmr.msra.gmra.mxu0 %v1124_v63  ;;  %v390_v63 = vld [vmem:[%s3473_s14 + $0x20] sm:$0xf] }
  0xba   : > { %v494_v4 = vpop.permute.xlu0 %493  ;;  %v604_v5 = vpop.permute.xlu1 %603 }
  0xbb   : > { %v982_v26 = vsel %vm976_vm1, %v960_v23, %v604_v5  ;;  %v963_v29 = vsel %vm951_vm0, %v389_v54, %v494_v4 }
  0xbc   : > { %v860_v12 = vpop.permute.xlu2 %859  ;;  %v984_v43 = vsel %vm976_vm1, %v963_v29, %v3671_v24 }
  0xc1   : > { %3051 = vmatmul.msk.bf16.gmra.mxu3 %vm951_vm0, %v1129_v52 }
  0xc2   : > { %v644_v9 = vpop.permute.xlu0 %643  ;;  %v646_v11 = vpop.permute.xlu1 %645 }
  0xc3   : > { %v999_v30 = vsel %vm993_vm2, %v982_v26, %v644_v9  ;;  %v1001_v38 = vsel %vm993_vm2, %v984_v43, %v646_v11 }
  0xc4   : > { %v498_v25 = vpop.permute.xlu2 %497  ;;  %v1016_v47 = vsel %vm1010_vm3, %v999_v30, %v684_v44 }
  0xc5   : > { %v969_v5 = vsel %vm951_vm0, %v391_v2, %v498_v25 }
  0xca   : > { %v686_v17 = vpop.permute.xlu0 %685  ;;  %v780_v18 = vpop.permute.xlu1 %779 }
  0xcb   : > { %v1033_v39 = vsel %vm1027_vm4, %v1016_v47, %v780_v18  ;;  %v1018_v28 = vsel %vm1010_vm3, %v1001_v38, %v686_v17  ;;  %v886_v17 = vunpack.c.l.b16 %v2980_v8 }
  0xcc   : > { %v1035_v41 = vsel %vm1027_vm4, %v1018_v28, %v782_v6  ;;  %v648_v42 = vpop.permute.xlu2 %647  ;;  %v2979_v6 = vld [vmem:[%s3473_s14 + $0x3c] sm:$0x1] }
  0xcd   : > { %v885_v16 = vunpack.c.l.b16 %v2979_v6  ;;  %v894_v29 = vpack.c.b16 %v886_v17, %v3665_v20 }
  0xcf   : > { %v893_v26 = vpack.c.b16 %v885_v16, %v3656_v10  ;;  %v947_v36 = vshll.u32 %v894_v29, 16  ;;  %v945_v38 = vshrl.u32 %v894_v29, 16 }
  0xd1   : > { %v940_v35 = vshll.u32 %v893_v26, 16  ;;  %v938_v37 = vshrl.u32 %v893_v26, 16 }
  0xd2   : > { %v820_v33 = vpop.permute.xlu0 %819  ;;  %v822_v34 = vpop.permute.xlu1 %821 }
  0xd3   : > { %v1050_v46 = vsel %vm1044_vm5, %v1033_v39, %v820_v33  ;;  %v1052_v44 = vsel %vm1044_vm5, %v1035_v41, %v822_v34  ;;  %v942_v7 = vrot.slane %v940_v35, 1  ;;  %v949_v39 = vrot.slane %v947_v36, 1  ;;  %v392_v41 = vld [vmem:[%s3473_s14 + $0x30] sm:$0xf] }
  0xd4   : > { %v1067_v24 = vsel %vm1061_vm6, %v1050_v46, %v860_v12  ;;  %v690_v60 = vpop.permute.xlu2 %689 }
  0xd5   : > { %v1090_v55 = vunpack.c.l.b16 %v1067_v24  ;;  %v943_v10 = vor.u32 %v942_v7, %v938_v37  ;;  %v950_v40 = vor.u32 %v949_v39, %v945_v38  ;;  %v393_v24 = vld [vmem:[%s3473_s14 + $0x38] sm:$0xf] }
  0xd7   : > { %v1099_v20 = vunpack.c.l.b16 %v943_v10  ;;  %v1101_v28 = vunpack.c.l.b16 %v950_v40 }
  0xd9   : > { %v1131_v46 = vpack.c.b16 %v1101_v28, %v1099_v20 }
  0xda   : > { %v862_v1 = vpop.permute.xlu0 %861  ;;  %v496_v51 = vpop.permute.xlu1 %495 }
  0xdb   : > { %v1069_v27 = vsel %vm1061_vm6, %v1052_v44, %v862_v1  ;;  %v966_v0 = vsel %vm951_vm0, %v390_v63, %v496_v51  ;;  %3052 = vmatmul.msk.bf16.gmra.mxu3 %vm951_vm0, %v1131_v46  ;;  %v1279_v63 = vld [vmem:[#allocation2 + $0x8] sm:$0x1] }
  0xdc   : > { %v1092_v56 = vunpack.c.l.b16 %v1069_v27  ;;  %v824_v22 = vpop.permute.xlu2 %823  ;;  %v1280_v2 = vsel %vm3762_vm11, 0, %v1279_v63 }
  0xdd   : > { %1281 = vst [vmem:[#allocation2 + $0x8] sm:$0x1] %v1280_v2 }
  0xde   : > { %v1126_v57 = vpack.c.b16 %v1092_v56, %v1090_v55 }
  0xe0   : > { %1215 = vmatmul.bf16.gmra.mxu0 %v1126_v57 }
  0xe2   : > { %v608_v58 = vpop.permute.xlu0 %607  ;;  %v610_v59 = vpop.permute.xlu1 %609 }
  0xe3   : > { %v986_v53 = vsel %vm976_vm1, %v966_v0, %v608_v58  ;;  %v988_v9 = vsel %vm976_vm1, %v969_v5, %v610_v59  ;;  %v3358_v58 = vmov 0   ;;  %v1305_v0 = vld [vmem:[#allocation2 + $0xc] sm:$0x1] }
  0xe4   : > { %v1003_v11 = vsel %vm993_vm2, %v986_v53, %v648_v42  ;;  %v866_v15 = vpop.permute.xlu2 %865  ;;  %1269 = vst.msk [vmem:[#allocation2] sm:$0xf] %vm1268_vm7, %v3358_v58  ;;  %3275 = vset.pattern.permute.xlu1 %v3358_v58 }
  0xe5   : > { %1271 = vst.msk [vmem:[#allocation2 + $0x4] sm:$0x1] %vm1270_vm8, %v3358_v58 }
  0xe6   : > { %1273 = vst.msk [vmem:[#allocation2 + $0x48] sm:$0xf] %vm1268_vm7, %v3358_v58  ;;  %vm2684_vm7 = vcmask 1041409  }
  0xe7   : > { %1274 = vst.msk [vmem:[#allocation2 + $0x4c] sm:$0x1] %vm1270_vm8, %v3358_v58  ;;  %vm2687_vm8 = vcmask 1042434  }
  0xea   : > { %v650_v61 = vpop.permute.xlu0 %649  ;;  %v688_v62 = vpop.permute.xlu1 %687 }
  0xeb   : > { %v1005_v12 = vsel %vm993_vm2, %v988_v9, %v650_v61  ;;  %v1020_v13 = vsel %vm1010_vm3, %v1003_v11, %v688_v62  ;;  %v3784_v11 = vld [vmem:[#allocation2] sm:$0xf] }
  0xec   : > { %v1022_v18 = vsel %vm1010_vm3, %v1005_v12, %v690_v60  ;;  %v612_v34 = vpop.permute.xlu2 %611  ;;  %v1475_v12 = vld [vmem:[#allocation2 + $0x4] sm:$0x1] }
  0xed   : > { %v1557_v16 = vunpack.c.l.b16 %v1475_v12 }
  0xf2   : > { %v784_v3 = vpop.permute.xlu0 %783  ;;  %v786_v4 = vpop.permute.xlu1 %785 }
  0xf3   : > { %v1037_v14 = vsel %vm1027_vm4, %v1020_v13, %v784_v3  ;;  %v1039_v19 = vsel %vm1027_vm4, %v1022_v18, %v786_v4  ;;  %v1306_v3 = vsel %vm3772_vm12, 0, %v1305_v0 }
  0xf4   : > { %v1054_v21 = vsel %vm1044_vm5, %v1037_v14, %v824_v22  ;;  %v654_v48 = vpop.permute.xlu2 %653  ;;  %1307 = vst [vmem:[#allocation2 + $0xc] sm:$0x1] %v1306_v3 }
  0xfa   : > { %v826_v45 = vpop.permute.xlu0 %825  ;;  %v864_v54 = vpop.permute.xlu1 %863 }
  0xfb   : > { %v1056_v23 = vsel %vm1044_vm5, %v1039_v19, %v826_v45  ;;  %v1071_v25 = vsel %vm1061_vm6, %v1054_v21, %v864_v54  ;;  %v1282_v19 = vld [vmem:[#allocation2 + $0x10] sm:$0x1]  ;;  %v1308_v21 = vld [vmem:[#allocation2 + $0x14] sm:$0x1] }
  0xfc   : > { %v1094_v30 = vunpack.c.l.b16 %v1071_v25  ;;  %v1073_v31 = vsel %vm1061_vm6, %v1056_v23, %v866_v15  ;;  %v788_v52 = vpop.permute.xlu2 %787  ;;  %v1556_v15 = vunpack.c.l.b16 %v3784_v11  ;;  %v1283_v23 = vsel %vm3762_vm11, 0, %v1282_v19 }
  0xfd   : > { %v1096_v32 = vunpack.c.l.b16 %v1073_v31  ;;  %v1309_v25 = vsel %vm3772_vm12, 0, %v1308_v21  ;;  %1284 = vst [vmem:[#allocation2 + $0x10] sm:$0x1] %v1283_v23  ;;  %v1288_v23 = vld [vmem:[#allocation2 + $0x20] sm:$0x1] }
  0xfe   : > { %v1572_v26 = vpack.c.b16 %v1557_v16, %v1556_v15  ;;  %1310 = vst [vmem:[#allocation2 + $0x14] sm:$0x1] %v1309_v25  ;;  %v1314_v25 = vld [vmem:[#allocation2 + $0x24] sm:$0x1] }
  0xff   : > { %v1128_v33 = vpack.c.b16 %v1096_v32, %v1094_v30 }
 0x100   : > { %v1583_v30 = vshll.u32 %v1572_v26, 16  ;;  %v1581_v31 = vshrl.u32 %v1572_v26, 16 }
 0x101   : > { %1220 = vmatmul.bf16.vlgmr.msra.gmra.mxu2 %v1128_v33  ;;  %v1483_v33 = vld [vmem:[#allocation2] sm:$0xe]  ;;  %v1240_v37 = vpop.f32.mrf.mxu1 }
 0x102   : > { %v500_v43 = vpop.permute.xlu0 %499  ;;  %v502_v47 = vpop.permute.xlu1 %501  ;;  %v1585_v32 = vrot.slane %v1583_v30, 1  ;;  %v1660_v35 = vunpack.c.l.b16 %v1483_v33 }
 0x103   : > { %v972_v42 = vsel %vm951_vm0, %v392_v41, %v500_v43  ;;  %v975_v44 = vsel %vm951_vm0, %v393_v24, %v502_v47  ;;  %v3798_v47 = vld [vmem:[%s4515_s2] ss:$0 sm:$0xff] }
 0x104   : > { %v990_v27 = vsel %vm976_vm1, %v972_v42, %v612_v34  ;;  %v830_v6 = vpop.permute.xlu2 %829  ;;  %v1586_v34 = vor.u32 %v1585_v32, %v1581_v31  ;;  %v1668_v36 = vpack.c.b16 %v1557_v16, %v1660_v35  ;;  %v1419_v42 = vld [vmem:[#allocation2 + $0x8] sm:$0xf]  ;;  %v1425_v2 = vld [vmem:[#allocation2 + $0x10] sm:$0xf]  ;;  %v1289_v31 = vsel %vm3762_vm11, 0, %v1288_v23 }
 0x105   : > { %v1428_v3 = vld [vmem:[#allocation2 + $0x14] sm:$0x1]  ;;  %1290 = vst [vmem:[#allocation2 + $0x20] sm:$0x1] %v1289_v31  ;;  %v1315_v32 = vsel %vm3772_vm12, 0, %v1314_v25 }
 0x106   : > { %1636 = vrot.lane.b32.xlu2 %v1586_v34, %s4538_s30  ;;  %v1676_v43 = vrot.slane %v1668_v36, 1  ;;  %1316 = vst [vmem:[#allocation2 + $0x24] sm:$0x1] %v1315_v32 }
 0x108   : > { %1684 = vrot.lane.b32.xlu1 %v1676_v43, %s3351_s15 }
 0x109   : > { %v1242_v28 = vpop.f32.mrf.mxu1 }
 0x10a   : > { %v614_v49 = vpop.permute.xlu0 %613  ;;  %v652_v50 = vpop.permute.xlu1 %651 }
 0x10b   : > { %v992_v55 = vsel %vm976_vm1, %v975_v44, %v614_v49  ;;  %v1007_v56 = vsel %vm993_vm2, %v990_v27, %v652_v50  ;;  %v1422_v44 = vld [vmem:[#allocation2 + $0xc] sm:$0x1]  ;;  %v1285_v27 = vld [vmem:[#allocation2 + $0x18] sm:$0x1] }
 0x10c   : > { %v1009_v57 = vsel %vm993_vm2, %v992_v55, %v654_v48  ;;  %v1311_v55 = vld [vmem:[#allocation2 + $0x1c] sm:$0x1] }
 0x112   : > { %v692_v1 = vpop.permute.xlu0 %691  ;;  %v694_v51 = vpop.permute.xlu1 %693 }
 0x113   : > { %v1024_v59 = vsel %vm1010_vm3, %v1007_v56, %v692_v1  ;;  %v1026_v60 = vsel %vm1010_vm3, %v1009_v57, %v694_v51  ;;  %v1286_v56 = vsel %vm3762_vm11, 0, %v1285_v27 }
 0x114   : > { %v1041_v4 = vsel %vm1027_vm4, %v1024_v59, %v788_v52  ;;  %1287 = vst [vmem:[#allocation2 + $0x18] sm:$0x1] %v1286_v56 }
 0x11a   : > { %v790_v61 = vpop.permute.xlu0 %789  ;;  %v828_v62 = vpop.permute.xlu1 %827 }
 0x11b   : > { %v1043_v5 = vsel %vm1027_vm4, %v1026_v60, %v790_v61  ;;  %v1058_v8 = vsel %vm1044_vm5, %v1041_v4, %v828_v62  ;;  %v1312_v61 = vsel %vm3772_vm12, 0, %v1311_v55 }
 0x11c   : > { %v1060_v9 = vsel %vm1044_vm5, %v1043_v5, %v830_v6  ;;  %1313 = vst [vmem:[#allocation2 + $0x1c] sm:$0x1] %v1312_v61 }
 0x122   : > { %v868_v13 = vpop.permute.xlu0 %867  ;;  %v870_v14 = vpop.permute.xlu1 %869 }
 0x123   : > { %v1075_v17 = vsel %vm1061_vm6, %v1058_v8, %v868_v13  ;;  %v1077_v18 = vsel %vm1061_vm6, %v1060_v9, %v870_v14 }
 0x124   : > { %v1098_v45 = vunpack.c.l.b16 %v1075_v17  ;;  %v1100_v54 = vunpack.c.l.b16 %v1077_v18 }
 0x126   : > { %v1130_v29 = vpack.c.b16 %v1100_v54, %v1098_v45 }
 0x128   : > { %1225 = vmatmul.bf16.gmra.mxu2 %v1130_v29 }
 0x135   : > { %v1211_v7 = vpop.f32.mrf.mxu0 }
 0x136   : > { %v1212_v38 = vadd.f32 %v3798_v47, %v1211_v7 }
 0x138   : > { %v1241_v39 = vadd.f32 %v1240_v37, %v1212_v38 }
 0x13a   : > { %v1260_v10 = vmax.f32 %v1241_v39, 0.0  ;;  %v3209_v39 = vld [vmem:[%s4516_s3 + $0x88] sm:$0xff] }
 0x13b   : > { %2432 = vmatpush.bf16.msrb.mxu1 %v3209_v39 }
 0x13c   : > { %v1329_v40 = vpack.c.bf16 %v1260_v10, %v1260_v10 }
 0x13d   : > { %v1213_v20 = vpop.f32.mrf.mxu0 }
 0x13e   : > { %v1338_v46 = vshrl.u32 %v1329_v40, 16  ;;  %v1214_v48 = vadd.f32 %v3798_v47, %v1213_v20  ;;  %v1341_v50 = vshll.u32 %v1329_v40, 16 }
 0x140   : > { %v1340_v49 = vrot.slane %v1338_v46, 7  ;;  %v1243_v41 = vadd.f32 %v1242_v28, %v1214_v48  ;;  %v3208_v46 = vld [vmem:[%s4516_s3 + $0x80] sm:$0xff] }
 0x141   : > { %2433 = vmatpush.bf16.msrb.mxu1 %v3208_v46 }
 0x142   : > { %v1343_v1 = vor.u32 %v1341_v50, %v1340_v49  ;;  %v1344_v51 = vrot.slane %v1340_v49, 4  ;;  %v1261_v52 = vmax.f32 %v1243_v41, 0.0  ;;  %v1245_v41 = vpop.f32.mrf.mxu3 }
 0x144   : > { %v1420_v57 = vsel %vm3804_vm13, %v1343_v1, %v1419_v42  ;;  %v1423_v59 = vsel %vm3762_vm11, %v1344_v51, %v1422_v44  ;;  %v1330_v60 = vpack.c.bf16 %v1261_v52, %v1261_v52 }
 0x145   : > { %1421 = vst [vmem:[#allocation2 + $0x8] sm:$0xf] %v1420_v57 }
 0x146   : > { %1424 = vst [vmem:[#allocation2 + $0xc] sm:$0x1] %v1423_v59  ;;  %v1346_v62 = vshrl.u32 %v1330_v60, 16  ;;  %v1349_v0 = vshll.u32 %v1330_v60, 16 }
 0x148   : > { %v1348_v63 = vrot.slane %v1346_v62, 7 }
 0x14a   : > { %v1351_v4 = vor.u32 %v1349_v0, %v1348_v63  ;;  %v1352_v5 = vrot.slane %v1348_v63, 4  ;;  %v1247_v63 = vpop.f32.mrf.mxu3 }
 0x14c   : > { %v1426_v6 = vsel %vm3804_vm13, %v1351_v4, %v1425_v2  ;;  %v1429_v8 = vsel %vm3762_vm11, %v1352_v5, %v1428_v3  ;;  %v1491_v9 = vld [vmem:[#allocation2 + $0x8] sm:$0xf] }
 0x14d   : > { %v1484_v12 = vld [vmem:[#allocation2 + $0x8] sm:$0xe]  ;;  %1427 = vst [vmem:[#allocation2 + $0x10] sm:$0xf] %v1426_v6  ;;  %v1708_v14 = vunpack.c.l.b16 %v1491_v9  ;;  %v1476_v15 = vld [vmem:[#allocation2 + $0xc] sm:$0x1] }
 0x14e   : > { %v3820_v13 = vld [vmem:[#allocation2 + $0x8] sm:$0xf]  ;;  %v1661_v16 = vunpack.c.l.b16 %v1484_v12  ;;  %v1499_v18 = vld [vmem:[#allocation2 + $0xc] sm:$0x1]  ;;  %1430 = vst [vmem:[#allocation2 + $0x14] sm:$0x1] %v1429_v8  ;;  %v1559_v19 = vunpack.c.l.b16 %v1476_v15 }
 0x14f   : > { %v1558_v17 = vunpack.c.l.b16 %v3820_v13  ;;  %v1748_v21 = vunpack.c.l.b16 %v1499_v18  ;;  %v1716_v45 = vpack.c.b16 %v1708_v14, %v1708_v14  ;;  %v1507_v54 = vld [vmem:[#allocation2 + $0x8] sm:$0xe]  ;;  %v1431_v6 = vld [vmem:[#allocation2 + $0x18] sm:$0xf]  ;;  %v1434_v9 = vld [vmem:[#allocation2 + $0x1c] sm:$0x1] }
 0x150   : > { %v1669_v26 = vpack.c.b16 %v1559_v19, %v1661_v16  ;;  %v1828_v35 = vunpack.c.l.b16 %v1507_v54  ;;  %v1291_v12 = vld [vmem:[#allocation2 + $0x28] sm:$0x1] }
 0x151   : > { %v1573_v29 = vpack.c.b16 %v1559_v19, %v1558_v17  ;;  %v3823_v30 = vpack.c.b16 %v1748_v21, %v1708_v14  ;;  %1724 = vrot.lane.b32.xlu0 %v1716_v45, %s3356_s29  ;;  %v1317_v14 = vld [vmem:[#allocation2 + $0x2c] sm:$0x1]  ;;  %v1292_v18 = vsel %vm3762_vm11, 0, %v1291_v12 }
 0x152   : > { %v1677_v33 = vrot.slane %v1669_v26, 1  ;;  %v1836_v38 = vpack.c.b16 %v1748_v21, %v1828_v35  ;;  %1293 = vst [vmem:[#allocation2 + $0x28] sm:$0x1] %v1292_v18  ;;  %v1318_v19 = vsel %vm3772_vm12, 0, %v1317_v14  ;;  %v1440_v35 = vld [vmem:[#allocation2 + $0x24] sm:$0x1] }
 0x153   : > { %v1590_v34 = vshll.u32 %v1573_v29, 16  ;;  %v1588_v7 = vshrl.u32 %v1573_v29, 16  ;;  %1319 = vst [vmem:[#allocation2 + $0x2c] sm:$0x1] %v1318_v19 }
 0x154   : > { %1686 = vrot.lane.b32.xlu2 %v1677_v33, %s3351_s15  ;;  %v1492_v36 = vld [vmem:[#allocation2 + $0x10] sm:$0xf]  ;;  %v1844_v49 = vrot.slane %v1836_v38, 1 }
 0x155   : > { %v1592_v43 = vrot.slane %v1590_v34, 1  ;;  %v1709_v37 = vunpack.c.l.b16 %v1492_v36  ;;  %v3834_v20 = vld [vmem:[#allocation2 + $0x14] sm:$0x1]  ;;  %v1516_v28 = vld [vmem:[#allocation2 + $0x10] sm:$0xf] }
 0x156   : > { %v1749_v48 = vunpack.c.l.b16 %v3834_v20  ;;  %v3846_v42 = vunpack.c.l.b16 %v1516_v28  ;;  %v3849_v44 = vld [vmem:[#allocation2 + $0x14] sm:$0x1]  ;;  %v1485_v1 = vld [vmem:[#allocation2 + $0x10] sm:$0xe]  ;;  %v1437_v34 = vld [vmem:[#allocation2 + $0x20] sm:$0xf] }
 0x157   : > { %v1717_v10 = vpack.c.b16 %v1709_v37, %v1709_v37  ;;  %v1593_v40 = vor.u32 %v1592_v43, %v1588_v7  ;;  %v1561_v55 = vunpack.c.l.b16 %v3849_v44  ;;  %v1662_v56 = vunpack.c.l.b16 %v1485_v1  ;;  %v3868_v23 = vld [vmem:[#allocation2 + $0x14] sm:$0x1]  ;;  %v1532_v25 = vld [vmem:[#allocation2 + $0x10] sm:$0xe] }
 0x158   : > { %v3844_v50 = vpack.c.b16 %v1749_v48, %v1709_v37  ;;  %v1884_v27 = vpack.c.b16 %v3846_v42, %v3846_v42  ;;  %v1916_v32 = vunpack.c.l.b16 %v3868_v23  ;;  %v2012_v33 = vunpack.c.l.b16 %v1532_v25  ;;  %v1294_v37 = vld [vmem:[#allocation2 + $0x30] sm:$0x1]  ;;  %v1320_v7 = vld [vmem:[#allocation2 + $0x34] sm:$0x1] }
 0x159   : > { %1726 = vrot.lane.b32.xlu1 %v1717_v10, %s3356_s29  ;;  %1638 = vrot.lane.b32.xlu0 %v1593_v40, %s4538_s30  ;;  %v1670_v60 = vpack.c.b16 %v1561_v55, %v1662_v56  ;;  %v1295_v28 = vsel %vm3762_vm11, 0, %v1294_v37  ;;  %v1443_v25 = vld [vmem:[#allocation2 + $0x28] sm:$0xf] }
 0x15a   : > { %v2020_v40 = vpack.c.b16 %v1916_v32, %v2012_v33  ;;  %1296 = vst [vmem:[#allocation2 + $0x30] sm:$0x1] %v1295_v28  ;;  %v1323_v33 = vld [vmem:[#allocation2 + $0x3c] sm:$0x1] }
 0x15b   : > { %v1678_v3 = vrot.slane %v1670_v60, 1  ;;  %v1324_v37 = vsel %vm3772_vm12, 0, %v1323_v33 }
 0x15c   : > { %1852 = vrot.lane.b32.xlu2 %v1844_v49, %s4538_s30  ;;  %1325 = vst [vmem:[#allocation2 + $0x3c] sm:$0x1] %v1324_v37 }
 0x15d   : > { %v1216_v51 = vpop.f32.mrf.mxu0 }
 0x15e   : > { %v1217_v52 = vadd.f32 %v3798_v47, %v1216_v51 }
 0x160   : > { %v1246_v57 = vadd.f32 %v1245_v41, %v1217_v52  ;;  %v1321_v41 = vsel %vm3772_vm12, 0, %v1320_v7 }
 0x161   : > { %1892 = vrot.lane.b32.xlu1 %v1884_v27, %s3351_s15  ;;  %1322 = vst [vmem:[#allocation2 + $0x34] sm:$0x1] %v1321_v41 }
 0x162   : > { %v1262_v59 = vmax.f32 %v1246_v57, 0.0  ;;  %v2028_v57 = vrot.slane %v2020_v40, 1 }
 0x164   : > { %v1331_v61 = vpack.c.bf16 %v1262_v59, %v1262_v59 }
 0x165   : > { %v1218_v62 = vpop.f32.mrf.mxu0 }
 0x166   : > { %v1354_v0 = vshrl.u32 %v1331_v61, 16  ;;  %v1219_v2 = vadd.f32 %v3798_v47, %v1218_v62  ;;  %v1357_v5 = vshll.u32 %v1331_v61, 16  ;;  %v2166_v62 = vunpack.c.l.b16 %v2028_v57 }
 0x168   : > { %v1356_v4 = vrot.slane %v1354_v0, 7  ;;  %v1248_v8 = vadd.f32 %v1247_v63, %v1219_v2 }
 0x169   : > { %1688 = vrot.lane.b32.xlu1 %v1678_v3, %s3351_s15 }
 0x16a   : > { %v1359_v15 = vor.u32 %v1357_v5, %v1356_v4  ;;  %v1360_v16 = vrot.slane %v1356_v4, 4  ;;  %v1263_v17 = vmax.f32 %v1248_v8, 0.0  ;;  %v1250_v8 = vpop.f32.mrf.mxu3 }
 0x16c   : > { %v1432_v21 = vsel %vm3804_vm13, %v1359_v15, %v1431_v6  ;;  %v1435_v45 = vsel %vm3762_vm11, %v1360_v16, %v1434_v9  ;;  %v1332_v54 = vpack.c.bf16 %v1263_v17, %v1263_v17 }
 0x16d   : > { %1433 = vst [vmem:[#allocation2 + $0x18] sm:$0xf] %v1432_v21 }
 0x16e   : > { %1436 = vst [vmem:[#allocation2 + $0x1c] sm:$0x1] %v1435_v45  ;;  %v1362_v26 = vshrl.u32 %v1332_v54, 16  ;;  %v1365_v31 = vshll.u32 %v1332_v54, 16 }
 0x170   : > { %v1364_v29 = vrot.slane %v1362_v26, 7 }
 0x172   : > { %v1367_v36 = vor.u32 %v1365_v31, %v1364_v29  ;;  %v1368_v43 = vrot.slane %v1364_v29, 4  ;;  %v1252_v21 = vpop.f32.mrf.mxu3  ;;  %v1446_v29 = vld [vmem:[#allocation2 + $0x2c] sm:$0x1]  ;;  %v1297_v31 = vld [vmem:[#allocation2 + $0x38] sm:$0x1] }
 0x174   : > { %v1438_v38 = vsel %vm3804_vm13, %v1367_v36, %v1437_v34  ;;  %v1441_v39 = vsel %vm3762_vm11, %v1368_v43, %v1440_v35  ;;  %v1533_v10 = vld [vmem:[#allocation2 + $0x18] sm:$0xe]  ;;  %v1298_v43 = vsel %vm3762_vm11, 0, %v1297_v31 }
 0x175   : > { %1439 = vst [vmem:[#allocation2 + $0x20] sm:$0xf] %v1438_v38  ;;  %v3879_v46 = vld [vmem:[#allocation2 + $0x1c] sm:$0x1]  ;;  %v2013_v49 = vunpack.c.l.b16 %v1533_v10  ;;  %v1493_v51 = vld [vmem:[#allocation2 + $0x18] sm:$0xf] }
 0x176   : > { %1442 = vst [vmem:[#allocation2 + $0x24] sm:$0x1] %v1441_v39  ;;  %v1917_v1 = vunpack.c.l.b16 %v3879_v46  ;;  %v3884_v52 = vunpack.c.l.b16 %v1493_v51  ;;  %v3886_v27 = vld [vmem:[#allocation2 + $0x1c] sm:$0x1] }
 0x177   : > { %v1750_v59 = vunpack.c.l.b16 %v3886_v27  ;;  %1299 = vst [vmem:[#allocation2 + $0x38] sm:$0x1] %v1298_v43 }
 0x178   : > { %v2021_v56 = vpack.c.b16 %v1917_v1, %v2013_v49  ;;  %v3199_v49 = vld [vmem:[%s4516_s3 + $0x38] sm:$0xff] }
 0x179   : > { %v3894_v61 = vpack.c.b16 %v1750_v59, %v3884_v52  ;;  %2368 = vmatpush.bf16.msrb.mxu2 %v3199_v49  ;;  %v3197_v49 = vld [vmem:[%s4516_s3 + $0x28] sm:$0xff] }
 0x17a   : > { %v2029_v60 = vrot.slane %v2021_v56, 1 }
 0x17c   : > { %v2169_v63 = vunpack.c.l.b16 %v2029_v60  ;;  %v1494_v0 = vld [vmem:[#allocation2 + $0x20] sm:$0xf]  ;;  %v1449_v60 = vld [vmem:[#allocation2 + $0x30] sm:$0xf] }
 0x17d   : > { %v3896_v3 = vunpack.c.l.b16 %v1494_v0  ;;  %v3898_v4 = vld [vmem:[#allocation2 + $0x24] sm:$0x1]  ;;  %v1534_v40 = vld [vmem:[#allocation2 + $0x20] sm:$0xe] }
 0x17e   : > { %v2230_v2 = vpack.c.b16 %v2169_v63, %v2166_v62  ;;  %v1751_v5 = vunpack.c.l.b16 %v3898_v4  ;;  %v3917_v10 = vld [vmem:[#allocation2 + $0x24] sm:$0x1]  ;;  %v2014_v57 = vunpack.c.l.b16 %v1534_v40  ;;  %v1452_v62 = vld [vmem:[#allocation2 + $0x34] sm:$0x1]  ;;  %v1300_v40 = vld [vmem:[#allocation2 + $0x40] sm:$0x1] }
 0x17f   : > { %v1918_v56 = vunpack.c.l.b16 %v3917_v10  ;;  %v1719_v22 = vpack.c.b16 %v3896_v3, %v3896_v3  ;;  %v4045_v27 = vld [vmem:[#allocation2 + $0x24] sm:$0x1] }
 0x180   : > { %3125 = vmatmul.msk.bf16.vlgmr.msrb.gmra.mxu1 %vm976_vm1, %v2230_v2  ;;  %v3905_v6 = vpack.c.b16 %v1751_v5, %v3896_v3  ;;  %v1508_v2 = vld [vmem:[#allocation2 + $0x10] sm:$0xe] }
 0x184   : > { %v1221_v9 = vpop.f32.mrf.mxu2 }
 0x185   : > { %v1222_v12 = vadd.f32 %v3798_v47, %v1221_v9 }
 0x187   : > { %v1251_v14 = vadd.f32 %v1250_v8, %v1222_v12  ;;  %v3198_v8 = vld [vmem:[%s4516_s3 + $0x30] sm:$0xff] }
 0x188   : > { %2369 = vmatpush.bf16.msrb.mxu2 %v3198_v8 }
 0x189   : > { %v1264_v15 = vmax.f32 %v1251_v14, 0.0 }
 0x18b   : > { %v1333_v16 = vpack.c.bf16 %v1264_v15, %v1264_v15 }
 0x18c   : > { %v1223_v17 = vpop.f32.mrf.mxu2  ;;  %2370 = vmatpush.bf16.msrb.mxu2 %v3197_v49 }
 0x18d   : > { %v1370_v18 = vshrl.u32 %v1333_v16, 16  ;;  %v1224_v19 = vadd.f32 %v3798_v47, %v1223_v17  ;;  %v1373_v54 = vshll.u32 %v1333_v16, 16  ;;  %v2022_v17 = vpack.c.b16 %v1918_v56, %v2014_v57 }
 0x18f   : > { %v1372_v45 = vrot.slane %v1370_v18, 7  ;;  %v1253_v26 = vadd.f32 %v1252_v21, %v1224_v19 }
 0x191   : > { %v1375_v34 = vor.u32 %v1373_v54, %v1372_v45  ;;  %v1376_v35 = vrot.slane %v1372_v45, 4  ;;  %v1265_v36 = vmax.f32 %v1253_v26, 0.0 }
 0x193   : > { %v1444_v7 = vsel %vm3804_vm13, %v1375_v34, %v1443_v25  ;;  %v1447_v38 = vsel %vm3762_vm11, %v1376_v35, %v1446_v29  ;;  %v1334_v39 = vpack.c.bf16 %v1265_v36, %v1265_v36  ;;  %v1829_v29 = vunpack.c.l.b16 %v1508_v2 }
 0x194   : > { %1445 = vst [vmem:[#allocation2 + $0x28] sm:$0xf] %v1444_v7  ;;  %v2030_v7 = vrot.slane %v2022_v17, 1 }
 0x195   : > { %1448 = vst [vmem:[#allocation2 + $0x2c] sm:$0x1] %v1447_v38  ;;  %v1378_v28 = vshrl.u32 %v1334_v39, 16  ;;  %v1381_v51 = vshll.u32 %v1334_v39, 16 }
 0x196   : > { %v2172_v53 = vunpack.c.l.b16 %v2030_v7 }
 0x197   : > { %v1380_v41 = vrot.slane %v1378_v28, 7  ;;  %v1326_v28 = vld [vmem:[#allocation2 + $0x44] sm:$0x1] }
 0x198   : > { %v1327_v57 = vsel %vm3772_vm12, 0, %v1326_v28  ;;  %v1517_v28 = vld [vmem:[#allocation2 + $0x18] sm:$0xf]  ;;  %vm2699_vm12 = vcmask 1046534  }
 0x199   : > { %v1383_v63 = vor.u32 %v1381_v51, %v1380_v41  ;;  %v1384_v0 = vrot.slane %v1380_v41, 4  ;;  %v1301_v51 = vsel %vm3762_vm11, 0, %v1300_v40  ;;  %1328 = vst [vmem:[#allocation2 + $0x44] sm:$0x1] %v1327_v57 }
 0x19a   : > { %1302 = vst [vmem:[#allocation2 + $0x40] sm:$0x1] %v1301_v51 }
 0x19b   : > { %v1450_v9 = vsel %vm3804_vm13, %v1383_v63, %v1449_v60  ;;  %v1453_v12 = vsel %vm3762_vm11, %v1384_v0, %v1452_v62  ;;  %v1519_v14 = vld [vmem:[#allocation2 + $0x28] sm:$0xf]  ;;  %v1837_v63 = vpack.c.b16 %v1749_v48, %v1829_v29 }
 0x19c   : > { %v1495_v15 = vld [vmem:[#allocation2 + $0x28] sm:$0xf]  ;;  %1451 = vst [vmem:[#allocation2 + $0x30] sm:$0xf] %v1450_v9  ;;  %v1879_v18 = vunpack.c.l.b16 %v1519_v14  ;;  %v1527_v21 = vld [vmem:[#allocation2 + $0x2c] sm:$0x1] }
 0x19d   : > { %v1535_v16 = vld [vmem:[#allocation2 + $0x28] sm:$0xe]  ;;  %v1712_v19 = vunpack.c.l.b16 %v1495_v15  ;;  %v1480_v54 = vld [vmem:[#allocation2 + $0x2c] sm:$0x1]  ;;  %1454 = vst [vmem:[#allocation2 + $0x34] sm:$0x1] %v1453_v12  ;;  %v1919_v25 = vunpack.c.l.b16 %v1527_v21 }
 0x19e   : > { %v2015_v45 = vunpack.c.l.b16 %v1535_v16  ;;  %v1488_v26 = vld [vmem:[#allocation2 + $0x28] sm:$0xe]  ;;  %v1887_v31 = vpack.c.b16 %v1879_v18, %v1879_v18  ;;  %v1567_v34 = vunpack.c.l.b16 %v1480_v54  ;;  %v1503_v36 = vld [vmem:[#allocation2 + $0x2c] sm:$0x1]  ;;  %v3948_v9 = vld [vmem:[#allocation2 + $0x10] sm:$0xf] }
 0x19f   : > { %v1720_v33 = vpack.c.b16 %v1712_v19, %v1712_v19  ;;  %v1665_v35 = vunpack.c.l.b16 %v1488_v26  ;;  %v3932_v43 = vld [vmem:[#allocation2 + $0x28] sm:$0xf]  ;;  %v1927_v38 = vpack.c.b16 %v1919_v25, %v1879_v18  ;;  %v1752_v39 = vunpack.c.l.b16 %v1503_v36  ;;  %v3196_v12 = vld [vmem:[%s4516_s3 + $0x20] sm:$0xff] }
 0x1a0   : > { %v2023_v37 = vpack.c.b16 %v1919_v25, %v2015_v45  ;;  %1898 = vrot.lane.b32.xlu2 %v1887_v31, %s3351_s15  ;;  %v1566_v41 = vunpack.c.l.b16 %v3932_v43  ;;  %v1511_v20 = vld [vmem:[#allocation2 + $0x28] sm:$0xe]  ;;  %v1845_v45 = vrot.slane %v1837_v63, 1  ;;  %v1560_v54 = vunpack.c.l.b16 %v3948_v9  ;;  %2371 = vmatpush.bf16.msrb.mxu2 %v3196_v12  ;;  %v3195_v25 = vld [vmem:[%s4516_s3 + $0x18] sm:$0xff]  ;;  %v3192_v12 = vld [vmem:[%s4516_s3] sm:$0xff] }
 0x1a1   : > { %1732 = vrot.lane.b32.xlu0 %v1720_v33, %s3356_s29  ;;  %v1956_v62 = vshll.u32 %v1927_v38, 16  ;;  %v3946_v0 = vpack.c.b16 %v1752_v39, %v1712_v19  ;;  %v1673_v2 = vpack.c.b16 %v1567_v34, %v1665_v35  ;;  %v1954_v15 = vshrl.u32 %v1927_v38, 16  ;;  %v1255_v35 = vpop.f32.mrf.mxu3 }
 0x1a2   : > { %v2031_v60 = vrot.slane %v2023_v37, 1  ;;  %v1577_v8 = vpack.c.b16 %v1567_v34, %v1566_v41  ;;  %v1832_v29 = vunpack.c.l.b16 %v1511_v20  ;;  %v1924_v36 = vpack.c.b16 %v1916_v32, %v3846_v42  ;;  %v3194_v37 = vld [vmem:[%s4516_s3 + $0x10] sm:$0xff]  ;;  %v3193_v42 = vld [vmem:[%s4516_s3 + $0x8] sm:$0xff] }
 0x1a3   : > { %v1958_v16 = vrot.slane %v1956_v62, 1  ;;  %v1496_v17 = vld [vmem:[#allocation2 + $0x30] sm:$0xf]  ;;  %v1681_v26 = vrot.slane %v1673_v2, 1  ;;  %v1574_v40 = vpack.c.b16 %v1561_v55, %v1560_v54  ;;  %v3977_v62 = vunpack.c.l.b16 %v1517_v28 }
 0x1a4   : > { %v2175_v14 = vunpack.c.l.b16 %v2031_v60  ;;  %v1713_v48 = vunpack.c.l.b16 %v1496_v17  ;;  %v3953_v18 = vld [vmem:[#allocation2 + $0x34] sm:$0x1]  ;;  %v1618_v31 = vshll.u32 %v1577_v8, 16  ;;  %2372 = vmatpush.bf16.msrb.mxu2 %v3195_v25  ;;  %v1840_v7 = vpack.c.b16 %v1752_v39, %v1832_v29  ;;  %v1520_v63 = vld [vmem:[#allocation2 + $0x30] sm:$0xf] }
 0x1a5   : > { %v1959_v21 = vor.u32 %v1958_v16, %v1954_v15  ;;  %v1753_v33 = vunpack.c.l.b16 %v3953_v18  ;;  %v1616_v51 = vshrl.u32 %v1577_v8, 16  ;;  %v1935_v60 = vshll.u32 %v1924_v36, 16 }
 0x1a6   : > { %v2233_v19 = vpack.c.b16 %v2175_v14, %v2172_v53  ;;  %v1620_v38 = vrot.slane %v1618_v31, 1  ;;  %v1721_v57 = vpack.c.b16 %v1713_v48, %v1713_v48  ;;  %v1848_v32 = vrot.slane %v1840_v7, 1  ;;  %v1455_v31 = vld [vmem:[#allocation2 + $0x38] sm:$0xf] }
 0x1a7   : > { %1994 = vrot.lane.b32.xlu1 %v1959_v21, %s3356_s29  ;;  %v3966_v34 = vpack.c.b16 %v1753_v33, %v1713_v48  ;;  %v1597_v44 = vshll.u32 %v1574_v40, 16  ;;  %v3985_v2 = vunpack.c.l.b16 %v1520_v63  ;;  %v1925_v8 = vpack.c.b16 %v1917_v1, %v3977_v62 }
 0x1a8   : > { %3126 = vmatmul.msk.bf16.gmra.mxu1 %vm976_vm1, %v2233_v19  ;;  %1694 = vrot.lane.b32.xlu2 %v1681_v26, %s3351_s15  ;;  %v1621_v39 = vor.u32 %v1620_v38, %v1616_v51  ;;  %v1937_v15 = vrot.slane %v1935_v60, 1  ;;  %v1933_v20 = vshrl.u32 %v1924_v36, 16  ;;  %v3999_v38 = vld [vmem:[#allocation2 + $0x1c] sm:$0x1]  ;;  %v1512_v60 = vld [vmem:[#allocation2 + $0x30] sm:$0xe] }
 0x1a9   : > { %1854 = vrot.lane.b32.xlu0 %v1845_v45, %s4538_s30  ;;  %2373 = vmatpush.bf16.msrb.mxu2 %v3194_v37  ;;  %v1599_v14 = vrot.slane %v1597_v44, 1  ;;  %v1257_v17 = vpop.f32.mrf.mxu3  ;;  %v1595_v45 = vshrl.u32 %v1574_v40, 16  ;;  %v1888_v46 = vpack.c.b16 %v3985_v2, %v3985_v2  ;;  %v1942_v1 = vshll.u32 %v1925_v8, 16  ;;  %v1486_v40 = vld [vmem:[#allocation2 + $0x18] sm:$0xe] }
 0x1aa   : > { %v1938_v29 = vor.u32 %v1937_v15, %v1933_v20  ;;  %v1940_v51 = vshrl.u32 %v1925_v8, 16  ;;  %v1885_v44 = vpack.c.b16 %v3977_v62, %v3977_v62  ;;  %v1833_v15 = vunpack.c.l.b16 %v1512_v60  ;;  %v1464_v20 = vld [vmem:[#allocation2 + $0x44] sm:$0x1] }
 0x1ab   : > { %v1226_v49 = vpop.f32.mrf.mxu2  ;;  %v1600_v26 = vor.u32 %v1599_v14, %v1595_v45  ;;  %v4013_v45 = vld [vmem:[#allocation2 + $0x18] sm:$0xf] }
 0x1ac   : > { %v1227_v41 = vadd.f32 %v3798_v47, %v1226_v49  ;;  %v1562_v24 = vunpack.c.l.b16 %v4013_v45 }
 0x1ad   : > { %2374 = vmatpush.bf16.msrb.mxu2 %v3193_v42  ;;  %v1536_v42 = vld [vmem:[#allocation2 + $0x30] sm:$0xe] }
 0x1ae   : > { %v1256_v23 = vadd.f32 %v1255_v35, %v1227_v41  ;;  %v1458_v35 = vld [vmem:[#allocation2 + $0x3c] sm:$0x1] }
 0x1af   : > { %1734 = vrot.lane.b32.xlu1 %v1721_v57, %s3356_s29  ;;  %v1528_v57 = vld [vmem:[#allocation2 + $0x34] sm:$0x1] }
 0x1b0   : > { %v1266_v55 = vmax.f32 %v1256_v23, 0.0  ;;  %1860 = vrot.lane.b32.xlu2 %v1848_v32, %s4538_s30  ;;  %v1563_v32 = vunpack.c.l.b16 %v3999_v38 }
 0x1b1   : > { %1646 = vrot.lane.b32.xlu0 %v1621_v39, %s4538_s30  ;;  %2375 = vmatpush.bf16.msrb.mxu2 %v3192_v12  ;;  %v1663_v39 = vunpack.c.l.b16 %v1486_v40  ;;  %v1920_v12 = vunpack.c.l.b16 %v1528_v57 }
 0x1b2   : > { %v1335_v53 = vpack.c.bf16 %v1266_v55, %v1266_v55  ;;  %v1718_v55 = vpack.c.b16 %v3884_v52, %v3884_v52 }
 0x1b3   : > { %v1228_v16 = vpop.f32.mrf.mxu2  ;;  %v1671_v62 = vpack.c.b16 %v1563_v32, %v1663_v39  ;;  %v4016_v52 = vpack.c.b16 %v1920_v12, %v3985_v2 }
 0x1b4   : > { %v1386_v48 = vshrl.u32 %v1335_v53, 16  ;;  %v1389_v19 = vshll.u32 %v1335_v53, 16  ;;  %v1229_v21 = vadd.f32 %v3798_v47, %v1228_v16  ;;  %v1944_v47 = vrot.slane %v1942_v1, 1  ;;  %v1509_v53 = vld [vmem:[#allocation2 + $0x18] sm:$0xe] }
 0x1b5   : > { %v2016_v16 = vunpack.c.l.b16 %v1536_v42  ;;  %v1679_v18 = vrot.slane %v1671_v62, 1 }
 0x1b6   : > { %v1388_v54 = vrot.slane %v1386_v48, 7  ;;  %v1258_v25 = vadd.f32 %v1257_v17, %v1229_v21  ;;  %v1945_v63 = vor.u32 %v1944_v47, %v1940_v51  ;;  %v1461_v17 = vld [vmem:[#allocation2 + $0x40] sm:$0xf]  ;;  %v1830_v21 = vunpack.c.l.b16 %v1509_v53  ;;  %v4058_v53 = vld [vmem:[#allocation2 + $0x4c] sm:$0x1] }
 0x1b7   : > { %1900 = vrot.lane.b32.xlu1 %v1888_v46, %s3351_s15  ;;  %v1637_v46 = vpop.permute.xlu2 %1636 }
 0x1b8   : > { %v1391_v37 = vor.u32 %v1389_v19, %v1388_v54  ;;  %v1392_v36 = vrot.slane %v1388_v54, 4  ;;  %v1267_v7 = vmax.f32 %v1258_v25, 0.0  ;;  %1640 = vrot.lane.b32.xlu2 %v1600_v26, %s4538_s30  ;;  %v1841_v25 = vpack.c.b16 %v1753_v33, %v1833_v15 }
 0x1b9   : > { %1988 = vrot.lane.b32.xlu0 %v1938_v29, %s3356_s29  ;;  %v2024_v29 = vpack.c.b16 %v1920_v12, %v2016_v16  ;;  %v1838_v47 = vpack.c.b16 %v1750_v59, %v1830_v21  ;;  %v2038_v40 = vsel %vm976_vm1, %v3784_v11, %v1637_v46  ;;  %v1487_v59 = vld [vmem:[#allocation2 + $0x20] sm:$0xe]  ;;  %v4049_v11 = vpack.c.b16 %v1563_v32, %v1562_v24 }
 0x1ba   : > { %v1456_v28 = vsel %vm3804_vm13, %v1391_v37, %v1455_v31  ;;  %v1459_v49 = vsel %vm3762_vm11, %v1392_v36, %v1458_v35  ;;  %v1336_v41 = vpack.c.bf16 %v1267_v7, %v1267_v7  ;;  %v4024_v31 = vld [vmem:[#allocation2 + $0x30] sm:$0xf]  ;;  %v4026_v35 = vld [vmem:[#allocation2 + $0x34] sm:$0x1]  ;;  %v1685_v37 = vpop.permute.xlu1 %1684  ;;  %v1849_v3 = vrot.slane %v1841_v25, 1 }
 0x1bb   : > { %1457 = vst [vmem:[#allocation2 + $0x38] sm:$0xf] %v1456_v28  ;;  %v1518_v28 = vld [vmem:[#allocation2 + $0x20] sm:$0xf]  ;;  %v1569_v51 = vunpack.c.l.b16 %v4026_v35  ;;  %v2032_v42 = vrot.slane %v2024_v29, 1  ;;  %v1846_v12 = vrot.slane %v1838_v47, 1  ;;  %v1565_v32 = vunpack.c.l.b16 %v4045_v27 }
 0x1bc   : > { %1460 = vst [vmem:[#allocation2 + $0x3c] sm:$0x1] %v1459_v49  ;;  %v1394_v23 = vshrl.u32 %v1336_v41, 16  ;;  %v1397_v8 = vshll.u32 %v1336_v41, 16  ;;  %v1963_v49 = vshll.u32 %v4016_v52, 16  ;;  %v1568_v41 = vunpack.c.l.b16 %v4024_v31 }
 0x1bd   : > { %v1664_v16 = vunpack.c.l.b16 %v1487_v59  ;;  %v1923_v25 = vunpack.c.l.b16 %v4058_v53 }
 0x1be   : > { %v1396_v14 = vrot.slane %v1394_v23, 7  ;;  %v1965_v15 = vrot.slane %v1963_v49, 1  ;;  %v1604_v49 = vshll.u32 %v4049_v11, 16 }
 0x1bf   : > { %1990 = vrot.lane.b32.xlu1 %v1945_v63, %s3356_s29  ;;  %v2061_v63 = vsel %vm1010_vm3, %v2038_v40, %v1685_v37  ;;  %v1687_v37 = vpop.permute.xlu2 %1686 }
 0x1c0   : > { %v1399_v48 = vor.u32 %v1397_v8, %v1396_v14  ;;  %v1400_v19 = vrot.slane %v1396_v14, 4  ;;  %1894 = vrot.lane.b32.xlu2 %v1885_v44, %s3351_s15  ;;  %v1539_v14 = vld [vmem:[#allocation2 + $0x48] sm:$0xe]  ;;  %v1961_v8 = vshrl.u32 %v4016_v52, 16 }
 0x1c1   : > { %1728 = vrot.lane.b32.xlu0 %v1718_v55, %s3356_s29  ;;  %v4056_v55 = vunpack.c.l.b16 %v1518_v28  ;;  %v2019_v29 = vunpack.c.l.b16 %v1539_v14 }
 0x1c2   : > { %v1462_v1 = vsel %vm3804_vm13, %v1399_v48, %v1461_v17  ;;  %v1465_v54 = vsel %vm3762_vm11, %v1400_v19, %v1464_v20  ;;  %v1537_v26 = vld [vmem:[#allocation2 + $0x38] sm:$0xe]  ;;  %v2178_v17 = vunpack.c.l.b16 %v2032_v42  ;;  %v1578_v48 = vpack.c.b16 %v1569_v51, %v1568_v41 }
 0x1c3   : > { %1463 = vst [vmem:[#allocation2 + $0x40] sm:$0xf] %v1462_v1  ;;  %v1725_v2 = vpop.permute.xlu0 %1724  ;;  %v4028_v36 = vld [vmem:[#allocation2 + $0x3c] sm:$0x1]  ;;  %v2017_v7 = vunpack.c.l.b16 %v1537_v26  ;;  %v1497_v57 = vld [vmem:[#allocation2 + $0x38] sm:$0xf]  ;;  %v1886_v28 = vpack.c.b16 %v4056_v55, %v4056_v55 }
 0x1c4   : > { %1466 = vst [vmem:[#allocation2 + $0x44] sm:$0x1] %v1465_v54  ;;  %v1921_v33 = vunpack.c.l.b16 %v4028_v36  ;;  %v4036_v38 = vld [vmem:[#allocation2 + $0x3c] sm:$0x1]  ;;  %v4051_v39 = vunpack.c.l.b16 %v1497_v57  ;;  %v1521_v62 = vld [vmem:[#allocation2 + $0x38] sm:$0xf]  ;;  %v2077_v1 = vsel %vm1044_vm5, %v2061_v63, %v1725_v2  ;;  %v1966_v57 = vor.u32 %v1965_v15, %v1961_v8 }
 0x1c5   : > { %v1754_v23 = vunpack.c.l.b16 %v4036_v38  ;;  %v1881_v41 = vunpack.c.l.b16 %v1521_v62  ;;  %v2164_v42 = vunpack.c.l.b16 %v2077_v1  ;;  %v1672_v15 = vpack.c.b16 %v1565_v32, %v1664_v16  ;;  %v4103_v62 = vld [vmem:[#allocation2 + $0x20] sm:$0xf] }
 0x1c6   : > { %v2025_v60 = vpack.c.b16 %v1921_v33, %v2017_v7  ;;  %v1602_v1 = vshrl.u32 %v4049_v11, 16  ;;  %v1564_v16 = vunpack.c.l.b16 %v4103_v62  ;;  %vm2696_vm11 = vcmask 1045509  }
 0x1c7   : > { %1730 = vrot.lane.b32.xlu1 %v1719_v22, %s3356_s29  ;;  %v4067_v46 = vpack.c.b16 %v1754_v23, %v4051_v39  ;;  %v1889_v4 = vpack.c.b16 %v1881_v41, %v1881_v41  ;;  %vm2702_vm13 = vcmask 1047559  }
 0x1c8   : > { %1690 = vrot.lane.b32.xlu2 %v1679_v18, %s3351_s15  ;;  %v2033_v44 = vrot.slane %v2025_v60, 1 }
 0x1c9   : > { %1862 = vrot.lane.b32.xlu0 %v1849_v3, %s4538_s30  ;;  %v1625_v3 = vshll.u32 %v1578_v48, 16 }
 0x1ca   : > { %v2181_v20 = vunpack.c.l.b16 %v2033_v44  ;;  %v1538_v19 = vld [vmem:[#allocation2 + $0x40] sm:$0xe]  ;;  %v2027_v44 = vpack.c.b16 %v1923_v25, %v2019_v29  ;;  %v1680_v29 = vrot.slane %v1672_v15, 1 }
 0x1cb   : > { %v1498_v21 = vld [vmem:[#allocation2 + $0x40] sm:$0xf]  ;;  %v1639_v52 = vpop.permute.xlu0 %1638  ;;  %v4070_v54 = vld [vmem:[#allocation2 + $0x44] sm:$0x1]  ;;  %v2018_v26 = vunpack.c.l.b16 %v1538_v19  ;;  %v1727_v40 = vpop.permute.xlu1 %1726 }
 0x1cc   : > { %v2041_v7 = vsel %vm976_vm1, %v3820_v13, %v1639_v52  ;;  %v2236_v24 = vpack.c.b16 %v2181_v20, %v2178_v17  ;;  %v1922_v22 = vunpack.c.l.b16 %v4070_v54  ;;  %v4076_v18 = vunpack.c.l.b16 %v1498_v21  ;;  %v4078_v47 = vld [vmem:[#allocation2 + $0x44] sm:$0x1]  ;;  %v1510_v19 = vld [vmem:[#allocation2 + $0x20] sm:$0xe] }
 0x1cd   : > { %v2063_v2 = vsel %vm1010_vm3, %v2041_v7, %v1687_v37  ;;  %v1755_v60 = vunpack.c.l.b16 %v4078_v47  ;;  %v1627_v17 = vrot.slane %v1625_v3, 1  ;;  %v1606_v20 = vrot.slane %v1604_v49, 1  ;;  %v4117_v3 = vld [vmem:[#allocation2 + $0x38] sm:$0xf] }
 0x1ce   : > { %3127 = vmatmul.msk.bf16.gmra.mxu1 %vm976_vm1, %v2236_v24  ;;  %v2079_v13 = vsel %vm1044_vm5, %v2063_v2, %v1727_v40  ;;  %v2026_v63 = vpack.c.b16 %v1922_v22, %v2018_v26  ;;  %v1623_v21 = vshrl.u32 %v1578_v48, 16  ;;  %v2035_v26 = vrot.slane %v2027_v44, 1 }
 0x1cf   : > { %1896 = vrot.lane.b32.xlu1 %v1886_v28, %s3351_s15  ;;  %v2167_v59 = vunpack.c.l.b16 %v2079_v13  ;;  %v4097_v14 = vpack.c.b16 %v1755_v60, %v4076_v18  ;;  %v1831_v7 = vunpack.c.l.b16 %v1510_v19  ;;  %v1607_v40 = vor.u32 %v1606_v20, %v1602_v1  ;;  %v1489_v28 = vld [vmem:[#allocation2 + $0x30] sm:$0xe]  ;;  %v1482_v13 = vld [vmem:[#allocation2 + $0x3c] sm:$0x1] }
 0x1d0   : > { %1856 = vrot.lane.b32.xlu2 %v1846_v12, %s4538_s30  ;;  %v1929_v12 = vpack.c.b16 %v1921_v33, %v1881_v41  ;;  %v2034_v52 = vrot.slane %v2026_v63, 1  ;;  %v1628_v24 = vor.u32 %v1627_v17, %v1623_v21  ;;  %v2187_v33 = vunpack.c.l.b16 %v2035_v26  ;;  %v1523_v26 = vld [vmem:[#allocation2 + $0x48] sm:$0xf] }
 0x1d1   : > { %1996 = vrot.lane.b32.xlu0 %v1966_v57, %s3356_s29  ;;  %v2228_v8 = vpack.c.b16 %v2167_v59, %v2164_v42  ;;  %v1839_v11 = vpack.c.b16 %v1751_v5, %v1831_v7  ;;  %v1926_v2 = vpack.c.b16 %v1918_v56, %v4056_v55  ;;  %v1576_v49 = vpack.c.b16 %v1565_v32, %v1564_v16 }
 0x1d2   : > { %v1970_v37 = vshll.u32 %v1929_v12, 16  ;;  %v2184_v36 = vunpack.c.l.b16 %v2034_v52  ;;  %v1968_v57 = vshrl.u32 %v1929_v12, 16  ;;  %v1666_v44 = vunpack.c.l.b16 %v1489_v28  ;;  %v1490_v12 = vld [vmem:[#allocation2 + $0x38] sm:$0xe] }
 0x1d3   : > { %2376 = vmatmul.bf16.vlgmr.msrb.gmra.mxu2 %v2228_v8  ;;  %v1847_v63 = vrot.slane %v1839_v11, 1  ;;  %v1949_v8 = vshll.u32 %v1926_v2, 16  ;;  %v1611_v5 = vshll.u32 %v1576_v49, 16  ;;  %v1571_v15 = vunpack.c.l.b16 %v1482_v13 }
 0x1d4   : > { %v1972_v48 = vrot.slane %v1970_v37, 1  ;;  %v2239_v42 = vpack.c.b16 %v2187_v33, %v2184_v36  ;;  %v1570_v10 = vunpack.c.l.b16 %v4117_v3  ;;  %v1674_v56 = vpack.c.b16 %v1569_v51, %v1666_v44  ;;  %v1522_v36 = vld [vmem:[#allocation2 + $0x40] sm:$0xf] }
 0x1d5   : > { %v1613_v27 = vrot.slane %v1611_v5, 1  ;;  %v1951_v55 = vrot.slane %v1949_v8, 1  ;;  %v1609_v17 = vshrl.u32 %v1576_v49, 16  ;;  %v1947_v20 = vshrl.u32 %v1926_v2, 16  ;;  %v4136_v2 = vpop.permute.xlu2 %1852  ;;  %v3205_v5 = vld [vmem:[%s4516_s3 + $0x68] sm:$0xff] }
 0x1d6   : > { %v1973_v59 = vor.u32 %v1972_v48, %v1968_v57  ;;  %v1579_v32 = vpack.c.b16 %v1571_v15, %v1570_v10  ;;  %v1682_v41 = vrot.slane %v1674_v56, 1  ;;  %v1667_v1 = vunpack.c.l.b16 %v1490_v12  ;;  %v3207_v57 = vld [vmem:[%s4516_s3 + $0x78] sm:$0xff]  ;;  %v3204_v56 = vld [vmem:[%s4516_s3 + $0x60] sm:$0xff]  ;;  %v1893_v12 = vpop.permute.xlu1 %1892 }
 0x1d7   : > { %1692 = vrot.lane.b32.xlu1 %v1680_v29, %s3351_s15  ;;  %v1614_v19 = vor.u32 %v1613_v27, %v1609_v17  ;;  %v1952_v21 = vor.u32 %v1951_v55, %v1947_v20  ;;  %v1513_v29 = vld [vmem:[#allocation2 + $0x38] sm:$0xe]  ;;  %v1883_v37 = vunpack.c.l.b16 %v1523_v26  ;;  %v1882_v11 = vunpack.c.l.b16 %v1522_v36  ;;  %2397 = vmatpush.bf16.msrb.mxu3 %v3207_v57 }
 0x1d8   : > { %1648 = vrot.lane.b32.xlu2 %v1628_v24, %s4538_s30  ;;  %v1632_v52 = vshll.u32 %v1579_v32, 16  ;;  %v1675_v35 = vpack.c.b16 %v1571_v15, %v1667_v1  ;;  %v1630_v7 = vshrl.u32 %v1579_v32, 16  ;;  %v1723_v24 = vpack.c.b16 %v4076_v18, %v4076_v18  ;;  %v1514_v18 = vld [vmem:[#allocation2 + $0x40] sm:$0xe]  ;;  %v3203_v32 = vld [vmem:[%s4516_s3 + $0x58] sm:$0xff]  ;;  %v3201_v1 = vld [vmem:[%s4516_s3 + $0x48] sm:$0xff] }
 0x1d9   : > { %1642 = vrot.lane.b32.xlu0 %v1607_v40, %s4538_s30  ;;  %v1834_v33 = vunpack.c.l.b16 %v1513_v29  ;;  %v1931_v48 = vpack.c.b16 %v1923_v25, %v1883_v37  ;;  %v1890_v13 = vpack.c.b16 %v1882_v11, %v1882_v11  ;;  %v1722_v25 = vpack.c.b16 %v4051_v39, %v4051_v39  ;;  %v3206_v39 = vld [vmem:[%s4516_s3 + $0x70] sm:$0xff] }
 0x1da   : > { %v1634_v51 = vrot.slane %v1632_v52, 1  ;;  %v1683_v40 = vrot.slane %v1675_v35, 1  ;;  %v1930_v44 = vpack.c.b16 %v1922_v22, %v1882_v11  ;;  %v1795_v54 = vshll.u32 %v3946_v0, 16 }
 0x1db   : > { %v1842_v28 = vpack.c.b16 %v1754_v23, %v1834_v33  ;;  %v1984_v49 = vshll.u32 %v1931_v48, 16  ;;  %2398 = vmatpush.bf16.msrb.mxu3 %v3206_v39  ;;  %v1793_v17 = vshrl.u32 %v3946_v0, 16  ;;  %v3200_v0 = vld [vmem:[%s4516_s3 + $0x40] sm:$0xff]  ;;  %v1774_v36 = vshll.u32 %v3844_v50, 16 }
 0x1dc   : > { %v1635_v16 = vor.u32 %v1634_v51, %v1630_v7  ;;  %v1977_v10 = vshll.u32 %v1930_v44, 16  ;;  %v1797_v27 = vrot.slane %v1795_v54, 1 }
 0x1dd   : > { %v1850_v53 = vrot.slane %v1842_v28, 1  ;;  %v1765_v28 = vshrl.u32 %v3823_v30, 16 }
 0x1de   : > { %3128 = vmatmul.msk.bf16.gmra.mxu1 %vm976_vm1, %v2239_v42  ;;  %v1835_v42 = vunpack.c.l.b16 %v1514_v18  ;;  %v1979_v47 = vrot.slane %v1977_v10, 1  ;;  %v1798_v20 = vor.u32 %v1797_v27, %v1793_v17  ;;  %v1689_v52 = vpop.permute.xlu1 %1688  ;;  %v1772_v18 = vshrl.u32 %v3844_v50, 16 }
 0x1df   : > { %1998 = vrot.lane.b32.xlu1 %v1973_v59, %s3356_s29  ;;  %v1982_v59 = vshrl.u32 %v1931_v48, 16  ;;  %2399 = vmatpush.bf16.msrb.mxu3 %v3205_v5  ;;  %v1776_v48 = vrot.slane %v1774_v36, 1  ;;  %v1802_v27 = vshll.u32 %v3966_v34, 16 }
 0x1e0   : > { %1902 = vrot.lane.b32.xlu2 %v1889_v4, %s3351_s15  ;;  %v1843_v23 = vpack.c.b16 %v1755_v60, %v1835_v42  ;;  %v1891_v4 = vpack.c.b16 %v1883_v37, %v1883_v37  ;;  %v1975_v60 = vshrl.u32 %v1930_v44, 16 }
 0x1e1   : > { %1858 = vrot.lane.b32.xlu0 %v1847_v63, %s4538_s30  ;;  %v1986_v63 = vrot.slane %v1984_v49, 1  ;;  %v1804_v17 = vrot.slane %v1802_v27, 1 }
 0x1e2   : > { %v1851_v15 = vrot.slane %v1843_v23, 1  ;;  %v1980_v55 = vor.u32 %v1979_v47, %v1975_v60 }
 0x1e3   : > { %v1987_v8 = vor.u32 %v1986_v63, %v1982_v59  ;;  %2400 = vmatpush.bf16.msrb.mxu3 %v3204_v56 }
 0x1e7   : > { %1696 = vrot.lane.b32.xlu1 %v1682_v41, %s3351_s15  ;;  %2401 = vmatpush.bf16.msrb.mxu3 %v3203_v32 }
 0x1e8   : > { %1644 = vrot.lane.b32.xlu2 %v1614_v19, %s4538_s30 }
 0x1e9   : > { %1992 = vrot.lane.b32.xlu0 %v1952_v21, %s3356_s29  ;;  %v3202_v21 = vld [vmem:[%s4516_s3 + $0x50] sm:$0xff] }
 0x1eb   : > { %2402 = vmatpush.bf16.msrb.mxu3 %v3202_v21 }
 0x1ef   : > { %1738 = vrot.lane.b32.xlu1 %v1723_v24, %s3356_s29  ;;  %2403 = vmatpush.bf16.msrb.mxu3 %v3201_v1  ;;  %v1800_v1 = vshrl.u32 %v3966_v34, 16 }
 0x1f0   : > { %1698 = vrot.lane.b32.xlu2 %v1683_v40, %s3351_s15 }
 0x1f1   : > { %1650 = vrot.lane.b32.xlu0 %v1635_v16, %s4538_s30  ;;  %v1767_v16 = vshll.u32 %v3823_v30, 16 }
 0x1f3   : > { %2404 = vmatpush.bf16.msrb.mxu3 %v3200_v0  ;;  %v1769_v33 = vrot.slane %v1767_v16, 1 }
 0x1f7   : > { %1904 = vrot.lane.b32.xlu1 %v1890_v13, %s3351_s15 }
 0x1f8   : > { %1864 = vrot.lane.b32.xlu2 %v1850_v53, %s4538_s30  ;;  %v1770_v53 = vor.u32 %v1769_v33, %v1765_v28  ;;  %v1786_v28 = vshrl.u32 %v3905_v6, 16 }
 0x1f9   : > { %1736 = vrot.lane.b32.xlu0 %v1722_v25, %s3356_s29  ;;  %v1777_v25 = vor.u32 %v1776_v48, %v1772_v18 }
 0x1fa   : > { %v4148_v38 = vpop.permute.xlu2 %1898  ;;  %v2094_v42 = vsel %vm976_vm1, %v1770_v53, %v4136_v2 }
 0x1fb   : > { %v2117_v63 = vsel %vm1010_vm3, %v2094_v42, %v1893_v12 }
 0x1ff   : > { %2002 = vrot.lane.b32.xlu1 %v1987_v8, %s3356_s29 }
 0x200   : > { %1906 = vrot.lane.b32.xlu2 %v1891_v4, %s3351_s15 }
 0x201   : > { %1866 = vrot.lane.b32.xlu0 %v1851_v15, %s4538_s30 }
 0x202   : > { %v4164_v22 = vpop.permute.xlu2 %1694 }
 0x209   : > { %2000 = vrot.lane.b32.xlu0 %v1980_v55, %s3356_s29 }
 0x20a   : > { %v1861_v41 = vpop.permute.xlu2 %1860 }
 0x20b   : > { %v2106_v19 = vsel %vm976_vm1, %v1798_v20, %v1861_v41 }
 0x212   : > { %v1641_v26 = vpop.permute.xlu2 %1640 }
 0x213   : > { %v1733_v35 = vpop.permute.xlu0 %1732  ;;  %v2044_v12 = vsel %vm976_vm1, %v3948_v9, %v1641_v26 }
 0x219   : > { %v4184_v51 = vpop.permute.xlu1 %1994 }
 0x21a   : > { %v1895_v29 = vpop.permute.xlu2 %1894 }
 0x21b   : > { %v1855_v37 = vpop.permute.xlu0 %1854 }
 0x21c   : > { %v2097_v59 = vsel %vm976_vm1, %v1777_v25, %v1855_v37 }
 0x21d   : > { %v2119_v30 = vsel %vm1010_vm3, %v2097_v59, %v1895_v29 }
 0x221   : > { %v1735_v7 = vpop.permute.xlu1 %1734 }
 0x222   : > { %v1691_v24 = vpop.permute.xlu2 %1690 }
 0x223   : > { %v1647_v40 = vpop.permute.xlu0 %1646 }
 0x224   : > { %v2053_v56 = vsel %vm976_vm1, %v3932_v43, %v1647_v40  ;;  %v2065_v43 = vsel %vm1010_vm3, %v2044_v12, %v1689_v52 }
 0x225   : > { %v2071_v55 = vsel %vm1010_vm3, %v2053_v56, %v4164_v22 }
 0x226   : > { %v2087_v21 = vsel %vm1044_vm5, %v2071_v55, %v1735_v7 }
 0x227   : > { %v2179_v16 = vunpack.c.l.b16 %v2087_v21 }
 0x229   : > { %v1901_v11 = vpop.permute.xlu1 %1900 }
 0x22a   : > { %v2125_v49 = vsel %vm1010_vm3, %v2106_v19, %v1901_v11  ;;  %v4191_v57 = vpop.permute.xlu2 %1856  ;;  %v1788_v19 = vshll.u32 %v3905_v6, 16  ;;  %v1781_v11 = vshll.u32 %v3894_v61, 16  ;;  %v1779_v6 = vshrl.u32 %v3894_v61, 16 }
 0x22b   : > { %v1989_v13 = vpop.permute.xlu0 %1988 }
 0x22c   : > { %v2133_v23 = vsel %vm1044_vm5, %v2117_v63, %v1989_v13  ;;  %v1790_v52 = vrot.slane %v1788_v19, 1  ;;  %v1783_v42 = vrot.slane %v1781_v11, 1 }
 0x22d   : > { %v2165_v4 = vunpack.c.l.b16 %v2133_v23 }
 0x22e   : > { %v1791_v13 = vor.u32 %v1790_v52, %v1786_v28  ;;  %v2435_v28 = vpop.f32.mrf.mxu1 }
 0x231   : > { %v1991_v44 = vpop.permute.xlu1 %1990 }
 0x232   : > { %v2135_v50 = vsel %vm1044_vm5, %v2119_v30, %v1991_v44  ;;  %v4200_v8 = vpop.permute.xlu2 %1648 }
 0x233   : > { %v1729_v39 = vpop.permute.xlu0 %1728  ;;  %v2168_v5 = vunpack.c.l.b16 %v2135_v50  ;;  %v1784_v50 = vor.u32 %v1783_v42, %v1779_v6 }
 0x234   : > { %v2081_v29 = vsel %vm1044_vm5, %v2065_v43, %v1729_v39  ;;  %v1809_v43 = vshll.u32 %v4067_v46, 16 }
 0x235   : > { %v2229_v15 = vpack.c.b16 %v2168_v5, %v2165_v4  ;;  %v2170_v36 = vunpack.c.l.b16 %v2081_v29  ;;  %v2100_v39 = vsel %vm976_vm1, %v1784_v50, %v4191_v57  ;;  %v2056_v57 = vsel %vm976_vm1, %v4024_v31, %v4200_v8 }
 0x237   : > { %2405 = vmatmul.bf16.vlgmr.msrb.gmra.mxu3 %v2229_v15 }
 0x239   : > { %v1731_v10 = vpop.permute.xlu1 %1730 }
 0x23a   : > { %v1903_v54 = vpop.permute.xlu2 %1902 }
 0x23b   : > { %v1863_v2 = vpop.permute.xlu0 %1862 }
 0x241   : > { %v1897_v47 = vpop.permute.xlu1 %1896 }
 0x242   : > { %v1645_v32 = vpop.permute.xlu2 %1644  ;;  %v2121_v4 = vsel %vm1010_vm3, %v2100_v39, %v1897_v47  ;;  %v1816_v47 = vshll.u32 %v4097_v14, 16 }
 0x243   : > { %v1997_v60 = vpop.permute.xlu0 %1996  ;;  %v2050_v20 = vsel %vm976_vm1, %v4103_v62, %v1645_v32  ;;  %v1805_v62 = vor.u32 %v1804_v17, %v1800_v1  ;;  %v1814_v1 = vshrl.u32 %v4097_v14, 16 }
 0x244   : > { %v1818_v19 = vrot.slane %v1816_v47, 1 }
 0x245   : > { %v2109_v34 = vsel %vm976_vm1, %v1805_v62, %v1863_v2 }
 0x246   : > { %v1819_v8 = vor.u32 %v1818_v19, %v1814_v1 }
 0x249   : > { %v1693_v41 = vpop.permute.xlu1 %1692 }
 0x24a   : > { %v2069_v0 = vsel %vm1010_vm3, %v2050_v20, %v1693_v41 }
 0x24b   : > { %v1643_v22 = vpop.permute.xlu0 %1642  ;;  %v2085_v26 = vsel %vm1044_vm5, %v2069_v0, %v1733_v35 }
 0x24c   : > { %v2047_v9 = vsel %vm976_vm1, %v4013_v45, %v1643_v22  ;;  %v2176_v40 = vunpack.c.l.b16 %v2085_v26  ;;  %v2141_v45 = vsel %vm1044_vm5, %v2125_v49, %v1997_v60  ;;  %v1811_v22 = vrot.slane %v1809_v43, 1 }
 0x24d   : > { %v2067_v37 = vsel %vm1010_vm3, %v2047_v9, %v1691_v24  ;;  %v2127_v24 = vsel %vm1010_vm3, %v2109_v34, %v1903_v54  ;;  %v2177_v59 = vunpack.c.l.b16 %v2141_v45  ;;  %v1807_v26 = vshrl.u32 %v4067_v46, 16 }
 0x24e   : > { %v2083_v7 = vsel %vm1044_vm5, %v2067_v37, %v1731_v10  ;;  %v2234_v48 = vpack.c.b16 %v2179_v16, %v2176_v40  ;;  %v3359_v43 = vmov 64.0  }
 0x24f   : > { %v2173_v33 = vunpack.c.l.b16 %v2083_v7  ;;  %v1812_v40 = vor.u32 %v1811_v22, %v1807_v26  ;;  %3281 = vrcp.f32 %v3359_v43  ;;  %v3214_v22 = vld [vmem:[%s4522_s9] sm:$0xff] }
 0x250   : > { %v3210_v26 = vld [vmem:[%s3473_s14 + $0xdc] sm:$0xf0]  ;;  %2596 = vmatpush.bf16.msrb.mxu0 %v3214_v22 }
 0x251   : > { %v2231_v35 = vpack.c.b16 %v2173_v33, %v2170_v36  ;;  %v1999_v18 = vpop.permute.xlu1 %1998 }
 0x252   : > { %v2143_v53 = vsel %vm1044_vm5, %v2127_v24, %v1999_v18 }
 0x253   : > { %2381 = vmatmul.bf16.gmra.mxu2 %v2231_v35  ;;  %v1859_v25 = vpop.permute.xlu0 %1858  ;;  %v2180_v63 = vunpack.c.l.b16 %v2143_v53  ;;  %v2437_v35 = vpop.f32.mrf.mxu1 }
 0x254   : > { %v2103_v23 = vsel %vm976_vm1, %v1791_v13, %v1859_v25 }
 0x255   : > { %v2123_v44 = vsel %vm1010_vm3, %v2103_v23, %v4148_v38  ;;  %v2235_v30 = vpack.c.b16 %v2180_v63, %v2177_v59  ;;  %v1699_v38 = vpop.permute.xlu2 %1698 }
 0x256   : > { %v2139_v49 = vsel %vm1044_vm5, %v2123_v44, %v4184_v51  ;;  %v2377_v11 = vpop.f32.mrf.mxu2 }
 0x257   : > { %v2174_v54 = vunpack.c.l.b16 %v2139_v49  ;;  %v3278_v49 = vld [vmem:[%s4517_s4] ss:$0 sm:$0xff] }
 0x259   : > { %v1697_v5 = vpop.permute.xlu1 %1696 }
 0x25a   : > { %v2073_v55 = vsel %vm1010_vm3, %v2056_v57, %v1697_v5 }
 0x25b   : > { %v1993_v15 = vpop.permute.xlu0 %1992  ;;  %v2440_v13 = vpop.f32.mrf.mxu1 }
 0x25c   : > { %v2137_v10 = vsel %vm1044_vm5, %v2121_v4, %v1993_v15  ;;  %v2378_v4 = vadd.f32 %v3278_v49, %v2377_v11 }
 0x25d   : > { %v2171_v2 = vunpack.c.l.b16 %v2137_v10  ;;  %v1865_v12 = vpop.permute.xlu2 %1864 }
 0x25e   : > { %v2112_v16 = vsel %vm976_vm1, %v1812_v40, %v1865_v12  ;;  %v2379_v46 = vpop.f32.mrf.mxu2 }
 0x25f   : > { %v2232_v60 = vpack.c.b16 %v2174_v54, %v2171_v2  ;;  %v2380_v50 = vadd.f32 %v3278_v49, %v2379_v46 }
 0x261   : > { %2410 = vmatmul.bf16.gmra.mxu3 %v2232_v60  ;;  %v1739_v56 = vpop.permute.xlu1 %1738 }
 0x263   : > { %2386 = vmatmul.bf16.gmra.mxu2 %v2234_v48  ;;  %v1651_v61 = vpop.permute.xlu0 %1650  ;;  %v2442_v42 = vpop.f32.mrf.mxu1 }
 0x264   : > { %v2059_v51 = vsel %vm976_vm1, %v4117_v3, %v1651_v61 }
 0x265   : > { %v2075_v27 = vsel %vm1010_vm3, %v2059_v51, %v1699_v38  ;;  %v1907_v9 = vpop.permute.xlu2 %1906 }
 0x266   : > { %v2091_v20 = vsel %vm1044_vm5, %v2075_v27, %v1739_v56 }
 0x267   : > { %v2185_v3 = vunpack.c.l.b16 %v2091_v20 }
 0x269   : > { %v1905_v21 = vpop.permute.xlu1 %1904 }
 0x26a   : > { %v2129_v14 = vsel %vm1010_vm3, %v2112_v16, %v1905_v21 }
 0x26b   : > { %v1737_v32 = vpop.permute.xlu0 %1736  ;;  %v2445_v23 = vpop.f32.mrf.mxu1 }
 0x26c   : > { %v2089_v17 = vsel %vm1044_vm5, %v2073_v55, %v1737_v32 }
 0x26d   : > { %v2182_v41 = vunpack.c.l.b16 %v2089_v17 }
 0x26f   : > { %v2237_v31 = vpack.c.b16 %v2185_v3, %v2182_v41 }
 0x271   : > { %2415 = vmatmul.bf16.gmra.mxu3 %v2235_v30  ;;  %v2003_v37 = vpop.permute.xlu1 %2002  ;;  %v2493_v30 = vlaneseq }
 0x273   : > { %2391 = vmatmul.bf16.gmra.mxu2 %v2237_v31  ;;  %v1867_v0 = vpop.permute.xlu0 %1866  ;;  %v2447_v39 = vpop.f32.mrf.mxu1  ;;  %v2494_v5 = vshrl.u32 %v2493_v30, 7 }
 0x274   : > { %v2115_v29 = vsel %vm976_vm1, %v1819_v8, %v1867_v0  ;;  %v3279_v0 = vld [vmem:[%s4519_s6] ss:$0 sm:$0xff] }
 0x275   : > { %v2131_v62 = vsel %vm1010_vm3, %v2115_v29, %v1907_v9  ;;  %3274 = vset.pattern.permute.xlu0 %v2494_v5  ;;  %v3140_v29 = vld [vmem:[%s3473_s14 + $0xd8] sm:$0xf] }
 0x276   : > { %v2147_v7 = vsel %vm1044_vm5, %v2131_v62, %v2003_v37  ;;  %v3141_v40 = vor.u32 %v3210_v26, %v3140_v29 }
 0x277   : > { %v2186_v34 = vunpack.c.l.b16 %v2147_v7 }
 0x278   : > { %3158 = vmatmul.msk.bf16.vlgmr.msrb.gmra.mxu0 %vm951_vm0, %v3141_v40 }
 0x27b   : > { %v2001_v52 = vpop.permute.xlu0 %2000  ;;  %v2450_v19 = vpop.f32.mrf.mxu1 }
 0x27c   : > { %v2145_v36 = vsel %vm1044_vm5, %v2129_v14, %v2001_v52 }
 0x27d   : > { %v2183_v33 = vunpack.c.l.b16 %v2145_v36  ;;  %2497 = vperm.xlu0 %3274, %v3279_v0   ;;  %v3282_v36 = vpop.eup %3281 }
 0x27e   : > { %vm2481_vm14 = vweird.f32 %v3282_v36 }
 0x27f   : > { %v2238_v48 = vpack.c.b16 %v2186_v34, %v2183_v33 }
 0x281   : > { %2420 = vmatmul.bf16.gmra.mxu3 %v2238_v48 }
 0x285   : > { %3276 = vset.pattern.permute.xlu0 %v3358_v58 }
 0x2ba   : > { %v2406_v45 = vpop.f32.mrf.mxu3 }
 0x2bb   : > { %v2407_v2 = vadd.f32 %v2406_v45, %v2378_v4 }
 0x2bd   : > { %v4262_v57 = vadd.f32 %v2435_v28, %v2407_v2 }
 0x2bf   : > { %v2455_v21 = vsel %vm976_vm1, %v4262_v57, 0.0 }
 0x2c2   : > { %v2408_v24 = vpop.f32.mrf.mxu3 }
 0x2c3   : > { %v2409_v15 = vadd.f32 %v2408_v24, %v2380_v50 }
 0x2c5   : > { %v4260_v56 = vadd.f32 %v2437_v35, %v2409_v15  ;;  %v2477_v35 = vmul.f32 64.0, %v3282_v36 }
 0x2c7   : > { %v2456_v12 = vsel %vm976_vm1, %v4260_v56, 0.0 }
 0x2c8   : > { %v2457_v9 = vadd.f32 %v2456_v12, %v2455_v21 }
 0x2d6   : > { %v2382_v18 = vpop.f32.mrf.mxu2 }
 0x2d7   : > { %v2383_v10 = vadd.f32 %v3278_v49, %v2382_v18  ;;  %v2452_v18 = vpop.f32.mrf.mxu1 }
 0x2de   : > { %v2384_v53 = vpop.f32.mrf.mxu2 }
 0x2df   : > { %v2385_v60 = vadd.f32 %v3278_v49, %v2384_v53 }
 0x2e4   : > { %v2411_v25 = vpop.f32.mrf.mxu3 }
 0x2e5   : > { %v2412_v38 = vadd.f32 %v2411_v25, %v2383_v10  ;;  %v2484_v10 = vld [vmem:[%s4518_s5] sm:$0x3] }
 0x2e6   : > { %v2387_v59 = vpop.f32.mrf.mxu2 }
 0x2e7   : > { %v2388_v51 = vadd.f32 %v3278_v49, %v2387_v59  ;;  %v4264_v47 = vadd.f32 %v2440_v13, %v2412_v38  ;;  %v3148_v38 = vld [vmem:[%s3473_s14 + $0xf8] sm:$0xf] }
 0x2e9   : > { %v2458_v1 = vsel %vm976_vm1, %v4264_v47, 0.0 }
 0x2ea   : > { %v2459_v16 = vadd.f32 %v2458_v1, %v2457_v9  ;;  %v2502_v1 = vld [vmem:[%s4520_s7] sm:$0x3] }
 0x2ec   : > { %v2413_v63 = vpop.f32.mrf.mxu3 }
 0x2ed   : > { %v2414_v27 = vadd.f32 %v2413_v63, %v2385_v60  ;;  %v3144_v63 = vld [vmem:[%s3473_s14 + $0xe8] sm:$0xf] }
 0x2ee   : > { %v2389_v44 = vpop.f32.mrf.mxu2 }
 0x2ef   : > { %v2390_v55 = vadd.f32 %v3278_v49, %v2389_v44  ;;  %v4268_v17 = vadd.f32 %v2442_v42, %v2414_v27  ;;  %v2478_v42 = vsub.f32 1.0, %v2477_v35  ;;  %v3152_v27 = vld [vmem:[%s3473_s14 + $0x108] sm:$0xf]  ;;  %v2498_v12 = vpop.permute.xlu0 %2497 }
 0x2f1   : > { %v2460_v62 = vsel %vm976_vm1, %v4268_v17, 0.0 }
 0x2f2   : > { %v2461_v34 = vadd.f32 %v2460_v62, %v2459_v16 }
 0x2f4   : > { %v2416_v6 = vpop.f32.mrf.mxu3 }
 0x2f5   : > { %v2417_v32 = vadd.f32 %v2416_v6, %v2388_v51  ;;  %v2479_v6 = vmul.f32 %v3282_v36, %v2478_v42  ;;  %v2598_v21 = vpop.f32.mrf.mxu0  ;;  %v3280_v42 = vld [vmem:[%s4523_s10] ss:$0 sm:$0xff] }
 0x2f6   : > { %v2392_v61 = vpop.f32.mrf.mxu2 }
 0x2f7   : > { %v2393_v20 = vadd.f32 %v3278_v49, %v2392_v61  ;;  %v4274_v31 = vadd.f32 %v2445_v23, %v2417_v32  ;;  %v3211_v23 = vld [vmem:[%s3473_s14 + $0xec] sm:$0xf0]  ;;  %v3212_v61 = vld [vmem:[%s3473_s14 + $0xfc] sm:$0xf0] }
 0x2f8   : > { %v3145_v30 = vor.u32 %v3211_v23, %v3144_v63  ;;  %v3149_v51 = vor.u32 %v3212_v61, %v3148_v38 }
 0x2f9   : > { %v2462_v14 = vsel %vm976_vm1, %v4274_v31, 0.0 }
 0x2fa   : > { %v2463_v11 = vadd.f32 %v2462_v14, %v2461_v34  ;;  %3159 = vmatmul.msk.bf16.gmra.mxu0 %vm951_vm0, %v3145_v30 }
 0x2fc   : > { %v2418_v54 = vpop.f32.mrf.mxu3 }
 0x2fd   : > { %v2419_v41 = vadd.f32 %v2418_v54, %v2390_v55  ;;  %v3213_v55 = vld [vmem:[%s3473_s14 + $0x10c] sm:$0xf0] }
 0x2fe   : > { %v2394_v7 = vpop.f32.mrf.mxu2  ;;  %v3153_v32 = vor.u32 %v3213_v55, %v3152_v27 }
 0x2ff   : > { %v4286_v37 = vadd.f32 %v2447_v39, %v2419_v41  ;;  %v2395_v48 = vadd.f32 %v3278_v49, %v2394_v7  ;;  %v2480_v39 = vadd.f32 %v3282_v36, %v2479_v6  ;;  %v2516_v7 = vld [vmem:[%s4521_s8] sm:$0x1]  ;;  %v2599_v6 = vadd.f32 %v3280_v42, %v2598_v21 }
 0x301   : > { %v2464_v33 = vsel %vm976_vm1, %v4286_v37, 0.0  ;;  %v2482_v5 = vsel %vm2481_vm14, %v3282_v36, %v2480_v39 }
 0x302   : > { %v2465_v24 = vadd.f32 %v2464_v33, %v2463_v11 }
 0x304   : > { %v2421_v3 = vpop.f32.mrf.mxu3 }
 0x305   : > { %v2422_v8 = vadd.f32 %v2421_v3, %v2393_v20  ;;  %v2600_v3 = vpop.f32.mrf.mxu0 }
 0x306   : > { %v2601_v30 = vadd.f32 %v3280_v42, %v2600_v3 }
 0x307   : > { %v4290_v52 = vadd.f32 %v2450_v19, %v2422_v8 }
 0x309   : > { %v2466_v46 = vsel %vm976_vm1, %v4290_v52, 0.0 }
 0x30a   : > { %v2467_v53 = vadd.f32 %v2466_v46, %v2465_v24  ;;  %3160 = vmatmul.msk.bf16.gmra.mxu0 %vm951_vm0, %v3149_v51 }
 0x30c   : > { %v2423_v28 = vpop.f32.mrf.mxu3 }
 0x30d   : > { %v2424_v45 = vadd.f32 %v2423_v28, %v2395_v48 }
 0x30f   : > { %v4297_v13 = vadd.f32 %v2452_v18, %v2424_v45 }
 0x311   : > { %v2468_v25 = vsel %vm976_vm1, %v4297_v13, 0.0 }
 0x312   : > { %v2469_v59 = vadd.f32 %v2468_v25, %v2467_v53 }
 0x314   : > { %v2470_v44 = vrot.slane %v2469_v59, 4 }
 0x316   : > { %v2471_v49 = vadd.f32 %v2470_v44, %v2469_v59 }
 0x318   : > { %v2472_v50 = vrot.slane %v2471_v49, 2 }
 0x31a   : > { %v2473_v4 = vadd.f32 %v2472_v50, %v2471_v49  ;;  %3161 = vmatmul.msk.bf16.gmra.mxu0 %vm951_vm0, %v3153_v32 }
 0x31c   : > { %v2474_v58 = vrot.slane %v2473_v4, 1 }
 0x31e   : > { %v2475_v15 = vadd.f32 %v2474_v58, %v2473_v4 }
 0x320   : > { %v2483_v2 = vmul.f32 %v2482_v5, %v2475_v15 }
 0x322   : > { %v2485_v54 = vmul.f32 %v2484_v10, %v2483_v2 }
 0x324   : > { %v2487_v60 = vsel %vm2486_vm15, %v2485_v54, 0.0 }
 0x325   : > { %2488 = vadd.xlane.f32.xlu2 %v2487_v60 }
 0x377   : > { %v2603_v43 = vpop.f32.mrf.mxu0 }
 0x378   : > { %v2604_v39 = vadd.f32 %v3280_v42, %v2603_v43 }
 0x37f   : > { %v2605_v9 = vpop.f32.mrf.mxu0 }
 0x380   : > { %v2606_v4 = vadd.f32 %v3280_v42, %v2605_v9 }
 0x387   : > { %v2608_v36 = vpop.f32.mrf.mxu0 }
 0x388   : > { %v2609_v58 = vadd.f32 %v3280_v42, %v2608_v36 }
 0x38f   : > { %v2610_v48 = vpop.f32.mrf.mxu0 }
 0x390   : > { %v2611_v5 = vadd.f32 %v3280_v42, %v2610_v48 }
 0x397   : > { %v2613_v46 = vpop.f32.mrf.mxu0 }
 0x398   : > { %v2489_v20 = vpop.xlane.xlu2 %2488  ;;  %v2614_v15 = vadd.f32 %v3280_v42, %v2613_v46 }
 0x399   : > { %v2500_v41 = vadd.f32 %v2498_v12, %v2489_v20 }
 0x39b   : > { %v2501_v19 = vmax.f32 %v2500_v41, 0.0 }
 0x39d   : > { %2505 = vperm.xlu1 %3275, %v2501_v19  }
 0x39f   : > { %v2615_v44 = vpop.f32.mrf.mxu0 }
 0x3a0   : > { %v2616_v10 = vadd.f32 %v3280_v42, %v2615_v44 }
 0x40f   : > { %v2506_v8 = vpop.permute.xlu1 %2505 }
 0x410   : > { %v2508_v0 = vmul.f32 %v2506_v8, %v2502_v1 }
 0x412   : > { %v2509_v22 = vsel %vm2486_vm15, %v2508_v0, 0.0 }
 0x413   : > { %v2510_v29 = vrot.slane %v2509_v22, 4 }
 0x415   : > { %v2511_v26 = vadd.f32 %v2510_v29, %v2509_v22 }
 0x417   : > { %v2512_v62 = vrot.slane %v2511_v26, 2 }
 0x419   : > { %v2513_v40 = vadd.f32 %v2512_v62, %v2511_v26 }
 0x41b   : > { %v2514_v16 = vrot.slane %v2513_v40, 1 }
 0x41d   : > { %v2515_v14 = vadd.f32 %v2514_v16, %v2513_v40 }
 0x41f   : > { %v2517_v34 = vadd.f32 %v2516_v7, %v2515_v14 }
 0x421   : > { %v3129_v33 = vmul.f32 -1.442695, %v2517_v34 }
 0x423   : > { %3283 = vpow2.f32 %v3129_v33 }
 0x429   : > { %v3284_v11 = vpop.eup %3283 }
 0x42a   : > { %v2521_v28 = vadd.f32 1.0, %v3284_v11 }
 0x42c   : > { %3285 = vrcp.f32 %v2521_v28  ;;  %v2533_v24 = vand.u32 2147483648, %v2521_v28  ;;  %v2531_v25 = vand.u32 2147483647, %v2521_v28  ;;  %vm2527_vm2 = vweird.f32 %v2521_v28 }
 0x42e   : > { %v2534_v63 = vor.u32 1.1754944e-38, %v2533_v24  ;;  %vm2532_vm6 = vcmp.eq.f32.partialorder %v2531_v25, 8.507059e+37 }
 0x432   : > { %v3286_v45 = vpop.eup %3285 }
 0x433   : > { %v2523_v35 = vmul.f32 %v3286_v45, %v2521_v28  ;;  %vm2528_vm0 = vweird.f32 %v3286_v45 }
 0x434   : > { %vm2529_vm4 = vmor %vm2527_vm2, %vm2528_vm0 }
 0x435   : > { %v2524_v18 = vsub.f32 1.0, %v2523_v35 }
 0x437   : > { %v2525_v53 = vmul.f32 %v3286_v45, %v2524_v18 }
 0x439   : > { %v2526_v59 = vadd.f32 %v3286_v45, %v2525_v53 }
 0x43b   : > { %v2530_v23 = vsel %vm2529_vm4, %v3286_v45, %v2526_v59 }
 0x43c   : > { %v2535_v49 = vsel %vm2532_vm6, %v2534_v63, %v2530_v23 }
 0x43d   : > { %v2618_v50 = vperm.slane %v2535_v49, 0 }
 0x43f   : > { %v2621_v2 = vmul.f32 %v2618_v50, %v4264_v47  ;;  %v2622_v54 = vmul.f32 %v2618_v50, %v4268_v17  ;;  %v2623_v60 = vmul.f32 %v2618_v50, %v4274_v31  ;;  %v2624_v38 = vmul.f32 %v2618_v50, %v4286_v37 }
 0x440   : > { %v2625_v61 = vmul.f32 %v2618_v50, %v4290_v52  ;;  %v2626_v51 = vmul.f32 %v2618_v50, %v4297_v13  ;;  %v2619_v27 = vmul.f32 %v2618_v50, %v4262_v57  ;;  %v2620_v55 = vmul.f32 %v2618_v50, %v4260_v56 }
 0x441   : > { %v2629_v32 = vadd.f32 %v2621_v2, %v2604_v39  ;;  %v2630_v12 = vadd.f32 %v2622_v54, %v2606_v4  ;;  %v2631_v20 = vadd.f32 %v2623_v60, %v2609_v58  ;;  %v2632_v41 = vadd.f32 %v2624_v38, %v2611_v5 }
 0x442   : > { %v2633_v19 = vadd.f32 %v2625_v61, %v2614_v15  ;;  %v2634_v47 = vadd.f32 %v2626_v51, %v2616_v10  ;;  %v2627_v21 = vadd.f32 %v2619_v27, %v2599_v6  ;;  %v2628_v17 = vadd.f32 %v2620_v55, %v2601_v30 }
 0x443   : > { %v2637_v3 = vmax.f32 %v2629_v32, 0.0  ;;  %v2638_v31 = vmax.f32 %v2630_v12, 0.0  ;;  %v2639_v43 = vmax.f32 %v2631_v20, 0.0  ;;  %v2640_v37 = vmax.f32 %v2632_v41, 0.0 }
 0x444   : > { %v2641_v52 = vmax.f32 %v2633_v19, 0.0  ;;  %v2642_v1 = vmax.f32 %v2634_v47, 0.0  ;;  %v2635_v13 = vmax.f32 %v2627_v21, 0.0  ;;  %v2636_v8 = vmax.f32 %v2628_v17, 0.0 }
 0x445   : > { %v2645_v57 = vpack.c.bf16 %v2637_v3, %v2637_v3  ;;  %v2646_v56 = vpack.c.bf16 %v2638_v31, %v2638_v31  ;;  %v2647_v0 = vpack.c.bf16 %v2639_v43, %v2639_v43  ;;  %v2648_v22 = vpack.c.bf16 %v2640_v37, %v2640_v37 }
 0x446   : > { %v2649_v29 = vpack.c.bf16 %v2641_v52, %v2641_v52  ;;  %v2650_v9 = vpack.c.bf16 %v2642_v1, %v2642_v1  ;;  %v2643_v26 = vpack.c.bf16 %v2635_v13, %v2635_v13  ;;  %v2644_v62 = vpack.c.bf16 %v2636_v8, %v2636_v8 }
 0x447   : > { %v2661_v40 = vunpack.c.l.b16 %v2645_v57  ;;  %v2662_v16 = vunpack.c.l.b16 %v2646_v56  ;;  %v2663_v7 = vunpack.c.l.b16 %v2647_v0  ;;  %v2664_v14 = vunpack.c.l.b16 %v2648_v22 }
 0x448   : > { %v2665_v36 = vunpack.c.l.b16 %v2649_v29  ;;  %v2666_v34 = vunpack.c.l.b16 %v2650_v9  ;;  %v2659_v33 = vunpack.c.l.b16 %v2643_v26  ;;  %v2660_v48 = vunpack.c.l.b16 %v2644_v62 }
 0x449   : > { %v4333_v11 = vunpack.i.l.s16 %v2661_v40  ;;  %v4335_v28 = vunpack.i.l.s16 %v2662_v16  ;;  %v4337_v46 = vunpack.i.l.s16 %v2663_v7  ;;  %v4339_v45 = vunpack.i.l.s16 %v2664_v14 }
 0x44a   : > { %v4341_v35 = vunpack.i.l.s16 %v2665_v36  ;;  %v4343_v18 = vunpack.i.l.s16 %v2666_v34  ;;  %v4345_v24 = vunpack.i.l.s16 %v2659_v33  ;;  %v4347_v53 = vunpack.i.l.s16 %v2660_v48 }
 0x44b   : > { %v2774_v25 = vrot.slane %v4333_v11, 3  ;;  %v2776_v42 = vrot.slane %v4335_v28, 2  ;;  %v2778_v59 = vrot.slane %v4337_v46, 1  ;;  %v2707_v6 = vrot.slane %v4333_v11, 7 }
 0x44c   : > { %v2771_v63 = vrot.slane %v4345_v24, 5  ;;  %v2772_v23 = vrot.slane %v4347_v53, 4  ;;  %v2781_v44 = vrot.slane %v4341_v35, 7  ;;  %v2783_v49 = vrot.slane %v4343_v18, 6 }
 0x44d   : > { %v2705_v30 = vrot.slane %v4345_v24, 1  ;;  %v2709_v50 = vrot.slane %v4335_v28, 6  ;;  %v2711_v39 = vrot.slane %v4337_v46, 5  ;;  %v2713_v58 = vrot.slane %v4339_v45, 4 }
 0x44e   : > { %v2773_v4 = vsel %vm2684_vm7, %v2772_v23, %v2771_v63  ;;  %v2715_v5 = vrot.slane %v4341_v35, 3  ;;  %v2788_v15 = vrot.slane %v4345_v24, 6  ;;  %v2789_v54 = vrot.slane %v4347_v53, 5 }
 0x44f   : > { %v2775_v10 = vsel %vm2687_vm8, %v2774_v25, %v2773_v4  ;;  %v2706_v2 = vsel %vm2684_vm7, %v4347_v53, %v2705_v30  ;;  %v2791_v60 = vrot.slane %v4333_v11, 4  ;;  %v2717_v51 = vrot.slane %v4343_v18, 2 }
 0x450   : > { %v2777_v38 = vsel %vm2690_vm9, %v2776_v42, %v2775_v10  ;;  %v2708_v61 = vsel %vm2687_vm8, %v2707_v6, %v2706_v2  ;;  %v2793_v27 = vrot.slane %v4335_v28, 3  ;;  %v2790_v12 = vsel %vm2684_vm7, %v2789_v54, %v2788_v15 }
 0x451   : > { %v2779_v55 = vsel %vm2693_vm10, %v2778_v59, %v2777_v38  ;;  %v2710_v32 = vsel %vm2690_vm9, %v2709_v50, %v2708_v61  ;;  %v2795_v20 = vrot.slane %v4337_v46, 2  ;;  %v2792_v47 = vsel %vm2687_vm8, %v2791_v60, %v2790_v12 }
 0x452   : > { %v2780_v41 = vsel %vm2696_vm11, %v4339_v45, %v2779_v55  ;;  %v2712_v19 = vsel %vm2693_vm10, %v2711_v39, %v2710_v32  ;;  %v2797_v21 = vrot.slane %v4339_v45, 1  ;;  %v2794_v31 = vsel %vm2690_vm9, %v2793_v27, %v2792_v47 }
 0x453   : > { %v2782_v17 = vsel %vm2699_vm12, %v2781_v44, %v2780_v41  ;;  %v2714_v3 = vsel %vm2696_vm11, %v2713_v58, %v2712_v19  ;;  %v2722_v43 = vrot.slane %v4345_v24, 2  ;;  %v2796_v1 = vsel %vm2693_vm10, %v2795_v20, %v2794_v31 }
 0x454   : > { %v2784_v37 = vsel %vm2702_vm13, %v2783_v49, %v2782_v17  ;;  %v2716_v52 = vsel %vm2699_vm12, %v2715_v5, %v2714_v3  ;;  %v2723_v13 = vrot.slane %v4347_v53, 1  ;;  %v2798_v56 = vsel %vm2696_vm11, %v2797_v21, %v2796_v1 }
 0x455   : > { %v2785_v8 = vpack.c.b16 %v2784_v37, %v2784_v37  ;;  %v2718_v57 = vsel %vm2702_vm13, %v2717_v51, %v2716_v52  ;;  %v2800_v0 = vrot.slane %v4343_v18, 7  ;;  %v2799_v29 = vsel %vm2699_vm12, %v4341_v35, %v2798_v56 }
 0x456   : > { %v2719_v22 = vpack.c.b16 %v2718_v57, %v2718_v57  ;;  %v2724_v9 = vsel %vm2684_vm7, %v2723_v13, %v2722_v43  ;;  %v2726_v26 = vrot.slane %v4335_v28, 7  ;;  %v2728_v16 = vrot.slane %v4337_v46, 6 }
 0x457   : > { %2786 = vrot.lane.b32.xlu0 %v2785_v8, %s4538_s30  ;;  %v2801_v62 = vsel %vm2702_vm13, %v2800_v0, %v2799_v29  ;;  %v2725_v40 = vsel %vm2687_vm8, %v4333_v11, %v2724_v9  ;;  %v2730_v14 = vrot.slane %v4339_v45, 5  ;;  %v2805_v36 = vrot.slane %v4345_v24, 7 }
 0x458   : > { %2720 = vrot.lane.b32.xlu1 %v2719_v22, %s4538_s30  ;;  %v2727_v7 = vsel %vm2690_vm9, %v2726_v26, %v2725_v40  ;;  %v2732_v33 = vrot.slane %v4341_v35, 4  ;;  %v2806_v48 = vrot.slane %v4347_v53, 6  ;;  %v2808_v25 = vrot.slane %v4333_v11, 5  ;;  %s3215_s30 = sshll.u32 %s3441_s21, 3 }
 0x459   : > { %v2729_v34 = vsel %vm2693_vm10, %v2728_v16, %v2727_v7  ;;  %v2802_v42 = vpack.c.b16 %v2801_v62, %v2801_v62  ;;  %v2734_v63 = vrot.slane %v4343_v18, 3  ;;  %v2810_v23 = vrot.slane %v4335_v28, 4  ;;  %s2855_s22 = scalar_lea.hbm %s4524_s11, %s3215_s30 }
 0x45a   : > { %v2731_v59 = vsel %vm2696_vm11, %v2730_v14, %v2729_v34  ;;  %v2807_v6 = vsel %vm2684_vm7, %v2806_v48, %v2805_v36  ;;  %v2739_v49 = vrot.slane %v4345_v24, 3  ;;  %v2740_v30 = vrot.slane %v4347_v53, 2  ;;  %s2859_s25 = sshll.u32 %s2855_s22, 4  ;;  %s2860_s25 = int_to_ptr.hbm [resolvable:$true] %s2859_s25 }
 0x45b   : > { %v2733_v44 = vsel %vm2699_vm12, %v2732_v33, %v2731_v59  ;;  %v2809_v39 = vsel %vm2687_vm8, %v2808_v25, %v2807_v6  ;;  %v2812_v4 = vrot.slane %v4337_v46, 3  ;;  %v2742_v58 = vrot.slane %v4333_v11, 1  ;;  %s3301_s12 = sshra.s32 %s2860_s25, 4  ;;  %s3302_s12 = int_to_ptr.hbm [resolvable:$true] %s3301_s12 }
 0x45c   : > { %v2735_v50 = vsel %vm2702_vm13, %v2734_v63, %v2733_v44  ;;  %v2811_v5 = vsel %vm2690_vm9, %v2810_v23, %v2809_v39  ;;  %v2814_v15 = vrot.slane %v4339_v45, 2  ;;  %v2816_v10 = vrot.slane %v4341_v35, 1  ;;  %s3303_s30 = scalar_lea.hbm %s3302_s12, 8  ;;  %p3308_p0 = scmp.lt.s32.totalorder %s3302_s12, %s4524_s11 }
 0x45d   : > { %v2741_v2 = vsel %vm2684_vm7, %v2740_v30, %v2739_v49  ;;  %v2736_v54 = vpack.c.b16 %v2735_v50, %v2735_v50  ;;  %v2813_v60 = vsel %vm2693_vm10, %v2812_v4, %v2811_v5  ;;  %v2745_v61 = vrot.slane %v4337_v46, 7  ;;  %p3304_p11 = scmp.ne.s32.totalorder %s3302_s12, %s3303_s30  ;;  %p3309_p1 = scmp.lt.s32.totalorder %s3307_s0, %s3303_s30 }
 0x45e   : > { %v2743_v38 = vsel %vm2687_vm8, %v2742_v58, %v2741_v2  ;;  %v2815_v51 = vsel %vm2696_vm11, %v2814_v15, %v2813_v60  ;;  %v2747_v55 = vrot.slane %v4339_v45, 6  ;;  %v2749_v20 = vrot.slane %v4341_v35, 5 }
 0x45f   : > { %2803 = vrot.lane.b32.xlu0 %v2802_v42, %s3351_s15  ;;  %v2744_v27 = vsel %vm2690_vm9, %v4335_v28, %v2743_v38  ;;  %v2817_v32 = vsel %vm2699_vm12, %v2816_v10, %v2815_v51  ;;  %v2757_v41 = vrot.slane %v4347_v53, 3  ;;  %v2751_v47 = vrot.slane %v4343_v18, 4  ;;  %p3305_p12 = pnand %p3304_p11, %p3458_p5  ;;  %p3310_p2 = por %p3309_p1, %p3308_p0 }
 0x460   : > { %2737 = vrot.lane.b32.xlu1 %v2736_v54, %s3351_s15  ;;  %v2746_v12 = vsel %vm2693_vm10, %v2745_v61, %v2744_v27  ;;  %v2759_v21 = vrot.slane %v4333_v11, 2  ;;  %v2818_v17 = vsel %vm2702_vm13, %v4343_v18, %v2817_v32  ;;  %v2756_v31 = vrot.slane %v4345_v24, 4  ;;  %s377_s15 = sand.u32 1, %s3341_s18  }
 0x461   : > { %v2748_v19 = vsel %vm2696_vm11, %v2747_v55, %v2746_v12  ;;  %v2683_v43 = vrot.slane %v4347_v53, 7  ;;  %v2686_v52 = vrot.slane %v4333_v11, 6  ;;  %v2761_v1 = vrot.slane %v4335_v28, 1  ;;  %s2844_s24 = scalar_lea.sflag [#allocation4], %s377_s15  ;;  %p3306_p13 = pneg %p3305_p12 }
 0x462   : > { %v2750_v3 = vsel %vm2699_vm12, %v2749_v20, %v2748_v19  ;;  %v2764_v13 = vrot.slane %v4339_v45, 7  ;;  %v2758_v8 = vsel %vm2684_vm7, %v2757_v41, %v2756_v31  ;;  %v2819_v57 = vpack.c.b16 %v2818_v17, %v2818_v17 }
 0x463   : > { %v2752_v37 = vsel %vm2702_vm13, %v2751_v47, %v2750_v3  ;;  %v2760_v56 = vsel %vm2687_vm8, %v2759_v21, %v2758_v8  ;;  %v2689_v0 = vrot.slane %v4335_v28, 5  ;;  %v2685_v22 = vsel %vm2684_vm7, %v2683_v43, %v4345_v24  ;;  %p3311_p3 = pnand %p3310_p2, %p3306_p13 }
 0x464   : > { %v2753_v29 = vpack.c.b16 %v2752_v37, %v2752_v37  ;;  %v2762_v53 = vsel %vm2690_vm9, %v2761_v1, %v2760_v56  ;;  %v2692_v9 = vrot.slane %v4337_v46, 4  ;;  %v2688_v11 = vsel %vm2687_vm8, %v2686_v52, %v2685_v22 }
 0x465   : > { %v2766_v26 = vrot.slane %v4341_v35, 6  ;;  %v2763_v62 = vsel %vm2693_vm10, %v4337_v46, %v2762_v53  ;;  %v2695_v40 = vrot.slane %v4339_v45, 3  ;;  %v2691_v28 = vsel %vm2690_vm9, %v2689_v0, %v2688_v11 }
 0x466   : > { %v2768_v24 = vrot.slane %v4343_v18, 5  ;;  %v2765_v16 = vsel %vm2696_vm11, %v2764_v13, %v2763_v62  ;;  %v2698_v7 = vrot.slane %v4341_v35, 2  ;;  %v2694_v14 = vsel %vm2693_vm10, %v2692_v9, %v2691_v28 }
 0x467   : > { %2820 = vrot.lane.b32.xlu0 %v2819_v57, %s3356_s29  ;;  %v2767_v36 = vsel %vm2699_vm12, %v2766_v26, %v2765_v16  ;;  %v2701_v46 = vrot.slane %v4343_v18, 1  ;;  %v2697_v45 = vsel %vm2696_vm11, %v2695_v40, %v2694_v14 }
 0x468   : > { %2754 = vrot.lane.b32.xlu1 %v2753_v29, %s3356_s29  ;;  %v2769_v34 = vsel %vm2702_vm13, %v2768_v24, %v2767_v36  ;;  %v2700_v33 = vsel %vm2699_vm12, %v2698_v7, %v2697_v45  ;;  %s2923_s29 = sshll.u32 %s377_s15, 3 }
 0x469   : > { %v2703_v48 = vsel %vm2702_vm13, %v2701_v46, %v2700_v33  ;;  %v2770_v35 = vpack.c.b16 %v2769_v34, %v2769_v34  ;;  %s379_s21 = scalar_lea.vmem [#allocation3], %s2923_s29 }
 0x46a   : > { %v2704_v23 = vpack.c.b16 %v2703_v48, %v2703_v48  ;;  %s2857_s14 = sshll.u32 %s379_s21, 4  ;;  %s2858_s14 = int_to_ptr.vmem [resolvable:$true] %s2857_s14 }
 0x4c9   : > { %v2787_v25 = vpop.permute.xlu0 %2786 }
 0x4ca   : > { %v2721_v42 = vpop.permute.xlu1 %2720  ;;  %v2831_v44 = vsel %vm976_vm1, %v2770_v35, %v2787_v25 }
 0x4cb   : > { %v2824_v18 = vsel %vm976_vm1, %v2704_v23, %v2721_v42 }
 0x4d1   : > { %v2804_v59 = vpop.permute.xlu0 %2803 }
 0x4d2   : > { %v2738_v63 = vpop.permute.xlu1 %2737  ;;  %v2833_v6 = vsel %vm1010_vm3, %v2831_v44, %v2804_v59 }
 0x4d3   : > { %v2826_v30 = vsel %vm1010_vm3, %v2824_v18, %v2738_v63 }
 0x4d9   : > { %v2821_v49 = vpop.permute.xlu0 %2820 }
 0x4da   : > { %v2835_v50 = vsel %vm1044_vm5, %v2833_v6, %v2821_v49  ;;  %v2755_v39 = vpop.permute.xlu1 %2754 }
 0x4db   : > { %v2839_v4 = vunpack.c.l.b16 %v2835_v50  ;;  %v2828_v58 = vsel %vm1044_vm5, %v2826_v30, %v2755_v39 }
 0x4dc   : > { %v2838_v5 = vunpack.c.l.b16 %v2828_v58 }
 0x4de   : > { %v2840_v15 = vpack.c.b16 %v2839_v4, %v2838_v5 }
 0x4e0   : > { %2842 = vst [vmem:[%s379_s21] sm:$0xff] %v2840_v15 }
 0x4e1   : > { %3314 = shalt.err (!%p3311_p3)
}
 0x4e2   : > { %3226 = dma.vmem_to_hbm [thread:$0]  (%p3458_p5), %s2858_s14, 128, %s2860_s25, %s2844_s24  }
 0x4e3 PF: > { %p3232_p4 = scmp.ge.s32.totalorder %s3349_s20, 2  ;;  %s2871_s15 = sand.u32 1, %s3337_s17  }
 0x4e4   : > { %s2872_s22 = scalar_lea.sflag [#allocation4], %s2871_s15 }
 0x4e5   : > { %p3229_p7 = pnand %p3232_p4, %p3462_p6 }
 0x4e7   : > { %p3230_p8 = pneg %p3229_p7 }
 0x4e9   : > { %3332 = dma.done.wait (%p3230_p8), %s2872_s22, 128  }
 0x4ea   : > { %3334 = vsyncadd (%p3230_p8), %s2872_s22, 4294967168  ;;  %p21_p9 = scmp.ge.s32.totalorder %s3445_s23, 4   ;;  %s4546_s17 = smov %s3341_s18 }
 0x4eb   : > { %s4547_s18 = smov %s3345_s19  ;;  %s4548_s19 = smov %s3456_s26 }
 0x4ec   : > { %s4549_s20 = smov %s3445_s23  ;;  %23 = sbr.rel (!%p21_p9) target bundleno = 6 (0x6), region = 107 }
 0x4f1   :  { %2878 = vsyncpa [#allocation4], 1 }
 0x4f2   :  { %2880 = vsyncpa [#allocation4 + $0x1], 1 }

</bundles_post_ra>
